<compile_context>
chip_gen: v6e
topology: v6e:2x2x1
jax: 0.10.0
libtpu: 0.0.40
codegen_flags: <defaults>
</compile_context>

<pallas_src>
import jax
import jax.numpy as jnp
from jax import lax
from jax.experimental import pallas as pl
from jax.experimental.pallas import tpu as pltpu

LEAKY_SLOPE = 0.01   # nn.LeakyReLU default
BN_EPS = 1e-5        # nn.BatchNorm2d default
TILE_M = 512         # target rows per grid tile (~85% HBM roofline per tiling table)
VMEM_LIMIT = 32 * 1024 * 1024  # safe on v5e/v6e/v7x


def _leaky(x):
    return jnp.where(x >= 0, x, LEAKY_SLOPE * x)


def _tile_m(M, target=TILE_M):
    """Pick an M-tile: single full-slab block for small M, 512-row tiles otherwise."""
    if M <= target:
        return M, M, 1          # (tile, padded_M, num_tiles)
    nt = (M + target - 1) // target
    return target, nt * target, nt


# ---------------------------------------------------------------------------
# Pallas kernel 1: convolution as a single folded-K matmul per M-tile.
#   patches (TM, Kh*Kw*Cin) @ weights (Kh*Kw*Cin, Cout) on the MXU,
#   bias / residual add / post-LeakyReLU fused in the epilogue.
# ---------------------------------------------------------------------------
def _make_conv_kernel(has_res: bool, post_leaky: bool):
    def kernel(*refs):
        if has_res:
            p_ref, w_ref, b_ref, r_ref, o_ref = refs
        else:
            p_ref, w_ref, b_ref, o_ref = refs
            r_ref = None
        out = jnp.dot(p_ref[...], w_ref[...], preferred_element_type=jnp.float32)
        out = out + b_ref[...]
        if has_res:
            out = out + r_ref[...].astype(jnp.float32)
        if post_leaky:
            out = _leaky(out)
        o_ref[...] = out.astype(o_ref.dtype)
    return kernel


def conv2d_pallas(x, w, b, *, stride, pad, residual=None, post_leaky=False):
    """x: (N,H,W,Cin) NHWC; w: (Kh,Kw,Cin,Cout); b: (Cout,); residual: NHWC or None."""
    N, H, W_, Cin = x.shape
    Kh, Kw, _, Cout = w.shape
    Ho = (H + 2 * pad - Kh) // stride + 1
    Wo = (W_ + 2 * pad - Kw) // stride + 1
    M = N * Ho * Wo
    K = Kh * Kw * Cin

    # im2col with taps folded into the contraction dim: (M, Kh*Kw*Cin).
    xp = jnp.pad(x, ((0, 0), (pad, pad), (pad, pad), (0, 0)))
    cols = []
    for kh in range(Kh):
        for kw in range(Kw):
            sl = xp[:, kh:kh + stride * Ho:stride, kw:kw + stride * Wo:stride, :]
            cols.append(sl.reshape(M, Cin))
    P = jnp.concatenate(cols, axis=-1).astype(jnp.bfloat16)        # (M, K) bf16 MXU operand
    Wm = w.reshape(K, Cout).astype(jnp.bfloat16)                   # (K, Cout) bf16
    b2 = b.reshape(1, Cout).astype(jnp.float32)

    TM, Mp, nt = _tile_m(M)
    if Mp != M:
        P = jnp.pad(P, ((0, Mp - M), (0, 0)))

    inputs = [P, Wm, b2]
    in_specs = [
        pl.BlockSpec((TM, K), lambda i: (i, 0)),
        pl.BlockSpec((K, Cout), lambda i: (0, 0)),
        pl.BlockSpec((1, Cout), lambda i: (0, 0)),
    ]
    if residual is not None:
        r = residual.reshape(M, Cout)
        if Mp != M:
            r = jnp.pad(r, ((0, Mp - M), (0, 0)))
        inputs.append(r)
        in_specs.append(pl.BlockSpec((TM, Cout), lambda i: (i, 0)))

    out = pl.pallas_call(
        _make_conv_kernel(residual is not None, post_leaky),
        out_shape=jax.ShapeDtypeStruct((Mp, Cout), jnp.float32),
        grid_spec=pltpu.PrefetchScalarGridSpec(
            num_scalar_prefetch=0,
            grid=(nt,),
            in_specs=in_specs,
            out_specs=pl.BlockSpec((TM, Cout), lambda i: (i, 0)),
        ),
        compiler_params=pltpu.CompilerParams(
            dimension_semantics=("parallel",),      # M-tiles shard across v7x cores
            vmem_limit_bytes=VMEM_LIMIT,
        ),
    )(*inputs)
    if Mp != M:
        out = out[:M]
    return out.reshape(N, Ho, Wo, Cout)


def conv_transpose2d_pallas(x, w, b):
    """PyTorch ConvTranspose2d(k=4, s=2, p=1). w: (Cin, Cout, 4, 4) (PyTorch layout).

    Phase decomposition: instead of convolving a zero-upsampled input (75% zeros),
    all four output phases are produced by ONE 3x3 stride-1 conv with 4*Cout output
    channels over the original input, then spatially interleaved.
    """
    Cin, Cout, Kh, Kw = w.shape
    assert (Kh, Kw) == (4, 4)
    N, H, W_, _ = x.shape

    # flipped kernel in (kh, kw, Cin, Cout) layout
    wf = jnp.transpose(w[:, :, ::-1, ::-1], (2, 3, 0, 1))
    # combined 3x3 kernel: channel group (ph, pw) holds that phase's 2x2 sub-kernel
    Wc = jnp.zeros((3, 3, Cin, 2, 2, Cout), w.dtype)
    for ph in range(2):
        for pw in range(2):
            for dh in range(2):
                for dw in range(2):
                    Wc = Wc.at[ph + dh, pw + dw, :, ph, pw, :].set(
                        wf[2 * dh + ph, 2 * dw + pw])
    Wc = Wc.reshape(3, 3, Cin, 4 * Cout)
    bc = jnp.tile(b, 4)

    y = conv2d_pallas(x, Wc, bc, stride=1, pad=1)          # (N, H, W, 4*Cout)
    y = y.reshape(N, H, W_, 2, 2, Cout)
    y = jnp.transpose(y, (0, 1, 3, 2, 4, 5)).reshape(N, 2 * H, 2 * W_, Cout)
    return y


# ---------------------------------------------------------------------------
# Pallas kernel 2: BatchNorm2d (training mode, biased batch variance) with
# optional fused pre-tanh / post-LeakyReLU.
#   small slabs: single fused kernel.  large slabs: tiled two-pass
#   (per-channel sum/sumsq reduction, then per-tile normalize).
# ---------------------------------------------------------------------------
def _make_bn_fused_kernel(pre_tanh: bool, post_leaky: bool):
    def kernel(x_ref, g_ref, b_ref, o_ref):
        x = x_ref[...].astype(jnp.float32)
        if pre_tanh:
            x = jnp.tanh(x)
        mean = jnp.mean(x, axis=0, keepdims=True)
        var = jnp.mean((x - mean) ** 2, axis=0, keepdims=True)   # biased (train mode)
        y = (x - mean) * lax.rsqrt(var + BN_EPS) * g_ref[...] + b_ref[...]
        if post_leaky:
            y = _leaky(y)
        o_ref[...] = y.astype(o_ref.dtype)
    return kernel


def _make_bn_stats_kernel(pre_tanh: bool, M: int, TM: int):
    def kernel(x_ref, s_ref):
        t = pl.program_id(0)

        @pl.when(t == 0)
        def _():
            s_ref[...] = jnp.zeros_like(s_ref)

        x = x_ref[...].astype(jnp.float32)
        if pre_tanh:
            x = jnp.tanh(x)
        row = t * TM + lax.broadcasted_iota(jnp.int32, x.shape, 0)
        x = jnp.where(row < M, x, 0.0)                  # mask padded rows
        acc = jnp.concatenate(
            [jnp.sum(x, axis=0, keepdims=True),
             jnp.sum(x * x, axis=0, keepdims=True)], axis=0)
        s_ref[...] += acc
    return kernel


def _make_bn_norm_kernel(pre_tanh: bool, post_leaky: bool):
    def kernel(x_ref, sc_ref, sh_ref, o_ref):
        x = x_ref[...].astype(jnp.float32)
        if pre_tanh:
            x = jnp.tanh(x)
        y = x * sc_ref[...] + sh_ref[...]
        if post_leaky:
            y = _leaky(y)
        o_ref[...] = y.astype(o_ref.dtype)
    return kernel


def batchnorm_pallas(x, gamma, beta, *, pre_tanh=False, post_leaky=False):
    N, H, W_, C = x.shape
    M = N * H * W_
    xf = x.reshape(M, C)
    g = gamma.reshape(1, C).astype(jnp.float32)
    b = beta.reshape(1, C).astype(jnp.float32)
    TM, Mp, nt = _tile_m(M)

    if nt == 1:
        out = pl.pallas_call(
            _make_bn_fused_kernel(pre_tanh, post_leaky),
            out_shape=jax.ShapeDtypeStruct((M, C), x.dtype),
            grid=(1,),
            in_specs=[pl.BlockSpec((M, C), lambda i: (0, 0)),
                      pl.BlockSpec((1, C), lambda i: (0, 0)),
                      pl.BlockSpec((1, C), lambda i: (0, 0))],
            out_specs=pl.BlockSpec((M, C), lambda i: (0, 0)),
            compiler_params=pltpu.CompilerParams(vmem_limit_bytes=VMEM_LIMIT),
        )(xf, g, b)
        return out.reshape(N, H, W_, C)

    # --- tiled two-pass path (large N*H*W): stats reduction, then normalize ---
    xp = jnp.pad(xf, ((0, Mp - M), (0, 0)))
    stats = pl.pallas_call(
        _make_bn_stats_kernel(pre_tanh, M, TM),
        out_shape=jax.ShapeDtypeStruct((2, C), jnp.float32),
        grid_spec=pltpu.PrefetchScalarGridSpec(
            num_scalar_prefetch=0, grid=(nt,),
            in_specs=[pl.BlockSpec((TM, C), lambda i: (i, 0))],
            out_specs=pl.BlockSpec((2, C), lambda i: (0, 0)),
        ),
        compiler_params=pltpu.CompilerParams(
            dimension_semantics=("arbitrary",), vmem_limit_bytes=VMEM_LIMIT),
    )(xp)
    mean = stats[0] / M
    var = jnp.maximum(stats[1] / M - mean * mean, 0.0)      # biased variance
    scale = gamma * lax.rsqrt(var + BN_EPS)
    shift = beta - mean * scale

    out = pl.pallas_call(
        _make_bn_norm_kernel(pre_tanh, post_leaky),
        out_shape=jax.ShapeDtypeStruct((Mp, C), x.dtype),
        grid_spec=pltpu.PrefetchScalarGridSpec(
            num_scalar_prefetch=0, grid=(nt,),
            in_specs=[pl.BlockSpec((TM, C), lambda i: (i, 0)),
                      pl.BlockSpec((1, C), lambda i: (0, 0)),
                      pl.BlockSpec((1, C), lambda i: (0, 0))],
            out_specs=pl.BlockSpec((TM, C), lambda i: (i, 0)),
        ),
        compiler_params=pltpu.CompilerParams(
            dimension_semantics=("parallel",), vmem_limit_bytes=VMEM_LIMIT),
    )(xp, scale.reshape(1, C), shift.reshape(1, C))
    return out[:M].reshape(N, H, W_, C)


# ---------------------------------------------------------------------------
# ResBlock: x + Conv1x1(LeakyReLU(Conv3x3(LeakyReLU(x))))
#   First LeakyReLU is applied once on x (fused by XLA into the im2col gather);
#   second LeakyReLU is fused into conv1's epilogue; the skip-add is fused into
#   conv2's epilogue.
# ---------------------------------------------------------------------------
def resblock(x, rp):
    xa = _leaky(x)
    h = conv2d_pallas(xa, rp["w1"], rp["b1"], stride=1, pad=1, post_leaky=True)
    return conv2d_pallas(h, rp["w2"], rp["b2"], stride=1, pad=0, residual=x)


# ---------------------------------------------------------------------------
# Deterministic synthetic parameters (shapes follow the PyTorch __init__).
# ---------------------------------------------------------------------------
def init_params(key, d=32, k=10, num_channels=3):
    keys = iter(jax.random.split(key, 16))

    def conv_w(cout, cin, kh, kw):
        # PyTorch Conv2d layout (Cout,Cin,Kh,Kw) -> kernel layout (Kh,Kw,Cin,Cout)
        w = 0.02 * jax.random.normal(next(keys), (cout, cin, kh, kw), jnp.float32)
        return jnp.transpose(w, (2, 3, 1, 0))

    def deconv_w(cin, cout, kh, kw):
        # PyTorch ConvTranspose2d layout (Cin,Cout,Kh,Kw)
        return 0.02 * jax.random.normal(next(keys), (cin, cout, kh, kw), jnp.float32)

    def res_params():
        return {"w1": conv_w(d, d, 3, 3), "b1": jnp.zeros((d,), jnp.float32),
                "w2": conv_w(d, d, 1, 1), "b2": jnp.zeros((d,), jnp.float32)}

    zeros = lambda n: jnp.zeros((n,), jnp.float32)
    ones = lambda n: jnp.ones((n,), jnp.float32)

    return {
        "enc_conv1_w": conv_w(d, num_channels, 4, 4), "enc_conv1_b": zeros(d),
        "enc_bn1_g": ones(d), "enc_bn1_b": zeros(d),
        "enc_conv2_w": conv_w(d, d, 4, 4), "enc_conv2_b": zeros(d),
        "enc_bn2_g": ones(d), "enc_bn2_b": zeros(d),
        "enc_res1": res_params(),
        "enc_bn3_g": ones(d), "enc_bn3_b": zeros(d),
        "enc_res2": res_params(),
        # self.encoder[-1].weight.detach().fill_(1/40)  (last BN gamma)
        "enc_bn4_g": jnp.full((d,), 1.0 / 40.0, jnp.float32), "enc_bn4_b": zeros(d),
        # codebook kept for structural fidelity; its outputs are dead in forward()
        "emb_w": 0.02 * jax.random.normal(next(keys), (d, k), jnp.float32),
        "dec_res1": res_params(),
        "dec_bn1_g": ones(d), "dec_bn1_b": zeros(d),
        "dec_res2": res_params(),
        "dec_deconv1_w": deconv_w(d, d, 4, 4), "dec_deconv1_b": zeros(d),
        "dec_bn2_g": ones(d), "dec_bn2_b": zeros(d),
        "dec_deconv2_w": deconv_w(d, num_channels, 4, 4),
        "dec_deconv2_b": zeros(num_channels),
        "lbn_g": ones(num_channels), "lbn_b": zeros(num_channels),
    }


# ---------------------------------------------------------------------------
# Full forward pass (matches CVAE_imagenet.forward: xi = L_bn(tanh(decoder(encoder(x)))))
# ---------------------------------------------------------------------------
@jax.jit
def cvae_imagenet_forward(params, x_nchw):
    p = params
    x = jnp.transpose(x_nchw, (0, 2, 3, 1))  # NCHW -> NHWC

    # ---- encoder ----
    h = conv2d_pallas(x, p["enc_conv1_w"], p["enc_conv1_b"], stride=2, pad=1)
    h = batchnorm_pallas(h, p["enc_bn1_g"], p["enc_bn1_b"], post_leaky=True)
    h = conv2d_pallas(h, p["enc_conv2_w"], p["enc_conv2_b"], stride=2, pad=1)
    h = batchnorm_pallas(h, p["enc_bn2_g"], p["enc_bn2_b"], post_leaky=True)
    h = resblock(h, p["enc_res1"])
    h = batchnorm_pallas(h, p["enc_bn3_g"], p["enc_bn3_b"])
    h = resblock(h, p["enc_res2"])
    z_e = batchnorm_pallas(h, p["enc_bn4_g"], p["enc_bn4_b"])

    # NearestEmbed outputs (z_q, emb) do not contribute to the returned xi in the
    # reference forward(); they are dropped explicitly to avoid dead compute.

    # ---- decoder ----
    h = resblock(z_e, p["dec_res1"])
    h = batchnorm_pallas(h, p["dec_bn1_g"], p["dec_bn1_b"])
    h = resblock(h, p["dec_res2"])
    h = conv_transpose2d_pallas(h, p["dec_deconv1_w"], p["dec_deconv1_b"])
    h = batchnorm_pallas(h, p["dec_bn2_g"], p["dec_bn2_b"], post_leaky=True)
    l = conv_transpose2d_pallas(h, p["dec_deconv2_w"], p["dec_deconv2_b"])

    # xi = L_bn(tanh(decoder(z_e)))  — tanh fused as pre-op of the BN kernel
    xi = batchnorm_pallas(l, p["lbn_g"], p["lbn_b"], pre_tanh=True)
    return jnp.transpose(xi, (0, 3, 1, 2))  # NHWC -> NCHW


if __name__ == "__main__":
    d, k, num_channels = 32, 10, 3
    key = jax.random.PRNGKey(0)
    pkey, xkey = jax.random.split(key)
    params = init_params(pkey, d=d, k=k, num_channels=num_channels)
    x = jax.random.normal(xkey, (2, num_channels, 16, 16), jnp.float32)  # NCHW like PyTorch

    xi = cvae_imagenet_forward(params, x)
    xi = jax.block_until_ready(xi)
    assert xi.shape == (2, num_channels, 16, 16)
    assert bool(jnp.all(jnp.isfinite(xi)))
    print("KERNEL_OK")
</pallas_src>

<mosaic_0001>
module attributes {stable_mosaic.version = 11 : i64} {
  func.func @kernel(%arg0: i32, %arg1: memref<128x48xbf16, #tpu.memory_space<vmem>>, %arg2: memref<48x32xbf16, #tpu.memory_space<vmem>>, %arg3: memref<1x32xf32, #tpu.memory_space<vmem>>, %arg4: memref<128x32xf32, #tpu.memory_space<vmem>>) attributes {dimension_semantics = [#tpu.dimension_semantics<parallel>], iteration_bounds = array<i64: 1>, scalar_prefetch = 0 : i64, scratch_operands = 0 : i64, tpu.core_type = #tpu.core_type<tc>, window_params = [{transform_indices = @transform_0, window_bounds = array<i64: 128, 48>}, {pipeline_mode = #tpu.pipeline_mode<synchronous>, transform_indices = @transform_1, window_bounds = array<i64: 48, 32>}, {pipeline_mode = #tpu.pipeline_mode<synchronous>, transform_indices = @transform_2, window_bounds = array<i64: 1, 32>}, {transform_indices = @transform_3, window_bounds = array<i64: 128, 32>}]} {
    %c0 = arith.constant 0 : index
    %c0_0 = arith.constant 0 : index
    %0 = vector.load %arg1[%c0, %c0_0] : memref<128x48xbf16, #tpu.memory_space<vmem>>, vector<128x48xbf16>
    %c0_1 = arith.constant 0 : index
    %c0_2 = arith.constant 0 : index
    %1 = vector.load %arg2[%c0_1, %c0_2] : memref<48x32xbf16, #tpu.memory_space<vmem>>, vector<48x32xbf16>
    %cst = arith.constant dense<0.000000e+00> : vector<128x32xf32>
    %2 = tpu.matmul %0, %1, %cst {dimension_numbers = #tpu.dot_dimension_numbers<[1], [0], [0], [1], [0, 0, 1, 1], [], []>} : vector<128x48xbf16>, vector<48x32xbf16>, vector<128x32xf32> -> vector<128x32xf32>
    %c0_3 = arith.constant 0 : index
    %c0_4 = arith.constant 0 : index
    %3 = vector.load %arg3[%c0_3, %c0_4] : memref<1x32xf32, #tpu.memory_space<vmem>>, vector<1x32xf32>
    %4 = vector.broadcast %3 : vector<1x32xf32> to vector<128x32xf32>
    %5 = arith.addf %2, %4 : vector<128x32xf32>
    %c0_5 = arith.constant 0 : index
    %c0_6 = arith.constant 0 : index
    %6 = vector.load %arg4[%c0_5, %c0_6] : memref<128x32xf32, #tpu.memory_space<vmem>>, vector<128x32xf32>
    tpu.vector_store %arg4[%c0_5, %c0_6], %5 {strides = array<i32>} : memref<128x32xf32, #tpu.memory_space<vmem>>, vector<128x32xf32>,
    return
  }
  func.func @transform_0(%arg0: i32) -> (i32, i32) {
    %c0_i32 = arith.constant 0 : i32
    %c0_i32_0 = arith.constant 0 : i32
    return %arg0, %c0_i32 : i32, i32
  }
  func.func @transform_1(%arg0: i32) -> (i32, i32) {
    %c0_i32 = arith.constant 0 : i32
    %c0_i32_0 = arith.constant 0 : i32
    %c0_i32_1 = arith.constant 0 : i32
    return %c0_i32, %c0_i32_0 : i32, i32
  }
  func.func @transform_2(%arg0: i32) -> (i32, i32) {
    %c0_i32 = arith.constant 0 : i32
    %c0_i32_0 = arith.constant 0 : i32
    %c0_i32_1 = arith.constant 0 : i32
    return %c0_i32, %c0_i32_0 : i32, i32
  }
  func.func @transform_3(%arg0: i32) -> (i32, i32) {
    %c0_i32 = arith.constant 0 : i32
    %c0_i32_0 = arith.constant 0 : i32
    return %arg0, %c0_i32 : i32, i32
  }
}

module attributes {stable_mosaic.version = 11 : i64} {
  func.func @kernel(%arg0: i32, %arg1: memref<128x32xf32, #tpu.memory_space<vmem>>, %arg2: memref<1x32xf32, #tpu.memory_space<vmem>>, %arg3: memref<1x32xf32, #tpu.memory_space<vmem>>, %arg4: memref<128x32xf32, #tpu.memory_space<vmem>>) attributes {dimension_semantics = [#tpu.dimension_semantics<arbitrary>], iteration_bounds = array<i64: 1>, scalar_prefetch = 0 : i64, scratch_operands = 0 : i64, tpu.core_type = #tpu.core_type<tc>, window_params = [{pipeline_mode = #tpu.pipeline_mode<synchronous>, transform_indices = @transform_0, window_bounds = array<i64: 128, 32>}, {pipeline_mode = #tpu.pipeline_mode<synchronous>, transform_indices = @transform_1, window_bounds = array<i64: 1, 32>}, {pipeline_mode = #tpu.pipeline_mode<synchronous>, transform_indices = @transform_2, window_bounds = array<i64: 1, 32>}, {pipeline_mode = #tpu.pipeline_mode<synchronous>, transform_indices = @transform_3, window_bounds = array<i64: 128, 32>}]} {
    %c0 = arith.constant 0 : index
    %c0_0 = arith.constant 0 : index
    %0 = vector.load %arg1[%c0, %c0_0] : memref<128x32xf32, #tpu.memory_space<vmem>>, vector<128x32xf32>
    %cst = arith.constant dense<0.000000e+00> : vector<32xf32>
    %1 = vector.multi_reduction <add>, %0, %cst [0] : vector<128x32xf32> to vector<32xf32>
    %2 = vector.shape_cast %1 : vector<32xf32> to vector<1x32xf32>
    %cst_1 = arith.constant 1.280000e+02 : f32
    %3 = vector.broadcast %cst_1 : f32 to vector<1x32xf32>
    %4 = arith.divf %2, %3 : vector<1x32xf32>
    %5 = vector.broadcast %4 : vector<1x32xf32> to vector<128x32xf32>
    %6 = arith.subf %0, %5 : vector<128x32xf32>
    %7 = arith.mulf %6, %6 : vector<128x32xf32>
    %cst_2 = arith.constant dense<0.000000e+00> : vector<32xf32>
    %8 = vector.multi_reduction <add>, %7, %cst_2 [0] : vector<128x32xf32> to vector<32xf32>
    %9 = vector.shape_cast %8 : vector<32xf32> to vector<1x32xf32>
    %cst_3 = arith.constant 1.280000e+02 : f32
    %10 = vector.broadcast %cst_3 : f32 to vector<1x32xf32>
    %11 = arith.divf %9, %10 : vector<1x32xf32>
    %12 = vector.broadcast %4 : vector<1x32xf32> to vector<128x32xf32>
    %13 = arith.subf %0, %12 : vector<128x32xf32>
    %cst_4 = arith.constant 9.99999974E-6 : f32
    %14 = vector.broadcast %cst_4 : f32 to vector<1x32xf32>
    %15 = arith.addf %11, %14 : vector<1x32xf32>
    %16 = math.rsqrt %15 : vector<1x32xf32>
    %17 = vector.broadcast %16 : vector<1x32xf32> to vector<128x32xf32>
    %18 = arith.mulf %13, %17 : vector<128x32xf32>
    %c0_5 = arith.constant 0 : index
    %c0_6 = arith.constant 0 : index
    %19 = vector.load %arg2[%c0_5, %c0_6] : memref<1x32xf32, #tpu.memory_space<vmem>>, vector<1x32xf32>
    %20 = vector.broadcast %19 : vector<1x32xf32> to vector<128x32xf32>
    %21 = arith.mulf %18, %20 : vector<128x32xf32>
    %c0_7 = arith.constant 0 : index
    %c0_8 = arith.constant 0 : index
    %22 = vector.load %arg3[%c0_7, %c0_8] : memref<1x32xf32, #tpu.memory_space<vmem>>, vector<1x32xf32>
    %23 = vector.broadcast %22 : vector<1x32xf32> to vector<128x32xf32>
    %24 = arith.addf %21, %23 : vector<128x32xf32>
    %cst_9 = arith.constant 0.000000e+00 : f32
    %25 = vector.broadcast %cst_9 : f32 to vector<128x32xf32>
    %26 = arith.cmpf oge, %24, %25 : vector<128x32xf32>
    %cst_10 = arith.constant 0.00999999977 : f32
    %27 = vector.broadcast %cst_10 : f32 to vector<128x32xf32>
    %28 = arith.mulf %27, %24 : vector<128x32xf32>
    %29 = arith.select %26, %24, %28 : vector<128x32xi1>, vector<128x32xf32>
    %c0_11 = arith.constant 0 : index
    %c0_12 = arith.constant 0 : index
    %30 = vector.load %arg4[%c0_11, %c0_12] : memref<128x32xf32, #tpu.memory_space<vmem>>, vector<128x32xf32>
    tpu.vector_store %arg4[%c0_11, %c0_12], %29 {strides = array<i32>} : memref<128x32xf32, #tpu.memory_space<vmem>>, vector<128x32xf32>,
    return
  }
  func.func @transform_0(%arg0: i32) -> (i32, i32) {
    %c0_i32 = arith.constant 0 : i32
    %c0_i32_0 = arith.constant 0 : i32
    %c0_i32_1 = arith.constant 0 : i32
    return %c0_i32, %c0_i32_0 : i32, i32
  }
  func.func @transform_1(%arg0: i32) -> (i32, i32) {
    %c0_i32 = arith.constant 0 : i32
    %c0_i32_0 = arith.constant 0 : i32
    %c0_i32_1 = arith.constant 0 : i32
    return %c0_i32, %c0_i32_0 : i32, i32
  }
  func.func @transform_2(%arg0: i32) -> (i32, i32) {
    %c0_i32 = arith.constant 0 : i32
    %c0_i32_0 = arith.constant 0 : i32
    %c0_i32_1 = arith.constant 0 : i32
    return %c0_i32, %c0_i32_0 : i32, i32
  }
  func.func @transform_3(%arg0: i32) -> (i32, i32) {
    %c0_i32 = arith.constant 0 : i32
    %c0_i32_0 = arith.constant 0 : i32
    %c0_i32_1 = arith.constant 0 : i32
    return %c0_i32, %c0_i32_0 : i32, i32
  }
}

module attributes {stable_mosaic.version = 11 : i64} {
  func.func @kernel(%arg0: i32, %arg1: memref<32x512xbf16, #tpu.memory_space<vmem>>, %arg2: memref<512x32xbf16, #tpu.memory_space<vmem>>, %arg3: memref<1x32xf32, #tpu.memory_space<vmem>>, %arg4: memref<32x32xf32, #tpu.memory_space<vmem>>) attributes {dimension_semantics = [#tpu.dimension_semantics<parallel>], iteration_bounds = array<i64: 1>, scalar_prefetch = 0 : i64, scratch_operands = 0 : i64, tpu.core_type = #tpu.core_type<tc>, window_params = [{transform_indices = @transform_0, window_bounds = array<i64: 32, 512>}, {pipeline_mode = #tpu.pipeline_mode<synchronous>, transform_indices = @transform_1, window_bounds = array<i64: 512, 32>}, {pipeline_mode = #tpu.pipeline_mode<synchronous>, transform_indices = @transform_2, window_bounds = array<i64: 1, 32>}, {transform_indices = @transform_3, window_bounds = array<i64: 32, 32>}]} {
    %c0 = arith.constant 0 : index
    %c0_0 = arith.constant 0 : index
    %0 = vector.load %arg1[%c0, %c0_0] : memref<32x512xbf16, #tpu.memory_space<vmem>>, vector<32x512xbf16>
    %c0_1 = arith.constant 0 : index
    %c0_2 = arith.constant 0 : index
    %1 = vector.load %arg2[%c0_1, %c0_2] : memref<512x32xbf16, #tpu.memory_space<vmem>>, vector<512x32xbf16>
    %cst = arith.constant dense<0.000000e+00> : vector<32x32xf32>
    %2 = tpu.matmul %0, %1, %cst {dimension_numbers = #tpu.dot_dimension_numbers<[1], [0], [0], [1], [0, 0, 1, 1], [], []>} : vector<32x512xbf16>, vector<512x32xbf16>, vector<32x32xf32> -> vector<32x32xf32>
    %c0_3 = arith.constant 0 : index
    %c0_4 = arith.constant 0 : index
    %3 = vector.load %arg3[%c0_3, %c0_4] : memref<1x32xf32, #tpu.memory_space<vmem>>, vector<1x32xf32>
    %4 = vector.broadcast %3 : vector<1x32xf32> to vector<32x32xf32>
    %5 = arith.addf %2, %4 : vector<32x32xf32>
    %c0_5 = arith.constant 0 : index
    %c0_6 = arith.constant 0 : index
    %6 = vector.load %arg4[%c0_5, %c0_6] : memref<32x32xf32, #tpu.memory_space<vmem>>, vector<32x32xf32>
    tpu.vector_store %arg4[%c0_5, %c0_6], %5 {strides = array<i32>} : memref<32x32xf32, #tpu.memory_space<vmem>>, vector<32x32xf32>,
    return
  }
  func.func @transform_0(%arg0: i32) -> (i32, i32) {
    %c0_i32 = arith.constant 0 : i32
    %c0_i32_0 = arith.constant 0 : i32
    return %arg0, %c0_i32 : i32, i32
  }
  func.func @transform_1(%arg0: i32) -> (i32, i32) {
    %c0_i32 = arith.constant 0 : i32
    %c0_i32_0 = arith.constant 0 : i32
    %c0_i32_1 = arith.constant 0 : i32
    return %c0_i32, %c0_i32_0 : i32, i32
  }
  func.func @transform_2(%arg0: i32) -> (i32, i32) {
    %c0_i32 = arith.constant 0 : i32
    %c0_i32_0 = arith.constant 0 : i32
    %c0_i32_1 = arith.constant 0 : i32
    return %c0_i32, %c0_i32_0 : i32, i32
  }
  func.func @transform_3(%arg0: i32) -> (i32, i32) {
    %c0_i32 = arith.constant 0 : i32
    %c0_i32_0 = arith.constant 0 : i32
    return %arg0, %c0_i32 : i32, i32
  }
}

module attributes {stable_mosaic.version = 11 : i64} {
  func.func @kernel(%arg0: i32, %arg1: memref<32x32xf32, #tpu.memory_space<vmem>>, %arg2: memref<1x32xf32, #tpu.memory_space<vmem>>, %arg3: memref<1x32xf32, #tpu.memory_space<vmem>>, %arg4: memref<32x32xf32, #tpu.memory_space<vmem>>) attributes {dimension_semantics = [#tpu.dimension_semantics<arbitrary>], iteration_bounds = array<i64: 1>, scalar_prefetch = 0 : i64, scratch_operands = 0 : i64, tpu.core_type = #tpu.core_type<tc>, window_params = [{pipeline_mode = #tpu.pipeline_mode<synchronous>, transform_indices = @transform_0, window_bounds = array<i64: 32, 32>}, {pipeline_mode = #tpu.pipeline_mode<synchronous>, transform_indices = @transform_1, window_bounds = array<i64: 1, 32>}, {pipeline_mode = #tpu.pipeline_mode<synchronous>, transform_indices = @transform_2, window_bounds = array<i64: 1, 32>}, {pipeline_mode = #tpu.pipeline_mode<synchronous>, transform_indices = @transform_3, window_bounds = array<i64: 32, 32>}]} {
    %c0 = arith.constant 0 : index
    %c0_0 = arith.constant 0 : index
    %0 = vector.load %arg1[%c0, %c0_0] : memref<32x32xf32, #tpu.memory_space<vmem>>, vector<32x32xf32>
    %cst = arith.constant dense<0.000000e+00> : vector<32xf32>
    %1 = vector.multi_reduction <add>, %0, %cst [0] : vector<32x32xf32> to vector<32xf32>
    %2 = vector.shape_cast %1 : vector<32xf32> to vector<1x32xf32>
    %cst_1 = arith.constant 3.200000e+01 : f32
    %3 = vector.broadcast %cst_1 : f32 to vector<1x32xf32>
    %4 = arith.divf %2, %3 : vector<1x32xf32>
    %5 = vector.broadcast %4 : vector<1x32xf32> to vector<32x32xf32>
    %6 = arith.subf %0, %5 : vector<32x32xf32>
    %7 = arith.mulf %6, %6 : vector<32x32xf32>
    %cst_2 = arith.constant dense<0.000000e+00> : vector<32xf32>
    %8 = vector.multi_reduction <add>, %7, %cst_2 [0] : vector<32x32xf32> to vector<32xf32>
    %9 = vector.shape_cast %8 : vector<32xf32> to vector<1x32xf32>
    %cst_3 = arith.constant 3.200000e+01 : f32
    %10 = vector.broadcast %cst_3 : f32 to vector<1x32xf32>
    %11 = arith.divf %9, %10 : vector<1x32xf32>
    %12 = vector.broadcast %4 : vector<1x32xf32> to vector<32x32xf32>
    %13 = arith.subf %0, %12 : vector<32x32xf32>
    %cst_4 = arith.constant 9.99999974E-6 : f32
    %14 = vector.broadcast %cst_4 : f32 to vector<1x32xf32>
    %15 = arith.addf %11, %14 : vector<1x32xf32>
    %16 = math.rsqrt %15 : vector<1x32xf32>
    %17 = vector.broadcast %16 : vector<1x32xf32> to vector<32x32xf32>
    %18 = arith.mulf %13, %17 : vector<32x32xf32>
    %c0_5 = arith.constant 0 : index
    %c0_6 = arith.constant 0 : index
    %19 = vector.load %arg2[%c0_5, %c0_6] : memref<1x32xf32, #tpu.memory_space<vmem>>, vector<1x32xf32>
    %20 = vector.broadcast %19 : vector<1x32xf32> to vector<32x32xf32>
    %21 = arith.mulf %18, %20 : vector<32x32xf32>
    %c0_7 = arith.constant 0 : index
    %c0_8 = arith.constant 0 : index
    %22 = vector.load %arg3[%c0_7, %c0_8] : memref<1x32xf32, #tpu.memory_space<vmem>>, vector<1x32xf32>
    %23 = vector.broadcast %22 : vector<1x32xf32> to vector<32x32xf32>
    %24 = arith.addf %21, %23 : vector<32x32xf32>
    %cst_9 = arith.constant 0.000000e+00 : f32
    %25 = vector.broadcast %cst_9 : f32 to vector<32x32xf32>
    %26 = arith.cmpf oge, %24, %25 : vector<32x32xf32>
    %cst_10 = arith.constant 0.00999999977 : f32
    %27 = vector.broadcast %cst_10 : f32 to vector<32x32xf32>
    %28 = arith.mulf %27, %24 : vector<32x32xf32>
    %29 = arith.select %26, %24, %28 : vector<32x32xi1>, vector<32x32xf32>
    %c0_11 = arith.constant 0 : index
    %c0_12 = arith.constant 0 : index
    %30 = vector.load %arg4[%c0_11, %c0_12] : memref<32x32xf32, #tpu.memory_space<vmem>>, vector<32x32xf32>
    tpu.vector_store %arg4[%c0_11, %c0_12], %29 {strides = array<i32>} : memref<32x32xf32, #tpu.memory_space<vmem>>, vector<32x32xf32>,
    return
  }
  func.func @transform_0(%arg0: i32) -> (i32, i32) {
    %c0_i32 = arith.constant 0 : i32
    %c0_i32_0 = arith.constant 0 : i32
    %c0_i32_1 = arith.constant 0 : i32
    return %c0_i32, %c0_i32_0 : i32, i32
  }
  func.func @transform_1(%arg0: i32) -> (i32, i32) {
    %c0_i32 = arith.constant 0 : i32
    %c0_i32_0 = arith.constant 0 : i32
    %c0_i32_1 = arith.constant 0 : i32
    return %c0_i32, %c0_i32_0 : i32, i32
  }
  func.func @transform_2(%arg0: i32) -> (i32, i32) {
    %c0_i32 = arith.constant 0 : i32
    %c0_i32_0 = arith.constant 0 : i32
    %c0_i32_1 = arith.constant 0 : i32
    return %c0_i32, %c0_i32_0 : i32, i32
  }
  func.func @transform_3(%arg0: i32) -> (i32, i32) {
    %c0_i32 = arith.constant 0 : i32
    %c0_i32_0 = arith.constant 0 : i32
    %c0_i32_1 = arith.constant 0 : i32
    return %c0_i32, %c0_i32_0 : i32, i32
  }
}

module attributes {stable_mosaic.version = 11 : i64} {
  func.func @kernel(%arg0: i32, %arg1: memref<32x32xf32, #tpu.memory_space<vmem>>, %arg2: memref<1x32xf32, #tpu.memory_space<vmem>>, %arg3: memref<1x32xf32, #tpu.memory_space<vmem>>, %arg4: memref<32x32xf32, #tpu.memory_space<vmem>>) attributes {dimension_semantics = [#tpu.dimension_semantics<arbitrary>], iteration_bounds = array<i64: 1>, scalar_prefetch = 0 : i64, scratch_operands = 0 : i64, tpu.core_type = #tpu.core_type<tc>, window_params = [{pipeline_mode = #tpu.pipeline_mode<synchronous>, transform_indices = @transform_0, window_bounds = array<i64: 32, 32>}, {pipeline_mode = #tpu.pipeline_mode<synchronous>, transform_indices = @transform_1, window_bounds = array<i64: 1, 32>}, {pipeline_mode = #tpu.pipeline_mode<synchronous>, transform_indices = @transform_2, window_bounds = array<i64: 1, 32>}, {pipeline_mode = #tpu.pipeline_mode<synchronous>, transform_indices = @transform_3, window_bounds = array<i64: 32, 32>}]} {
    %c0 = arith.constant 0 : index
    %c0_0 = arith.constant 0 : index
    %0 = vector.load %arg1[%c0, %c0_0] : memref<32x32xf32, #tpu.memory_space<vmem>>, vector<32x32xf32>
    %cst = arith.constant dense<0.000000e+00> : vector<32xf32>
    %1 = vector.multi_reduction <add>, %0, %cst [0] : vector<32x32xf32> to vector<32xf32>
    %2 = vector.shape_cast %1 : vector<32xf32> to vector<1x32xf32>
    %cst_1 = arith.constant 3.200000e+01 : f32
    %3 = vector.broadcast %cst_1 : f32 to vector<1x32xf32>
    %4 = arith.divf %2, %3 : vector<1x32xf32>
    %5 = vector.broadcast %4 : vector<1x32xf32> to vector<32x32xf32>
    %6 = arith.subf %0, %5 : vector<32x32xf32>
    %7 = arith.mulf %6, %6 : vector<32x32xf32>
    %cst_2 = arith.constant dense<0.000000e+00> : vector<32xf32>
    %8 = vector.multi_reduction <add>, %7, %cst_2 [0] : vector<32x32xf32> to vector<32xf32>
    %9 = vector.shape_cast %8 : vector<32xf32> to vector<1x32xf32>
    %cst_3 = arith.constant 3.200000e+01 : f32
    %10 = vector.broadcast %cst_3 : f32 to vector<1x32xf32>
    %11 = arith.divf %9, %10 : vector<1x32xf32>
    %12 = vector.broadcast %4 : vector<1x32xf32> to vector<32x32xf32>
    %13 = arith.subf %0, %12 : vector<32x32xf32>
    %cst_4 = arith.constant 9.99999974E-6 : f32
    %14 = vector.broadcast %cst_4 : f32 to vector<1x32xf32>
    %15 = arith.addf %11, %14 : vector<1x32xf32>
    %16 = math.rsqrt %15 : vector<1x32xf32>
    %17 = vector.broadcast %16 : vector<1x32xf32> to vector<32x32xf32>
    %18 = arith.mulf %13, %17 : vector<32x32xf32>
    %c0_5 = arith.constant 0 : index
    %c0_6 = arith.constant 0 : index
    %19 = vector.load %arg2[%c0_5, %c0_6] : memref<1x32xf32, #tpu.memory_space<vmem>>, vector<1x32xf32>
    %20 = vector.broadcast %19 : vector<1x32xf32> to vector<32x32xf32>
    %21 = arith.mulf %18, %20 : vector<32x32xf32>
    %c0_7 = arith.constant 0 : index
    %c0_8 = arith.constant 0 : index
    %22 = vector.load %arg3[%c0_7, %c0_8] : memref<1x32xf32, #tpu.memory_space<vmem>>, vector<1x32xf32>
    %23 = vector.broadcast %22 : vector<1x32xf32> to vector<32x32xf32>
    %24 = arith.addf %21, %23 : vector<32x32xf32>
    %c0_9 = arith.constant 0 : index
    %c0_10 = arith.constant 0 : index
    %25 = vector.load %arg4[%c0_9, %c0_10] : memref<32x32xf32, #tpu.memory_space<vmem>>, vector<32x32xf32>
    tpu.vector_store %arg4[%c0_9, %c0_10], %24 {strides = array<i32>} : memref<32x32xf32, #tpu.memory_space<vmem>>, vector<32x32xf32>,
    return
  }
  func.func @transform_0(%arg0: i32) -> (i32, i32) {
    %c0_i32 = arith.constant 0 : i32
    %c0_i32_0 = arith.constant 0 : i32
    %c0_i32_1 = arith.constant 0 : i32
    return %c0_i32, %c0_i32_0 : i32, i32
  }
  func.func @transform_1(%arg0: i32) -> (i32, i32) {
    %c0_i32 = arith.constant 0 : i32
    %c0_i32_0 = arith.constant 0 : i32
    %c0_i32_1 = arith.constant 0 : i32
    return %c0_i32, %c0_i32_0 : i32, i32
  }
  func.func @transform_2(%arg0: i32) -> (i32, i32) {
    %c0_i32 = arith.constant 0 : i32
    %c0_i32_0 = arith.constant 0 : i32
    %c0_i32_1 = arith.constant 0 : i32
    return %c0_i32, %c0_i32_0 : i32, i32
  }
  func.func @transform_3(%arg0: i32) -> (i32, i32) {
    %c0_i32 = arith.constant 0 : i32
    %c0_i32_0 = arith.constant 0 : i32
    %c0_i32_1 = arith.constant 0 : i32
    return %c0_i32, %c0_i32_0 : i32, i32
  }
}

module attributes {stable_mosaic.version = 11 : i64} {
  func.func @kernel(%arg0: i32, %arg1: memref<32x32xbf16, #tpu.memory_space<vmem>>, %arg2: memref<32x32xbf16, #tpu.memory_space<vmem>>, %arg3: memref<1x32xf32, #tpu.memory_space<vmem>>, %arg4: memref<32x32xf32, #tpu.memory_space<vmem>>, %arg5: memref<32x32xf32, #tpu.memory_space<vmem>>) attributes {dimension_semantics = [#tpu.dimension_semantics<parallel>], iteration_bounds = array<i64: 1>, scalar_prefetch = 0 : i64, scratch_operands = 0 : i64, tpu.core_type = #tpu.core_type<tc>, window_params = [{transform_indices = @transform_0, window_bounds = array<i64: 32, 32>}, {pipeline_mode = #tpu.pipeline_mode<synchronous>, transform_indices = @transform_1, window_bounds = array<i64: 32, 32>}, {pipeline_mode = #tpu.pipeline_mode<synchronous>, transform_indices = @transform_2, window_bounds = array<i64: 1, 32>}, {transform_indices = @transform_3, window_bounds = array<i64: 32, 32>}, {transform_indices = @transform_4, window_bounds = array<i64: 32, 32>}]} {
    %c0 = arith.constant 0 : index
    %c0_0 = arith.constant 0 : index
    %0 = vector.load %arg1[%c0, %c0_0] : memref<32x32xbf16, #tpu.memory_space<vmem>>, vector<32x32xbf16>
    %c0_1 = arith.constant 0 : index
    %c0_2 = arith.constant 0 : index
    %1 = vector.load %arg2[%c0_1, %c0_2] : memref<32x32xbf16, #tpu.memory_space<vmem>>, vector<32x32xbf16>
    %cst = arith.constant dense<0.000000e+00> : vector<32x32xf32>
    %2 = tpu.matmul %0, %1, %cst {dimension_numbers = #tpu.dot_dimension_numbers<[1], [0], [0], [1], [0, 0, 1, 1], [], []>} : vector<32x32xbf16>, vector<32x32xbf16>, vector<32x32xf32> -> vector<32x32xf32>
    %c0_3 = arith.constant 0 : index
    %c0_4 = arith.constant 0 : index
    %3 = vector.load %arg3[%c0_3, %c0_4] : memref<1x32xf32, #tpu.memory_space<vmem>>, vector<1x32xf32>
    %4 = vector.broadcast %3 : vector<1x32xf32> to vector<32x32xf32>
    %5 = arith.addf %2, %4 : vector<32x32xf32>
    %c0_5 = arith.constant 0 : index
    %c0_6 = arith.constant 0 : index
    %6 = vector.load %arg4[%c0_5, %c0_6] : memref<32x32xf32, #tpu.memory_space<vmem>>, vector<32x32xf32>
    %7 = arith.addf %5, %6 : vector<32x32xf32>
    %c0_7 = arith.constant 0 : index
    %c0_8 = arith.constant 0 : index
    %8 = vector.load %arg5[%c0_7, %c0_8] : memref<32x32xf32, #tpu.memory_space<vmem>>, vector<32x32xf32>
    tpu.vector_store %arg5[%c0_7, %c0_8], %7 {strides = array<i32>} : memref<32x32xf32, #tpu.memory_space<vmem>>, vector<32x32xf32>,
    return
  }
  func.func @transform_0(%arg0: i32) -> (i32, i32) {
    %c0_i32 = arith.constant 0 : i32
    %c0_i32_0 = arith.constant 0 : i32
    return %arg0, %c0_i32 : i32, i32
  }
  func.func @transform_1(%arg0: i32) -> (i32, i32) {
    %c0_i32 = arith.constant 0 : i32
    %c0_i32_0 = arith.constant 0 : i32
    %c0_i32_1 = arith.constant 0 : i32
    return %c0_i32, %c0_i32_0 : i32, i32
  }
  func.func @transform_2(%arg0: i32) -> (i32, i32) {
    %c0_i32 = arith.constant 0 : i32
    %c0_i32_0 = arith.constant 0 : i32
    %c0_i32_1 = arith.constant 0 : i32
    return %c0_i32, %c0_i32_0 : i32, i32
  }
  func.func @transform_3(%arg0: i32) -> (i32, i32) {
    %c0_i32 = arith.constant 0 : i32
    %c0_i32_0 = arith.constant 0 : i32
    return %arg0, %c0_i32 : i32, i32
  }
  func.func @transform_4(%arg0: i32) -> (i32, i32) {
    %c0_i32 = arith.constant 0 : i32
    %c0_i32_0 = arith.constant 0 : i32
    return %arg0, %c0_i32 : i32, i32
  }
}

module attributes {stable_mosaic.version = 11 : i64} {
  func.func @kernel(%arg0: i32, %arg1: memref<32x288xbf16, #tpu.memory_space<vmem>>, %arg2: memref<288x32xbf16, #tpu.memory_space<vmem>>, %arg3: memref<1x32xf32, #tpu.memory_space<vmem>>, %arg4: memref<32x32xf32, #tpu.memory_space<vmem>>) attributes {dimension_semantics = [#tpu.dimension_semantics<parallel>], iteration_bounds = array<i64: 1>, scalar_prefetch = 0 : i64, scratch_operands = 0 : i64, tpu.core_type = #tpu.core_type<tc>, window_params = [{transform_indices = @transform_0, window_bounds = array<i64: 32, 288>}, {pipeline_mode = #tpu.pipeline_mode<synchronous>, transform_indices = @transform_1, window_bounds = array<i64: 288, 32>}, {pipeline_mode = #tpu.pipeline_mode<synchronous>, transform_indices = @transform_2, window_bounds = array<i64: 1, 32>}, {transform_indices = @transform_3, window_bounds = array<i64: 32, 32>}]} {
    %c0 = arith.constant 0 : index
    %c0_0 = arith.constant 0 : index
    %0 = vector.load %arg1[%c0, %c0_0] : memref<32x288xbf16, #tpu.memory_space<vmem>>, vector<32x288xbf16>
    %c0_1 = arith.constant 0 : index
    %c0_2 = arith.constant 0 : index
    %1 = vector.load %arg2[%c0_1, %c0_2] : memref<288x32xbf16, #tpu.memory_space<vmem>>, vector<288x32xbf16>
    %cst = arith.constant dense<0.000000e+00> : vector<32x32xf32>
    %2 = tpu.matmul %0, %1, %cst {dimension_numbers = #tpu.dot_dimension_numbers<[1], [0], [0], [1], [0, 0, 1, 1], [], []>} : vector<32x288xbf16>, vector<288x32xbf16>, vector<32x32xf32> -> vector<32x32xf32>
    %c0_3 = arith.constant 0 : index
    %c0_4 = arith.constant 0 : index
    %3 = vector.load %arg3[%c0_3, %c0_4] : memref<1x32xf32, #tpu.memory_space<vmem>>, vector<1x32xf32>
    %4 = vector.broadcast %3 : vector<1x32xf32> to vector<32x32xf32>
    %5 = arith.addf %2, %4 : vector<32x32xf32>
    %cst_5 = arith.constant 0.000000e+00 : f32
    %6 = vector.broadcast %cst_5 : f32 to vector<32x32xf32>
    %7 = arith.cmpf oge, %5, %6 : vector<32x32xf32>
    %cst_6 = arith.constant 0.00999999977 : f32
    %8 = vector.broadcast %cst_6 : f32 to vector<32x32xf32>
    %9 = arith.mulf %8, %5 : vector<32x32xf32>
    %10 = arith.select %7, %5, %9 : vector<32x32xi1>, vector<32x32xf32>
    %c0_7 = arith.constant 0 : index
    %c0_8 = arith.constant 0 : index
    %11 = vector.load %arg4[%c0_7, %c0_8] : memref<32x32xf32, #tpu.memory_space<vmem>>, vector<32x32xf32>
    tpu.vector_store %arg4[%c0_7, %c0_8], %10 {strides = array<i32>} : memref<32x32xf32, #tpu.memory_space<vmem>>, vector<32x32xf32>,
    return
  }
  func.func @transform_0(%arg0: i32) -> (i32, i32) {
    %c0_i32 = arith.constant 0 : i32
    %c0_i32_0 = arith.constant 0 : i32
    return %arg0, %c0_i32 : i32, i32
  }
  func.func @transform_1(%arg0: i32) -> (i32, i32) {
    %c0_i32 = arith.constant 0 : i32
    %c0_i32_0 = arith.constant 0 : i32
    %c0_i32_1 = arith.constant 0 : i32
    return %c0_i32, %c0_i32_0 : i32, i32
  }
  func.func @transform_2(%arg0: i32) -> (i32, i32) {
    %c0_i32 = arith.constant 0 : i32
    %c0_i32_0 = arith.constant 0 : i32
    %c0_i32_1 = arith.constant 0 : i32
    return %c0_i32, %c0_i32_0 : i32, i32
  }
  func.func @transform_3(%arg0: i32) -> (i32, i32) {
    %c0_i32 = arith.constant 0 : i32
    %c0_i32_0 = arith.constant 0 : i32
    return %arg0, %c0_i32 : i32, i32
  }
}

module attributes {stable_mosaic.version = 11 : i64} {
  func.func @kernel(%arg0: i32, %arg1: memref<32x288xbf16, #tpu.memory_space<vmem>>, %arg2: memref<288x128xbf16, #tpu.memory_space<vmem>>, %arg3: memref<1x128xf32, #tpu.memory_space<vmem>>, %arg4: memref<32x128xf32, #tpu.memory_space<vmem>>) attributes {dimension_semantics = [#tpu.dimension_semantics<parallel>], iteration_bounds = array<i64: 1>, scalar_prefetch = 0 : i64, scratch_operands = 0 : i64, tpu.core_type = #tpu.core_type<tc>, window_params = [{transform_indices = @transform_0, window_bounds = array<i64: 32, 288>}, {pipeline_mode = #tpu.pipeline_mode<synchronous>, transform_indices = @transform_1, window_bounds = array<i64: 288, 128>}, {pipeline_mode = #tpu.pipeline_mode<synchronous>, transform_indices = @transform_2, window_bounds = array<i64: 1, 128>}, {transform_indices = @transform_3, window_bounds = array<i64: 32, 128>}]} {
    %c0 = arith.constant 0 : index
    %c0_0 = arith.constant 0 : index
    %0 = vector.load %arg1[%c0, %c0_0] : memref<32x288xbf16, #tpu.memory_space<vmem>>, vector<32x288xbf16>
    %c0_1 = arith.constant 0 : index
    %c0_2 = arith.constant 0 : index
    %1 = vector.load %arg2[%c0_1, %c0_2] : memref<288x128xbf16, #tpu.memory_space<vmem>>, vector<288x128xbf16>
    %cst = arith.constant dense<0.000000e+00> : vector<32x128xf32>
    %2 = tpu.matmul %0, %1, %cst {dimension_numbers = #tpu.dot_dimension_numbers<[1], [0], [0], [1], [0, 0, 1, 1], [], []>} : vector<32x288xbf16>, vector<288x128xbf16>, vector<32x128xf32> -> vector<32x128xf32>
    %c0_3 = arith.constant 0 : index
    %c0_4 = arith.constant 0 : index
    %3 = vector.load %arg3[%c0_3, %c0_4] : memref<1x128xf32, #tpu.memory_space<vmem>>, vector<1x128xf32>
    %4 = vector.broadcast %3 : vector<1x128xf32> to vector<32x128xf32>
    %5 = arith.addf %2, %4 : vector<32x128xf32>
    %c0_5 = arith.constant 0 : index
    %c0_6 = arith.constant 0 : index
    %6 = vector.load %arg4[%c0_5, %c0_6] : memref<32x128xf32, #tpu.memory_space<vmem>>, vector<32x128xf32>
    tpu.vector_store %arg4[%c0_5, %c0_6], %5 {strides = array<i32>} : memref<32x128xf32, #tpu.memory_space<vmem>>, vector<32x128xf32>,
    return
  }
  func.func @transform_0(%arg0: i32) -> (i32, i32) {
    %c0_i32 = arith.constant 0 : i32
    %c0_i32_0 = arith.constant 0 : i32
    return %arg0, %c0_i32 : i32, i32
  }
  func.func @transform_1(%arg0: i32) -> (i32, i32) {
    %c0_i32 = arith.constant 0 : i32
    %c0_i32_0 = arith.constant 0 : i32
    %c0_i32_1 = arith.constant 0 : i32
    return %c0_i32, %c0_i32_0 : i32, i32
  }
  func.func @transform_2(%arg0: i32) -> (i32, i32) {
    %c0_i32 = arith.constant 0 : i32
    %c0_i32_0 = arith.constant 0 : i32
    %c0_i32_1 = arith.constant 0 : i32
    return %c0_i32, %c0_i32_0 : i32, i32
  }
  func.func @transform_3(%arg0: i32) -> (i32, i32) {
    %c0_i32 = arith.constant 0 : i32
    %c0_i32_0 = arith.constant 0 : i32
    return %arg0, %c0_i32 : i32, i32
  }
}

module attributes {stable_mosaic.version = 11 : i64} {
  func.func @kernel(%arg0: i32, %arg1: memref<128x288xbf16, #tpu.memory_space<vmem>>, %arg2: memref<288x12xbf16, #tpu.memory_space<vmem>>, %arg3: memref<1x12xf32, #tpu.memory_space<vmem>>, %arg4: memref<128x12xf32, #tpu.memory_space<vmem>>) attributes {dimension_semantics = [#tpu.dimension_semantics<parallel>], iteration_bounds = array<i64: 1>, scalar_prefetch = 0 : i64, scratch_operands = 0 : i64, tpu.core_type = #tpu.core_type<tc>, window_params = [{transform_indices = @transform_0, window_bounds = array<i64: 128, 288>}, {pipeline_mode = #tpu.pipeline_mode<synchronous>, transform_indices = @transform_1, window_bounds = array<i64: 288, 12>}, {pipeline_mode = #tpu.pipeline_mode<synchronous>, transform_indices = @transform_2, window_bounds = array<i64: 1, 12>}, {transform_indices = @transform_3, window_bounds = array<i64: 128, 12>}]} {
    %c0 = arith.constant 0 : index
    %c0_0 = arith.constant 0 : index
    %0 = vector.load %arg1[%c0, %c0_0] : memref<128x288xbf16, #tpu.memory_space<vmem>>, vector<128x288xbf16>
    %c0_1 = arith.constant 0 : index
    %c0_2 = arith.constant 0 : index
    %1 = vector.load %arg2[%c0_1, %c0_2] : memref<288x12xbf16, #tpu.memory_space<vmem>>, vector<288x12xbf16>
    %cst = arith.constant dense<0.000000e+00> : vector<128x12xf32>
    %2 = tpu.matmul %0, %1, %cst {dimension_numbers = #tpu.dot_dimension_numbers<[1], [0], [0], [1], [0, 0, 1, 1], [], []>} : vector<128x288xbf16>, vector<288x12xbf16>, vector<128x12xf32> -> vector<128x12xf32>
    %c0_3 = arith.constant 0 : index
    %c0_4 = arith.constant 0 : index
    %3 = vector.load %arg3[%c0_3, %c0_4] : memref<1x12xf32, #tpu.memory_space<vmem>>, vector<1x12xf32>
    %4 = vector.broadcast %3 : vector<1x12xf32> to vector<128x12xf32>
    %5 = arith.addf %2, %4 : vector<128x12xf32>
    %c0_5 = arith.constant 0 : index
    %c0_6 = arith.constant 0 : index
    %6 = vector.load %arg4[%c0_5, %c0_6] : memref<128x12xf32, #tpu.memory_space<vmem>>, vector<128x12xf32>
    tpu.vector_store %arg4[%c0_5, %c0_6], %5 {strides = array<i32>} : memref<128x12xf32, #tpu.memory_space<vmem>>, vector<128x12xf32>,
    return
  }
  func.func @transform_0(%arg0: i32) -> (i32, i32) {
    %c0_i32 = arith.constant 0 : i32
    %c0_i32_0 = arith.constant 0 : i32
    return %arg0, %c0_i32 : i32, i32
  }
  func.func @transform_1(%arg0: i32) -> (i32, i32) {
    %c0_i32 = arith.constant 0 : i32
    %c0_i32_0 = arith.constant 0 : i32
    %c0_i32_1 = arith.constant 0 : i32
    return %c0_i32, %c0_i32_0 : i32, i32
  }
  func.func @transform_2(%arg0: i32) -> (i32, i32) {
    %c0_i32 = arith.constant 0 : i32
    %c0_i32_0 = arith.constant 0 : i32
    %c0_i32_1 = arith.constant 0 : i32
    return %c0_i32, %c0_i32_0 : i32, i32
  }
  func.func @transform_3(%arg0: i32) -> (i32, i32) {
    %c0_i32 = arith.constant 0 : i32
    %c0_i32_0 = arith.constant 0 : i32
    return %arg0, %c0_i32 : i32, i32
  }
}

module attributes {stable_mosaic.version = 11 : i64} {
  func.func @kernel(%arg0: i32, %arg1: memref<512x3xf32, #tpu.memory_space<vmem>>, %arg2: memref<1x3xf32, #tpu.memory_space<vmem>>, %arg3: memref<1x3xf32, #tpu.memory_space<vmem>>, %arg4: memref<512x3xf32, #tpu.memory_space<vmem>>) attributes {dimension_semantics = [#tpu.dimension_semantics<arbitrary>], iteration_bounds = array<i64: 1>, scalar_prefetch = 0 : i64, scratch_operands = 0 : i64, tpu.core_type = #tpu.core_type<tc>, window_params = [{pipeline_mode = #tpu.pipeline_mode<synchronous>, transform_indices = @transform_0, window_bounds = array<i64: 512, 3>}, {pipeline_mode = #tpu.pipeline_mode<synchronous>, transform_indices = @transform_1, window_bounds = array<i64: 1, 3>}, {pipeline_mode = #tpu.pipeline_mode<synchronous>, transform_indices = @transform_2, window_bounds = array<i64: 1, 3>}, {pipeline_mode = #tpu.pipeline_mode<synchronous>, transform_indices = @transform_3, window_bounds = array<i64: 512, 3>}]} {
    %c0 = arith.constant 0 : index
    %c0_0 = arith.constant 0 : index
    %0 = vector.load %arg1[%c0, %c0_0] : memref<512x3xf32, #tpu.memory_space<vmem>>, vector<512x3xf32>
    %1 = math.tanh %0 : vector<512x3xf32>
    %cst = arith.constant dense<0.000000e+00> : vector<3xf32>
    %2 = vector.multi_reduction <add>, %1, %cst [0] : vector<512x3xf32> to vector<3xf32>
    %3 = vector.shape_cast %2 : vector<3xf32> to vector<1x3xf32>
    %cst_1 = arith.constant 5.120000e+02 : f32
    %4 = vector.broadcast %cst_1 : f32 to vector<1x3xf32>
    %5 = arith.divf %3, %4 : vector<1x3xf32>
    %6 = vector.broadcast %5 : vector<1x3xf32> to vector<512x3xf32>
    %7 = arith.subf %1, %6 : vector<512x3xf32>
    %8 = arith.mulf %7, %7 : vector<512x3xf32>
    %cst_2 = arith.constant dense<0.000000e+00> : vector<3xf32>
    %9 = vector.multi_reduction <add>, %8, %cst_2 [0] : vector<512x3xf32> to vector<3xf32>
    %10 = vector.shape_cast %9 : vector<3xf32> to vector<1x3xf32>
    %cst_3 = arith.constant 5.120000e+02 : f32
    %11 = vector.broadcast %cst_3 : f32 to vector<1x3xf32>
    %12 = arith.divf %10, %11 : vector<1x3xf32>
    %13 = vector.broadcast %5 : vector<1x3xf32> to vector<512x3xf32>
    %14 = arith.subf %1, %13 : vector<512x3xf32>
    %cst_4 = arith.constant 9.99999974E-6 : f32
    %15 = vector.broadcast %cst_4 : f32 to vector<1x3xf32>
    %16 = arith.addf %12, %15 : vector<1x3xf32>
    %17 = math.rsqrt %16 : vector<1x3xf32>
    %18 = vector.broadcast %17 : vector<1x3xf32> to vector<512x3xf32>
    %19 = arith.mulf %14, %18 : vector<512x3xf32>
    %c0_5 = arith.constant 0 : index
    %c0_6 = arith.constant 0 : index
    %20 = vector.load %arg2[%c0_5, %c0_6] : memref<1x3xf32, #tpu.memory_space<vmem>>, vector<1x3xf32>
    %21 = vector.broadcast %20 : vector<1x3xf32> to vector<512x3xf32>
    %22 = arith.mulf %19, %21 : vector<512x3xf32>
    %c0_7 = arith.constant 0 : index
    %c0_8 = arith.constant 0 : index
    %23 = vector.load %arg3[%c0_7, %c0_8] : memref<1x3xf32, #tpu.memory_space<vmem>>, vector<1x3xf32>
    %24 = vector.broadcast %23 : vector<1x3xf32> to vector<512x3xf32>
    %25 = arith.addf %22, %24 : vector<512x3xf32>
    %c0_9 = arith.constant 0 : index
    %c0_10 = arith.constant 0 : index
    %26 = vector.load %arg4[%c0_9, %c0_10] : memref<512x3xf32, #tpu.memory_space<vmem>>, vector<512x3xf32>
    tpu.vector_store %arg4[%c0_9, %c0_10], %25 {strides = array<i32>} : memref<512x3xf32, #tpu.memory_space<vmem>>, vector<512x3xf32>,
    return
  }
  func.func @transform_0(%arg0: i32) -> (i32, i32) {
    %c0_i32 = arith.constant 0 : i32
    %c0_i32_0 = arith.constant 0 : i32
    %c0_i32_1 = arith.constant 0 : i32
    return %c0_i32, %c0_i32_0 : i32, i32
  }
  func.func @transform_1(%arg0: i32) -> (i32, i32) {
    %c0_i32 = arith.constant 0 : i32
    %c0_i32_0 = arith.constant 0 : i32
    %c0_i32_1 = arith.constant 0 : i32
    return %c0_i32, %c0_i32_0 : i32, i32
  }
  func.func @transform_2(%arg0: i32) -> (i32, i32) {
    %c0_i32 = arith.constant 0 : i32
    %c0_i32_0 = arith.constant 0 : i32
    %c0_i32_1 = arith.constant 0 : i32
    return %c0_i32, %c0_i32_0 : i32, i32
  }
  func.func @transform_3(%arg0: i32) -> (i32, i32) {
    %c0_i32 = arith.constant 0 : i32
    %c0_i32_0 = arith.constant 0 : i32
    %c0_i32_1 = arith.constant 0 : i32
    return %c0_i32, %c0_i32_0 : i32, i32
  }
}

</mosaic_0001>

<bundles_post_ra>
// kernel: cvae_imagenet_forward.20
= control target key start
LH: loop header
LB: loop body
LE: loop exit
PB: predicated region body
PF: predicated region fallthrough
CT: control target
= control target key end

     0   :  { %vm30_vm0 = vcmask 261120   ;;  %s580_s0 = inlined_call_operand.vmem [shape: f32[128,32], index: 0, kind: input, shape index: {}]   ;;  %s581_s1 = inlined_call_operand.vmem [shape: f32[1,32], index: 1, kind: input, shape index: {}]   ;;  %s582_s2 = inlined_call_operand.vmem [shape: f32[1,32], index: 2, kind: input, shape index: {}]   ;;  %s583_s3 = inlined_call_operand.vmem [shape: f32[128,32], index: 3, kind: output, shape index: {}]  }
   0x1   :  { %v14_v0 = vld [vmem:[%s580_s0] sm:$0xff]  ;;  %v15_v1 = vld [vmem:[%s580_s0 + $0x8] sm:$0xff]  ;;  %v16_v2 = vld [vmem:[%s580_s0 + $0x10] sm:$0xff] }
   0x2   :  { %v17_v3 = vld [vmem:[%s580_s0 + $0x18] sm:$0xff]  ;;  %v31_v4 = vsel %vm30_vm0, %v14_v0, 0.0  ;;  %v32_v5 = vsel %vm30_vm0, %v15_v1, 0.0  ;;  %v34_v6 = vsel %vm30_vm0, %v16_v2, 0.0  ;;  %v18_v7 = vld [vmem:[%s580_s0 + $0x20] sm:$0xff]  ;;  %v19_v10 = vld [vmem:[%s580_s0 + $0x28] sm:$0xff] }
   0x3   :  { %v33_v8 = vadd.f32 %v32_v5, %v31_v4  ;;  %v36_v9 = vsel %vm30_vm0, %v17_v3, 0.0  ;;  %v38_v12 = vsel %vm30_vm0, %v18_v7, 0.0  ;;  %v20_v13 = vld [vmem:[%s580_s0 + $0x30] sm:$0xff]  ;;  %v40_v15 = vsel %vm30_vm0, %v19_v10, 0.0  ;;  %v21_v16 = vld [vmem:[%s580_s0 + $0x38] sm:$0xff]  ;;  %v22_v19 = vld [vmem:[%s580_s0 + $0x40] sm:$0xff] }
   0x4   :  { %v42_v18 = vsel %vm30_vm0, %v20_v13, 0.0  ;;  %v44_v21 = vsel %vm30_vm0, %v21_v16, 0.0  ;;  %v23_v22 = vld [vmem:[%s580_s0 + $0x48] sm:$0xff]  ;;  %v46_v24 = vsel %vm30_vm0, %v22_v19, 0.0  ;;  %v24_v25 = vld [vmem:[%s580_s0 + $0x50] sm:$0xff]  ;;  %v25_v28 = vld [vmem:[%s580_s0 + $0x58] sm:$0xff] }
   0x5   :  { %v35_v11 = vadd.f32 %v34_v6, %v33_v8  ;;  %v48_v27 = vsel %vm30_vm0, %v23_v22, 0.0  ;;  %v50_v30 = vsel %vm30_vm0, %v24_v25, 0.0  ;;  %v26_v31 = vld [vmem:[%s580_s0 + $0x60] sm:$0xff]  ;;  %v52_v33 = vsel %vm30_vm0, %v25_v28, 0.0  ;;  %v27_v34 = vld [vmem:[%s580_s0 + $0x68] sm:$0xff]  ;;  %v28_v37 = vld [vmem:[%s580_s0 + $0x70] sm:$0xff] }
   0x6   :  { %v54_v36 = vsel %vm30_vm0, %v26_v31, 0.0  ;;  %v56_v39 = vsel %vm30_vm0, %v27_v34, 0.0  ;;  %v29_v40 = vld [vmem:[%s580_s0 + $0x78] sm:$0xff]  ;;  %v58_v42 = vsel %vm30_vm0, %v28_v37, 0.0 }
   0x7   :  { %v37_v14 = vadd.f32 %v36_v9, %v35_v11  ;;  %v60_v44 = vsel %vm30_vm0, %v29_v40, 0.0 }
   0x9   :  { %v39_v17 = vadd.f32 %v38_v12, %v37_v14 }
   0xb   :  { %v41_v20 = vadd.f32 %v40_v15, %v39_v17 }
   0xd   :  { %v43_v23 = vadd.f32 %v42_v18, %v41_v20 }
   0xf   :  { %v45_v26 = vadd.f32 %v44_v21, %v43_v23 }
  0x11   :  { %v47_v29 = vadd.f32 %v46_v24, %v45_v26 }
  0x13   :  { %v49_v32 = vadd.f32 %v48_v27, %v47_v29 }
  0x15   :  { %v51_v35 = vadd.f32 %v50_v30, %v49_v32 }
  0x17   :  { %v53_v38 = vadd.f32 %v52_v33, %v51_v35 }
  0x19   :  { %v55_v41 = vadd.f32 %v54_v36, %v53_v38 }
  0x1b   :  { %v57_v43 = vadd.f32 %v56_v39, %v55_v41 }
  0x1d   :  { %v59_v45 = vadd.f32 %v58_v42, %v57_v43 }
  0x1f   :  { %v61_v46 = vadd.f32 %v60_v44, %v59_v45 }
  0x21   :  { %v62_v47 = vrot.slane %v61_v46, 4 }
  0x23   :  { %v63_v48 = vadd.f32 %v62_v47, %v61_v46 }
  0x25   :  { %v64_v49 = vrot.slane %v63_v48, 2 }
  0x27   :  { %v65_v50 = vadd.f32 %v64_v49, %v63_v48 }
  0x29   :  { %v66_v51 = vrot.slane %v65_v50, 1 }
  0x2b   :  { %v67_v52 = vadd.f32 %v66_v51, %v65_v50 }
  0x2d   :  { %v69_v53 = vmul.f32 0.0078125, %v67_v52 }
  0x2f   :  { %v360_v54 = vsub.f32 %v14_v0, %v69_v53  ;;  %v362_v55 = vsub.f32 %v15_v1, %v69_v53  ;;  %v364_v56 = vsub.f32 %v16_v2, %v69_v53  ;;  %v366_v57 = vsub.f32 %v17_v3, %v69_v53 }
  0x30   :  { %v368_v58 = vsub.f32 %v18_v7, %v69_v53  ;;  %v376_v62 = vsub.f32 %v19_v10, %v69_v53  ;;  %v380_v0 = vsub.f32 %v20_v13, %v69_v53  ;;  %v387_v6 = vsub.f32 %v21_v16, %v69_v53 }
  0x31   :  { %v86_v59 = vmul.f32 %v360_v54, %v360_v54  ;;  %v87_v60 = vmul.f32 %v362_v55, %v362_v55  ;;  %v88_v61 = vmul.f32 %v364_v56, %v364_v56  ;;  %v89_v63 = vmul.f32 %v366_v57, %v366_v57 }
  0x32   :  { %v90_v1 = vmul.f32 %v368_v58, %v368_v58  ;;  %v91_v7 = vmul.f32 %v376_v62, %v376_v62  ;;  %v392_v10 = vsub.f32 %v22_v19, %v69_v53  ;;  %v92_v11 = vmul.f32 %v380_v0, %v380_v0 }
  0x33   :  { %v102_v2 = vsel %vm30_vm0, %v86_v59, 0.0  ;;  %v103_v3 = vsel %vm30_vm0, %v87_v60, 0.0  ;;  %v105_v4 = vsel %vm30_vm0, %v88_v61, 0.0  ;;  %v107_v8 = vsel %vm30_vm0, %v89_v63, 0.0 }
  0x34   :  { %v104_v5 = vadd.f32 %v103_v3, %v102_v2  ;;  %v109_v12 = vsel %vm30_vm0, %v90_v1, 0.0  ;;  %v397_v14 = vsub.f32 %v23_v22, %v69_v53  ;;  %v93_v15 = vmul.f32 %v387_v6, %v387_v6 }
  0x35   :  { %v111_v16 = vsel %vm30_vm0, %v91_v7, 0.0  ;;  %v402_v18 = vsub.f32 %v24_v25, %v69_v53  ;;  %v94_v19 = vmul.f32 %v392_v10, %v392_v10  ;;  %v113_v20 = vsel %vm30_vm0, %v92_v11, 0.0 }
  0x36   :  { %v106_v9 = vadd.f32 %v105_v4, %v104_v5  ;;  %v407_v23 = vsub.f32 %v25_v28, %v69_v53  ;;  %v95_v22 = vmul.f32 %v397_v14, %v397_v14  ;;  %v115_v24 = vsel %vm30_vm0, %v93_v15, 0.0  ;;  %v445_v5 = vld [vmem:[%s581_s1] ss:$0 sm:$0xff] }
  0x37   :  { %v412_v27 = vsub.f32 %v26_v31, %v69_v53  ;;  %v96_v25 = vmul.f32 %v402_v18, %v402_v18  ;;  %v117_v29 = vsel %vm30_vm0, %v94_v19, 0.0  ;;  %v417_v32 = vsub.f32 %v27_v34, %v69_v53 }
  0x38   :  { %v108_v13 = vadd.f32 %v107_v8, %v106_v9  ;;  %v97_v28 = vmul.f32 %v407_v23, %v407_v23  ;;  %v119_v33 = vsel %vm30_vm0, %v95_v22, 0.0  ;;  %v422_v36 = vsub.f32 %v28_v37, %v69_v53 }
  0x39   :  { %v98_v31 = vmul.f32 %v412_v27, %v412_v27  ;;  %v121_v38 = vsel %vm30_vm0, %v96_v25, 0.0  ;;  %v427_v41 = vsub.f32 %v29_v40, %v69_v53  ;;  %v99_v34 = vmul.f32 %v417_v32, %v417_v32 }
  0x3a   :  { %v110_v17 = vadd.f32 %v109_v12, %v108_v13  ;;  %v123_v42 = vsel %vm30_vm0, %v97_v28, 0.0  ;;  %v100_v44 = vmul.f32 %v422_v36, %v422_v36  ;;  %v458_v12 = vld [vmem:[%s582_s2] ss:$0 sm:$0xff] }
  0x3b   :  { %v125_v37 = vsel %vm30_vm0, %v98_v31, 0.0  ;;  %v101_v46 = vmul.f32 %v427_v41, %v427_v41  ;;  %v127_v47 = vsel %vm30_vm0, %v99_v34, 0.0 }
  0x3c   :  { %v112_v21 = vadd.f32 %v111_v16, %v110_v17  ;;  %v129_v40 = vsel %vm30_vm0, %v100_v44, 0.0 }
  0x3d   :  { %v131_v50 = vsel %vm30_vm0, %v101_v46, 0.0 }
  0x3e   :  { %v114_v26 = vadd.f32 %v113_v20, %v112_v21 }
  0x40   :  { %v116_v30 = vadd.f32 %v115_v24, %v114_v26 }
  0x42   :  { %v118_v35 = vadd.f32 %v117_v29, %v116_v30 }
  0x44   :  { %v120_v39 = vadd.f32 %v119_v33, %v118_v35 }
  0x46   :  { %v122_v43 = vadd.f32 %v121_v38, %v120_v39 }
  0x48   :  { %v124_v45 = vadd.f32 %v123_v42, %v122_v43 }
  0x4a   :  { %v126_v48 = vadd.f32 %v125_v37, %v124_v45 }
  0x4c   :  { %v128_v49 = vadd.f32 %v127_v47, %v126_v48 }
  0x4e   :  { %v130_v51 = vadd.f32 %v129_v40, %v128_v49 }
  0x50   :  { %v132_v52 = vadd.f32 %v131_v50, %v130_v51 }
  0x52   :  { %v133_v53 = vrot.slane %v132_v52, 4 }
  0x54   :  { %v134_v59 = vadd.f32 %v133_v53, %v132_v52 }
  0x56   :  { %v135_v60 = vrot.slane %v134_v59, 2 }
  0x58   :  { %v136_v61 = vadd.f32 %v135_v60, %v134_v59 }
  0x5a   :  { %v137_v63 = vrot.slane %v136_v61, 1 }
  0x5c   :  { %v138_v1 = vadd.f32 %v137_v63, %v136_v61 }
  0x5e   :  { %v139_v2 = vmul.f32 0.0078125, %v138_v1 }
  0x60   :  { %v140_v3 = vadd.f32 1e-05, %v139_v2 }
  0x62   :  { %274 = vrsqrt.f32 %v140_v3 }
  0x6f   :  { %v440_v4 = vpop.eup %274 }
  0x70   :  { %v142_v7 = vmul.f32 %v440_v4, %v360_v54  ;;  %v143_v8 = vmul.f32 %v440_v4, %v362_v55  ;;  %v144_v9 = vmul.f32 %v440_v4, %v364_v56  ;;  %v145_v11 = vmul.f32 %v440_v4, %v366_v57 }
  0x71   :  { %v146_v13 = vmul.f32 %v440_v4, %v368_v58  ;;  %v147_v54 = vmul.f32 %v440_v4, %v376_v62  ;;  %v148_v55 = vmul.f32 %v440_v4, %v380_v0  ;;  %v149_v56 = vmul.f32 %v440_v4, %v387_v6 }
  0x72   :  { %v165_v15 = vmul.f32 %v445_v5, %v142_v7  ;;  %v166_v57 = vmul.f32 %v445_v5, %v143_v8  ;;  %v167_v16 = vmul.f32 %v445_v5, %v144_v9  ;;  %v168_v17 = vmul.f32 %v445_v5, %v145_v11 }
  0x73   :  { %v169_v19 = vmul.f32 %v445_v5, %v146_v13  ;;  %v170_v58 = vmul.f32 %v445_v5, %v147_v54  ;;  %v171_v62 = vmul.f32 %v445_v5, %v148_v55  ;;  %v172_v20 = vmul.f32 %v445_v5, %v149_v56 }
  0x74   :  { %v188_v0 = vadd.f32 %v458_v12, %v165_v15  ;;  %v189_v6 = vadd.f32 %v458_v12, %v166_v57  ;;  %v190_v21 = vadd.f32 %v458_v12, %v167_v16  ;;  %v191_v22 = vadd.f32 %v458_v12, %v168_v17 }
  0x75   :  { %v192_v24 = vadd.f32 %v458_v12, %v169_v19  ;;  %v193_v26 = vadd.f32 %v458_v12, %v170_v58  ;;  %v194_v25 = vadd.f32 %v458_v12, %v171_v62  ;;  %v195_v29 = vadd.f32 %v458_v12, %v172_v20 }
  0x76   :  { %vm204_vm1 = vcmp.ge.f32.partialorder %v188_v0, 0.0  ;;  %v220_v30 = vmul.f32 0.01, %v188_v0  ;;  %vm205_vm2 = vcmp.ge.f32.partialorder %v189_v6, 0.0  ;;  %v221_v28 = vmul.f32 0.01, %v189_v6 }
  0x77   :  { %vm206_vm3 = vcmp.ge.f32.partialorder %v190_v21, 0.0  ;;  %v222_v33 = vmul.f32 0.01, %v190_v21  ;;  %vm207_vm4 = vcmp.ge.f32.partialorder %v191_v22, 0.0  ;;  %v223_v35 = vmul.f32 0.01, %v191_v22 }
  0x78   :  { %v236_v31 = vsel %vm204_vm1, %v188_v0, %v220_v30  ;;  %v237_v38 = vsel %vm205_vm2, %v189_v6, %v221_v28  ;;  %vm208_vm5 = vcmp.ge.f32.partialorder %v192_v24, 0.0  ;;  %v224_v39 = vmul.f32 0.01, %v192_v24 }
  0x79   :  { %252 = vst.msk [vmem:[%s583_s3] sm:$0xff] %vm30_vm0, %v236_v31  ;;  %253 = vst.msk [vmem:[%s583_s3 + $0x8] sm:$0xff] %vm30_vm0, %v237_v38  ;;  %v238_v34 = vsel %vm206_vm3, %v190_v21, %v222_v33  ;;  %v239_v42 = vsel %vm207_vm4, %v191_v22, %v223_v35  ;;  %vm209_vm6 = vcmp.ge.f32.partialorder %v193_v26, 0.0  ;;  %v225_v43 = vmul.f32 0.01, %v193_v26 }
  0x7a   :  { %254 = vst.msk [vmem:[%s583_s3 + $0x10] sm:$0xff] %vm30_vm0, %v238_v34  ;;  %255 = vst.msk [vmem:[%s583_s3 + $0x18] sm:$0xff] %vm30_vm0, %v239_v42  ;;  %v240_v44 = vsel %vm208_vm5, %v192_v24, %v224_v39  ;;  %vm210_vm7 = vcmp.ge.f32.partialorder %v194_v25, 0.0  ;;  %v226_v37 = vmul.f32 0.01, %v194_v25  ;;  %vm211_vm8 = vcmp.ge.f32.partialorder %v195_v29, 0.0 }
  0x7b   :  { %256 = vst.msk [vmem:[%s583_s3 + $0x20] sm:$0xff] %vm30_vm0, %v240_v44  ;;  %v241_v45 = vsel %vm209_vm6, %v193_v26, %v225_v43  ;;  %v227_v46 = vmul.f32 0.01, %v195_v29  ;;  %v150_v47 = vmul.f32 %v440_v4, %v392_v10  ;;  %v151_v48 = vmul.f32 %v440_v4, %v397_v14 }
  0x7c   :  { %257 = vst.msk [vmem:[%s583_s3 + $0x28] sm:$0xff] %vm30_vm0, %v241_v45  ;;  %v242_v40 = vsel %vm210_vm7, %v194_v25, %v226_v37  ;;  %v152_v49 = vmul.f32 %v440_v4, %v402_v18  ;;  %v153_v50 = vmul.f32 %v440_v4, %v407_v23  ;;  %v154_v51 = vmul.f32 %v440_v4, %v412_v27 }
  0x7d   :  { %258 = vst.msk [vmem:[%s583_s3 + $0x30] sm:$0xff] %vm30_vm0, %v242_v40  ;;  %v243_v10 = vsel %vm211_vm8, %v195_v29, %v227_v46  ;;  %v173_v14 = vmul.f32 %v445_v5, %v150_v47  ;;  %v174_v52 = vmul.f32 %v445_v5, %v151_v48  ;;  %v155_v53 = vmul.f32 %v440_v4, %v417_v32 }
  0x7e   :  { %259 = vst.msk [vmem:[%s583_s3 + $0x38] sm:$0xff] %vm30_vm0, %v243_v10  ;;  %v175_v18 = vmul.f32 %v445_v5, %v152_v49  ;;  %v176_v23 = vmul.f32 %v445_v5, %v153_v50  ;;  %v177_v27 = vmul.f32 %v445_v5, %v154_v51  ;;  %v156_v59 = vmul.f32 %v440_v4, %v422_v36 }
  0x7f   :  { %v196_v60 = vadd.f32 %v458_v12, %v173_v14  ;;  %v197_v61 = vadd.f32 %v458_v12, %v174_v52  ;;  %v178_v32 = vmul.f32 %v445_v5, %v155_v53  ;;  %v157_v63 = vmul.f32 %v440_v4, %v427_v41 }
  0x80   :  { %v198_v1 = vadd.f32 %v458_v12, %v175_v18  ;;  %v199_v2 = vadd.f32 %v458_v12, %v176_v23  ;;  %v200_v3 = vadd.f32 %v458_v12, %v177_v27  ;;  %v179_v7 = vmul.f32 %v445_v5, %v156_v59 }
  0x81   :  { %vm212_vm9 = vcmp.ge.f32.partialorder %v196_v60, 0.0  ;;  %v228_v8 = vmul.f32 0.01, %v196_v60  ;;  %vm213_vm10 = vcmp.ge.f32.partialorder %v197_v61, 0.0  ;;  %v229_v36 = vmul.f32 0.01, %v197_v61 }
  0x82   :  { %vm214_vm11 = vcmp.ge.f32.partialorder %v198_v1, 0.0  ;;  %v230_v9 = vmul.f32 0.01, %v198_v1  ;;  %vm215_vm12 = vcmp.ge.f32.partialorder %v199_v2, 0.0  ;;  %v231_v11 = vmul.f32 0.01, %v199_v2 }
  0x83   :  { %v244_v13 = vsel %vm212_vm9, %v196_v60, %v228_v8  ;;  %v245_v54 = vsel %vm213_vm10, %v197_v61, %v229_v36  ;;  %vm216_vm13 = vcmp.ge.f32.partialorder %v200_v3, 0.0  ;;  %v232_v41 = vmul.f32 0.01, %v200_v3 }
  0x84   :  { %260 = vst.msk [vmem:[%s583_s3 + $0x40] sm:$0xff] %vm30_vm0, %v244_v13  ;;  %261 = vst.msk [vmem:[%s583_s3 + $0x48] sm:$0xff] %vm30_vm0, %v245_v54  ;;  %v246_v4 = vsel %vm214_vm11, %v198_v1, %v230_v9  ;;  %v247_v55 = vsel %vm215_vm12, %v199_v2, %v231_v11  ;;  %v201_v56 = vadd.f32 %v458_v12, %v178_v32 }
  0x85   :  { %v202_v15 = vadd.f32 %v458_v12, %v179_v7  ;;  %262 = vst.msk [vmem:[%s583_s3 + $0x50] sm:$0xff] %vm30_vm0, %v246_v4  ;;  %263 = vst.msk [vmem:[%s583_s3 + $0x58] sm:$0xff] %vm30_vm0, %v247_v55  ;;  %v248_v57 = vsel %vm216_vm13, %v200_v3, %v232_v41  ;;  %v180_v16 = vmul.f32 %v445_v5, %v157_v63 }
  0x86   :  { %264 = vst.msk [vmem:[%s583_s3 + $0x60] sm:$0xff] %vm30_vm0, %v248_v57  ;;  %vm217_vm14 = vcmp.ge.f32.partialorder %v201_v56, 0.0  ;;  %v233_v17 = vmul.f32 0.01, %v201_v56 }
  0x87   :  { %vm218_vm15 = vcmp.ge.f32.partialorder %v202_v15, 0.0  ;;  %v234_v19 = vmul.f32 0.01, %v202_v15  ;;  %v203_v58 = vadd.f32 %v458_v12, %v180_v16 }
  0x88   :  { %v249_v62 = vsel %vm217_vm14, %v201_v56, %v233_v17 }
  0x89   :  { %v250_v20 = vsel %vm218_vm15, %v202_v15, %v234_v19  ;;  %265 = vst.msk [vmem:[%s583_s3 + $0x68] sm:$0xff] %vm30_vm0, %v249_v62  ;;  %vm219_vm1 = vcmp.ge.f32.partialorder %v203_v58, 0.0  ;;  %v235_v5 = vmul.f32 0.01, %v203_v58 }
  0x8a   :  { %266 = vst.msk [vmem:[%s583_s3 + $0x70] sm:$0xff] %vm30_vm0, %v250_v20 }
  0x8b   :  { %v251_v0 = vsel %vm219_vm1, %v203_v58, %v235_v5 }
  0x8c   :  { %267 = vst.msk [vmem:[%s583_s3 + $0x78] sm:$0xff] %vm30_vm0, %v251_v0 }

// kernel: cvae_imagenet_forward.19
= control target key start
LH: loop header
LB: loop body
LE: loop exit
PB: predicated region body
PF: predicated region fallthrough
CT: control target
= control target key end

     0   :  { %vm102_vm0 = vcmask 392192   ;;  %vm224_vm1 = vcmask 261120   ;;  %s443_s1 = inlined_call_operand.vmem [shape: bf16[48,32], index: 1, kind: input, shape index: {}]   ;;  %s444_s0 = inlined_call_operand.vmem [shape: bf16[128,48], index: 0, kind: input, shape index: {}]   ;;  %s445_s2 = inlined_call_operand.vmem [shape: f32[1,32], index: 2, kind: input, shape index: {}]   ;;  %s446_s3 = inlined_call_operand.vmem [shape: f32[128,32], index: 3, kind: output, shape index: {}]  }
   0x1   :  { %v304_v0 = vld [vmem:[%s443_s1 + $0x10] sm:$0xff]   ;;  %v305_v1 = vld [vmem:[%s443_s1 + $0x8] sm:$0xff]   ;;  %v306_v2 = vld [vmem:[%s443_s1] sm:$0xff]  }
   0x2   :  { %276 = vmatprep.subr.bf16.mxu0 %v304_v0  ;;  %298 = vmatprep.subr.bf16.mxu1 %v304_v0  ;;  %v307_v3 = vld [vmem:[%s444_s0] sm:$0xff]   ;;  %v309_v5 = vld [vmem:[%s444_s0 + $0x8] sm:$0xff]   ;;  %v311_v7 = vld [vmem:[%s444_s0 + $0x10] sm:$0xff]  }
   0x3   :  { %277 = vmatpush3.bf16.msra.mxu0 %v304_v0  ;;  %301 = vmatpush3.bf16.msra.mxu1 %v304_v0  ;;  %v308_v4 = vld [vmem:[%s444_s0 + $0x20] sm:$0xff]   ;;  %v310_v6 = vld [vmem:[%s444_s0 + $0x28] sm:$0xff]   ;;  %v312_v8 = vld [vmem:[%s444_s0 + $0x30] sm:$0xff]  }
   0x4   :  { %278 = vmatprep.subr.bf16.mxu0 %v305_v1  ;;  %299 = vmatprep.subr.bf16.mxu1 %v305_v1  ;;  %v313_v9 = vld [vmem:[%s444_s0 + $0x18] sm:$0xff]   ;;  %v245_v11 = vld [vmem:[%s445_s2] ss:$0 sm:$0xff] }
   0x5   :  { %282 = vmatprep.mubr.msk.bf16.mxu0 %vm102_vm0, %v307_v3  ;;  %290 = vmatprep.mubr.msk.bf16.mxu1 %vm102_vm0, %v308_v4  ;;  %v314_v10 = vld [vmem:[%s444_s0 + $0x38] sm:$0xff]  }
   0x7   :  { %279 = vmatpush3.bf16.msra.mxu0 %v305_v1  ;;  %302 = vmatpush3.bf16.msra.mxu1 %v305_v1 }
   0x8   :  { %280 = vmatprep.subr.bf16.mxu0 %v306_v2  ;;  %300 = vmatprep.subr.bf16.mxu1 %v306_v2 }
   0xb   :  { %281 = vmatpush3.bf16.msra.mxu0 %v306_v2  ;;  %303 = vmatpush3.bf16.msra.mxu1 %v306_v2 }
   0xe   :  { %283 = vmatmul.mubr.msk.bf16.vlgmr.msra.gmra.mxu0 %vm102_vm0, %v309_v5  ;;  %291 = vmatmul.mubr.msk.bf16.vlgmr.msra.gmra.mxu1 %vm102_vm0, %v310_v6 }
   0xf   :  { %286 = vmatprep.mubr.msk.bf16.mxu0 %vm102_vm0, %v311_v7  ;;  %294 = vmatprep.mubr.msk.bf16.mxu1 %vm102_vm0, %v312_v8 }
  0x16   :  { %287 = vmatmul.mubr.msk.bf16.gmra.mxu0 %vm102_vm0, %v313_v9  ;;  %295 = vmatmul.mubr.msk.bf16.gmra.mxu1 %vm102_vm0, %v314_v10 }
  0xce   :  { %v284_v12 = vpop.f32.mrf.mxu0  ;;  %v292_v13 = vpop.f32.mrf.mxu1 }
  0xcf   :  { %v170_v14 = vadd.f32 %v284_v12, %v245_v11  ;;  %v202_v15 = vadd.f32 %v292_v13, %v245_v11 }
  0xd0   :  { %v161_v16 = vpop.f32.mrf.mxu0  ;;  %v193_v17 = vpop.f32.mrf.mxu1 }
  0xd1   :  { %227 = vst.msk [vmem:[%s446_s3 + $0x10] sm:$0xff] %vm224_vm1, %v170_v14  ;;  %235 = vst.msk [vmem:[%s446_s3 + $0x50] sm:$0xff] %vm224_vm1, %v202_v15  ;;  %v162_v18 = vadd.f32 %v245_v11, %v161_v16  ;;  %v194_v19 = vadd.f32 %v245_v11, %v193_v17 }
  0xd2   :  { %v285_v20 = vpop.f32.mrf.mxu0  ;;  %v293_v21 = vpop.f32.mrf.mxu1 }
  0xd3   :  { %225 = vst.msk [vmem:[%s446_s3] sm:$0xff] %vm224_vm1, %v162_v18  ;;  %233 = vst.msk [vmem:[%s446_s3 + $0x40] sm:$0xff] %vm224_vm1, %v194_v19  ;;  %v173_v22 = vadd.f32 %v285_v20, %v245_v11  ;;  %v205_v23 = vadd.f32 %v293_v21, %v245_v11 }
  0xd4   :  { %v164_v24 = vpop.f32.mrf.mxu0  ;;  %v196_v25 = vpop.f32.mrf.mxu1 }
  0xd5   :  { %228 = vst.msk [vmem:[%s446_s3 + $0x18] sm:$0xff] %vm224_vm1, %v173_v22  ;;  %236 = vst.msk [vmem:[%s446_s3 + $0x58] sm:$0xff] %vm224_vm1, %v205_v23  ;;  %v165_v26 = vadd.f32 %v245_v11, %v164_v24  ;;  %v197_v27 = vadd.f32 %v245_v11, %v196_v25 }
  0xd6   :  { %v288_v28 = vpop.f32.mrf.mxu0  ;;  %v296_v29 = vpop.f32.mrf.mxu1 }
  0xd7   :  { %226 = vst.msk [vmem:[%s446_s3 + $0x8] sm:$0xff] %vm224_vm1, %v165_v26  ;;  %234 = vst.msk [vmem:[%s446_s3 + $0x48] sm:$0xff] %vm224_vm1, %v197_v27  ;;  %v186_v30 = vadd.f32 %v288_v28, %v245_v11  ;;  %v218_v31 = vadd.f32 %v296_v29, %v245_v11 }
  0xd8   :  { %v177_v32 = vpop.f32.mrf.mxu0  ;;  %v209_v33 = vpop.f32.mrf.mxu1 }
  0xd9   :  { %231 = vst.msk [vmem:[%s446_s3 + $0x30] sm:$0xff] %vm224_vm1, %v186_v30  ;;  %239 = vst.msk [vmem:[%s446_s3 + $0x70] sm:$0xff] %vm224_vm1, %v218_v31  ;;  %v178_v34 = vadd.f32 %v245_v11, %v177_v32  ;;  %v210_v35 = vadd.f32 %v245_v11, %v209_v33 }
  0xda   :  { %v289_v36 = vpop.f32.mrf.mxu0  ;;  %v297_v37 = vpop.f32.mrf.mxu1 }
  0xdb   :  { %229 = vst.msk [vmem:[%s446_s3 + $0x20] sm:$0xff] %vm224_vm1, %v178_v34  ;;  %237 = vst.msk [vmem:[%s446_s3 + $0x60] sm:$0xff] %vm224_vm1, %v210_v35  ;;  %v189_v38 = vadd.f32 %v289_v36, %v245_v11  ;;  %v221_v39 = vadd.f32 %v297_v37, %v245_v11 }
  0xdc   :  { %v180_v40 = vpop.f32.mrf.mxu0  ;;  %v212_v41 = vpop.f32.mrf.mxu1 }
  0xdd   :  { %232 = vst.msk [vmem:[%s446_s3 + $0x38] sm:$0xff] %vm224_vm1, %v189_v38  ;;  %240 = vst.msk [vmem:[%s446_s3 + $0x78] sm:$0xff] %vm224_vm1, %v221_v39  ;;  %v181_v42 = vadd.f32 %v245_v11, %v180_v40  ;;  %v213_v43 = vadd.f32 %v245_v11, %v212_v41 }
  0xdf   :  { %230 = vst.msk [vmem:[%s446_s3 + $0x28] sm:$0xff] %vm224_vm1, %v181_v42  ;;  %238 = vst.msk [vmem:[%s446_s3 + $0x68] sm:$0xff] %vm224_vm1, %v213_v43 }

// kernel: cvae_imagenet_forward.22
= control target key start
LH: loop header
LB: loop body
LE: loop exit
PB: predicated region body
PF: predicated region fallthrough
CT: control target
= control target key end

     0   :  { %vm18_vm0 = vcmask 261120   ;;  %s170_s0 = inlined_call_operand.vmem [shape: f32[32,32], index: 0, kind: input, shape index: {}]   ;;  %s171_s1 = inlined_call_operand.vmem [shape: f32[1,32], index: 1, kind: input, shape index: {}]   ;;  %s172_s2 = inlined_call_operand.vmem [shape: f32[1,32], index: 2, kind: input, shape index: {}]   ;;  %s173_s3 = inlined_call_operand.vmem [shape: f32[32,32], index: 3, kind: output, shape index: {}]  }
   0x1   :  { %v14_v0 = vld [vmem:[%s170_s0] sm:$0xff]  ;;  %v15_v1 = vld [vmem:[%s170_s0 + $0x8] sm:$0xff]  ;;  %v16_v2 = vld [vmem:[%s170_s0 + $0x10] sm:$0xff] }
   0x2   :  { %v17_v3 = vld [vmem:[%s170_s0 + $0x18] sm:$0xff]  ;;  %v19_v4 = vsel %vm18_vm0, %v14_v0, 0.0  ;;  %v20_v5 = vsel %vm18_vm0, %v15_v1, 0.0  ;;  %v22_v6 = vsel %vm18_vm0, %v16_v2, 0.0  ;;  %v104_v42 = vld [vmem:[%s171_s1] ss:$0 sm:$0xff] }
   0x3   :  { %v21_v7 = vadd.f32 %v20_v5, %v19_v4  ;;  %v24_v8 = vsel %vm18_vm0, %v17_v3, 0.0  ;;  %v105_v47 = vld [vmem:[%s172_s2] ss:$0 sm:$0xff] }
   0x5   :  { %v23_v9 = vadd.f32 %v22_v6, %v21_v7 }
   0x7   :  { %v25_v10 = vadd.f32 %v24_v8, %v23_v9 }
   0x9   :  { %v26_v11 = vrot.slane %v25_v10, 4 }
   0xb   :  { %v27_v12 = vadd.f32 %v26_v11, %v25_v10 }
   0xd   :  { %v28_v13 = vrot.slane %v27_v12, 2 }
   0xf   :  { %v29_v14 = vadd.f32 %v28_v13, %v27_v12 }
  0x11   :  { %v30_v15 = vrot.slane %v29_v14, 1 }
  0x13   :  { %v31_v16 = vadd.f32 %v30_v15, %v29_v14 }
  0x15   :  { %v33_v17 = vmul.f32 0.03125, %v31_v16 }
  0x17   :  { %v34_v18 = vsub.f32 %v14_v0, %v33_v17  ;;  %v35_v19 = vsub.f32 %v15_v1, %v33_v17  ;;  %v36_v20 = vsub.f32 %v16_v2, %v33_v17  ;;  %v37_v21 = vsub.f32 %v17_v3, %v33_v17 }
  0x19   :  { %v38_v22 = vmul.f32 %v34_v18, %v34_v18  ;;  %v39_v23 = vmul.f32 %v35_v19, %v35_v19  ;;  %v40_v24 = vmul.f32 %v36_v20, %v36_v20  ;;  %v41_v25 = vmul.f32 %v37_v21, %v37_v21 }
  0x1b   :  { %v42_v26 = vsel %vm18_vm0, %v38_v22, 0.0  ;;  %v43_v27 = vsel %vm18_vm0, %v39_v23, 0.0  ;;  %v45_v28 = vsel %vm18_vm0, %v40_v24, 0.0  ;;  %v47_v30 = vsel %vm18_vm0, %v41_v25, 0.0 }
  0x1c   :  { %v44_v29 = vadd.f32 %v43_v27, %v42_v26 }
  0x1e   :  { %v46_v31 = vadd.f32 %v45_v28, %v44_v29 }
  0x20   :  { %v48_v32 = vadd.f32 %v47_v30, %v46_v31 }
  0x22   :  { %v49_v33 = vrot.slane %v48_v32, 4 }
  0x24   :  { %v50_v34 = vadd.f32 %v49_v33, %v48_v32 }
  0x26   :  { %v51_v35 = vrot.slane %v50_v34, 2 }
  0x28   :  { %v52_v36 = vadd.f32 %v51_v35, %v50_v34 }
  0x2a   :  { %v53_v37 = vrot.slane %v52_v36, 1 }
  0x2c   :  { %v54_v38 = vadd.f32 %v53_v37, %v52_v36 }
  0x2e   :  { %v55_v39 = vmul.f32 0.03125, %v54_v38 }
  0x30   :  { %v56_v40 = vadd.f32 1e-05, %v55_v39 }
  0x32   :  { %106 = vrsqrt.f32 %v56_v40 }
  0x3f   :  { %v107_v41 = vpop.eup %106 }
  0x40   :  { %v58_v43 = vmul.f32 %v107_v41, %v34_v18  ;;  %v59_v44 = vmul.f32 %v107_v41, %v35_v19  ;;  %v60_v45 = vmul.f32 %v107_v41, %v36_v20  ;;  %v61_v46 = vmul.f32 %v107_v41, %v37_v21 }
  0x42   :  { %v69_v48 = vmul.f32 %v104_v42, %v58_v43  ;;  %v70_v49 = vmul.f32 %v104_v42, %v59_v44  ;;  %v71_v50 = vmul.f32 %v104_v42, %v60_v45  ;;  %v72_v51 = vmul.f32 %v104_v42, %v61_v46 }
  0x44   :  { %v80_v52 = vadd.f32 %v105_v47, %v69_v48  ;;  %v81_v53 = vadd.f32 %v105_v47, %v70_v49  ;;  %v82_v54 = vadd.f32 %v105_v47, %v71_v50  ;;  %v83_v55 = vadd.f32 %v105_v47, %v72_v51 }
  0x46   :  { %vm84_vm1 = vcmp.ge.f32.partialorder %v80_v52, 0.0  ;;  %v88_v56 = vmul.f32 0.01, %v80_v52  ;;  %vm85_vm2 = vcmp.ge.f32.partialorder %v81_v53, 0.0  ;;  %v89_v57 = vmul.f32 0.01, %v81_v53 }
  0x47   :  { %vm86_vm3 = vcmp.ge.f32.partialorder %v82_v54, 0.0  ;;  %v90_v58 = vmul.f32 0.01, %v82_v54  ;;  %vm87_vm4 = vcmp.ge.f32.partialorder %v83_v55, 0.0  ;;  %v91_v59 = vmul.f32 0.01, %v83_v55 }
  0x48   :  { %v92_v60 = vsel %vm84_vm1, %v80_v52, %v88_v56  ;;  %v93_v61 = vsel %vm85_vm2, %v81_v53, %v89_v57 }
  0x49   :  { %96 = vst.msk [vmem:[%s173_s3] sm:$0xff] %vm18_vm0, %v92_v60  ;;  %97 = vst.msk [vmem:[%s173_s3 + $0x8] sm:$0xff] %vm18_vm0, %v93_v61  ;;  %v94_v62 = vsel %vm86_vm3, %v82_v54, %v90_v58  ;;  %v95_v63 = vsel %vm87_vm4, %v83_v55, %v91_v59 }
  0x4a   :  { %98 = vst.msk [vmem:[%s173_s3 + $0x10] sm:$0xff] %vm18_vm0, %v94_v62  ;;  %99 = vst.msk [vmem:[%s173_s3 + $0x18] sm:$0xff] %vm18_vm0, %v95_v63 }

// kernel: cvae_imagenet_forward.21
= control target key start
LH: loop header
LB: loop body
LE: loop exit
PB: predicated region body
PF: predicated region fallthrough
CT: control target
= control target key end

     0   :  { %vm424_vm0 = vcmask 261120   ;;  %s733_s1 = inlined_call_operand.vmem [shape: bf16[512,32], index: 1, kind: input, shape index: {}]   ;;  %s734_s0 = inlined_call_operand.vmem [shape: bf16[32,512], index: 0, kind: input, shape index: {}]   ;;  %s735_s2 = inlined_call_operand.vmem [shape: f32[1,32], index: 2, kind: input, shape index: {}]   ;;  %s736_s3 = inlined_call_operand.vmem [shape: f32[32,32], index: 3, kind: output, shape index: {}]  }
   0x1   :  { %v530_v0 = vld [vmem:[%s733_s1 + $0x78] sm:$0xff]   ;;  %v534_v4 = vld [vmem:[%s733_s1 + $0x70] sm:$0xff]   ;;  %v538_v8 = vld [vmem:[%s733_s1 + $0x68] sm:$0xff]  }
   0x2   :  { %v531_v1 = vld [vmem:[%s733_s1 + $0xf8] sm:$0xff]   ;;  %474 = vmatprep.subr.bf16.mxu0 %v530_v0  ;;  %v535_v5 = vld [vmem:[%s733_s1 + $0xf0] sm:$0xff]   ;;  %v539_v9 = vld [vmem:[%s733_s1 + $0xe8] sm:$0xff]  }
   0x3   :  { %v532_v2 = vld [vmem:[%s733_s1 + $0x38] sm:$0xff]   ;;  %502 = vmatprep.subr.bf16.mxu1 %v531_v1  ;;  %v536_v6 = vld [vmem:[%s733_s1 + $0x30] sm:$0xff]   ;;  %v540_v10 = vld [vmem:[%s733_s1 + $0x28] sm:$0xff]  }
   0x4   :  { %v533_v3 = vld [vmem:[%s733_s1 + $0xb8] sm:$0xff]   ;;  %475 = vmatpush3.bf16.msra.mxu0 %v532_v2  ;;  %v537_v7 = vld [vmem:[%s733_s1 + $0xb0] sm:$0xff]   ;;  %v541_v11 = vld [vmem:[%s733_s1 + $0xa8] sm:$0xff]  }
   0x5   :  { %503 = vmatpush3.bf16.msra.mxu1 %v533_v3  ;;  %476 = vmatprep.subr.bf16.mxu0 %v534_v4  ;;  %v542_v12 = vld [vmem:[%s733_s1 + $0x60] sm:$0xff]   ;;  %v546_v16 = vld [vmem:[%s733_s1 + $0x58] sm:$0xff]   ;;  %v550_v20 = vld [vmem:[%s733_s1 + $0x50] sm:$0xff]  }
   0x6   :  { %504 = vmatprep.subr.bf16.mxu1 %v535_v5  ;;  %v543_v13 = vld [vmem:[%s733_s1 + $0xe0] sm:$0xff]   ;;  %v547_v17 = vld [vmem:[%s733_s1 + $0xd8] sm:$0xff]   ;;  %v551_v21 = vld [vmem:[%s733_s1 + $0xd0] sm:$0xff]  }
   0x7   :  { %v544_v14 = vld [vmem:[%s733_s1 + $0x20] sm:$0xff]   ;;  %v548_v18 = vld [vmem:[%s733_s1 + $0x18] sm:$0xff]   ;;  %v552_v22 = vld [vmem:[%s733_s1 + $0x10] sm:$0xff]  }
   0x8   :  { %477 = vmatpush3.bf16.msra.mxu0 %v536_v6  ;;  %v545_v15 = vld [vmem:[%s733_s1 + $0xa0] sm:$0xff]   ;;  %v549_v19 = vld [vmem:[%s733_s1 + $0x98] sm:$0xff]   ;;  %v553_v23 = vld [vmem:[%s733_s1 + $0x90] sm:$0xff]  }
   0x9   :  { %505 = vmatpush3.bf16.msra.mxu1 %v537_v7  ;;  %478 = vmatprep.subr.bf16.mxu0 %v538_v8  ;;  %v554_v24 = vld [vmem:[%s733_s1 + $0x48] sm:$0xff]   ;;  %v558_v28 = vld [vmem:[%s733_s1 + $0x40] sm:$0xff]  }
   0xa   :  { %506 = vmatprep.subr.bf16.mxu1 %v539_v9  ;;  %v555_v25 = vld [vmem:[%s733_s1 + $0xc8] sm:$0xff]   ;;  %v559_v29 = vld [vmem:[%s733_s1 + $0xc0] sm:$0xff]  }
   0xb   :  { %v556_v26 = vld [vmem:[%s733_s1 + $0x8] sm:$0xff]   ;;  %v560_v30 = vld [vmem:[%s733_s1] sm:$0xff]  }
   0xc   :  { %479 = vmatpush3.bf16.msra.mxu0 %v540_v10  ;;  %v557_v27 = vld [vmem:[%s733_s1 + $0x88] sm:$0xff]   ;;  %v561_v31 = vld [vmem:[%s733_s1 + $0x80] sm:$0xff]  }
   0xd   :  { %507 = vmatpush3.bf16.msra.mxu1 %v541_v11  ;;  %480 = vmatprep.subr.bf16.mxu0 %v542_v12  ;;  %v562_v32 = vld [vmem:[%s734_s0] ss:$16 sps:$4 sm:$0xff]   ;;  %v564_v33 = vld [vmem:[%s734_s0 + $0x4] ss:$16 sps:$4 sm:$0xff]   ;;  %v565_v34 = vld [vmem:[%s734_s0 + $0x8] ss:$16 sps:$4 sm:$0xff]  }
   0xe   :  { %508 = vmatprep.subr.bf16.mxu1 %v543_v13  ;;  %v567_v35 = vld [vmem:[%s734_s0 + $0xc] ss:$16 sps:$4 sm:$0xff]   ;;  %358 = vmatprep.mubr.bf16.mxu0 %v564_v33  ;;  %v568_v36 = vld [vmem:[%s734_s0 + $0x24] ss:$16 sps:$4 sm:$0xff]   ;;  %v572_v38 = vld [vmem:[%s734_s0 + $0x20] ss:$16 sps:$4 sm:$0xff]  }
   0xf   :  { %407 = vmatprep.mubr.bf16.mxu1 %v567_v35  ;;  %v570_v37 = vld [vmem:[%s734_s0 + $0x2c] ss:$16 sps:$4 sm:$0xff]   ;;  %v573_v39 = vld [vmem:[%s734_s0 + $0x28] ss:$16 sps:$4 sm:$0xff]   ;;  %v433_v42 = vld [vmem:[%s735_s2] ss:$0 sm:$0xff] }
  0x10   :  { %481 = vmatpush3.bf16.msra.mxu0 %v544_v14 }
  0x11   :  { %509 = vmatpush3.bf16.msra.mxu1 %v545_v15  ;;  %482 = vmatprep.subr.bf16.mxu0 %v546_v16 }
  0x12   :  { %510 = vmatprep.subr.bf16.mxu1 %v547_v17 }
  0x14   :  { %483 = vmatpush3.bf16.msra.mxu0 %v548_v18 }
  0x15   :  { %511 = vmatpush3.bf16.msra.mxu1 %v549_v19  ;;  %484 = vmatprep.subr.bf16.mxu0 %v550_v20 }
  0x16   :  { %512 = vmatprep.subr.bf16.mxu1 %v551_v21 }
  0x18   :  { %485 = vmatpush3.bf16.msra.mxu0 %v552_v22 }
  0x19   :  { %513 = vmatpush3.bf16.msra.mxu1 %v553_v23  ;;  %486 = vmatprep.subr.bf16.mxu0 %v554_v24 }
  0x1a   :  { %514 = vmatprep.subr.bf16.mxu1 %v555_v25 }
  0x1c   :  { %487 = vmatpush3.bf16.msra.mxu0 %v556_v26 }
  0x1d   :  { %515 = vmatpush3.bf16.msra.mxu1 %v557_v27  ;;  %488 = vmatprep.subr.bf16.mxu0 %v558_v28 }
  0x1e   :  { %516 = vmatprep.subr.bf16.mxu1 %v559_v29 }
  0x20   :  { %489 = vmatpush3.bf16.msra.mxu0 %v560_v30 }
  0x21   :  { %517 = vmatpush3.bf16.msra.mxu1 %v561_v31 }
  0x23   :  { %359 = vmatmul.mubr.bf16.vlgmr.msra.gmra.mxu0 %v562_v32 }
  0x24   :  { %408 = vmatmul.mubr.bf16.vlgmr.msra.gmra.mxu1 %v565_v34  ;;  %366 = vmatprep.mubr.bf16.mxu0 %v568_v36 }
  0x25   :  { %415 = vmatprep.mubr.bf16.mxu1 %v570_v37 }
  0x2b   :  { %367 = vmatmul.mubr.bf16.gmra.mxu0 %v572_v38 }
  0x2c   :  { %416 = vmatmul.mubr.bf16.gmra.mxu1 %v573_v39 }
  0xe3   :  { %v490_v40 = vpop.f32.mrf.mxu0 }
  0xe4   :  { %v518_v41 = vpop.f32.mrf.mxu1 }
  0xe5   :  { %v491_v43 = vpop.f32.mrf.mxu0 }
  0xe6   :  { %v492_v44 = vadd.f32 %v491_v43, %v490_v40  ;;  %v519_v45 = vpop.f32.mrf.mxu1 }
  0xe7   :  { %v493_v46 = vpop.f32.mrf.mxu0  ;;  %v520_v48 = vadd.f32 %v519_v45, %v518_v41 }
  0xe8   :  { %v361_v47 = vadd.f32 %v492_v44, %v433_v42  ;;  %v521_v49 = vpop.f32.mrf.mxu1 }
  0xe9   :  { %v494_v50 = vpop.f32.mrf.mxu0 }
  0xea   :  { %v410_v51 = vadd.f32 %v520_v48, %v361_v47  ;;  %v495_v52 = vadd.f32 %v494_v50, %v493_v46  ;;  %v522_v53 = vpop.f32.mrf.mxu1 }
  0xeb   :  { %v496_v54 = vpop.f32.mrf.mxu0  ;;  %v523_v56 = vadd.f32 %v522_v53, %v521_v49 }
  0xec   :  { %425 = vst.msk [vmem:[%s736_s3] sm:$0xff] %vm424_vm0, %v410_v51  ;;  %v364_v55 = vadd.f32 %v495_v52, %v433_v42  ;;  %v524_v57 = vpop.f32.mrf.mxu1 }
  0xed   :  { %v497_v58 = vpop.f32.mrf.mxu0 }
  0xee   :  { %v413_v59 = vadd.f32 %v523_v56, %v364_v55  ;;  %v498_v60 = vadd.f32 %v497_v58, %v496_v54  ;;  %v525_v61 = vpop.f32.mrf.mxu1 }
  0xef   :  { %v499_v62 = vpop.f32.mrf.mxu0  ;;  %v526_v0 = vadd.f32 %v525_v61, %v524_v57 }
  0xf0   :  { %426 = vst.msk [vmem:[%s736_s3 + $0x8] sm:$0xff] %vm424_vm0, %v413_v59  ;;  %v369_v63 = vadd.f32 %v498_v60, %v433_v42  ;;  %v527_v1 = vpop.f32.mrf.mxu1 }
  0xf1   :  { %v500_v2 = vpop.f32.mrf.mxu0 }
  0xf2   :  { %v418_v3 = vadd.f32 %v526_v0, %v369_v63  ;;  %v501_v4 = vadd.f32 %v500_v2, %v499_v62  ;;  %v528_v5 = vpop.f32.mrf.mxu1 }
  0xf3   :  { %v529_v7 = vadd.f32 %v528_v5, %v527_v1 }
  0xf4   :  { %427 = vst.msk [vmem:[%s736_s3 + $0x10] sm:$0xff] %vm424_vm0, %v418_v3  ;;  %v372_v6 = vadd.f32 %v501_v4, %v433_v42 }
  0xf6   :  { %v421_v8 = vadd.f32 %v529_v7, %v372_v6 }
  0xf8   :  { %428 = vst.msk [vmem:[%s736_s3 + $0x18] sm:$0xff] %vm424_vm0, %v421_v8 }

// kernel: cvae_imagenet_forward.25
= control target key start
LH: loop header
LB: loop body
LE: loop exit
PB: predicated region body
PF: predicated region fallthrough
CT: control target
= control target key end

     0   :  { %vm18_vm0 = vcmask 261120   ;;  %s158_s0 = inlined_call_operand.vmem [shape: f32[32,32], index: 0, kind: input, shape index: {}]   ;;  %s159_s1 = inlined_call_operand.vmem [shape: f32[1,32], index: 1, kind: input, shape index: {}]   ;;  %s160_s2 = inlined_call_operand.vmem [shape: f32[1,32], index: 2, kind: input, shape index: {}]   ;;  %s161_s3 = inlined_call_operand.vmem [shape: f32[32,32], index: 3, kind: output, shape index: {}]  }
   0x1   :  { %v14_v0 = vld [vmem:[%s158_s0] sm:$0xff]  ;;  %v15_v1 = vld [vmem:[%s158_s0 + $0x8] sm:$0xff]  ;;  %v16_v2 = vld [vmem:[%s158_s0 + $0x10] sm:$0xff] }
   0x2   :  { %v17_v3 = vld [vmem:[%s158_s0 + $0x18] sm:$0xff]  ;;  %v19_v4 = vsel %vm18_vm0, %v14_v0, 0.0  ;;  %v20_v5 = vsel %vm18_vm0, %v15_v1, 0.0  ;;  %v22_v6 = vsel %vm18_vm0, %v16_v2, 0.0  ;;  %v92_v42 = vld [vmem:[%s159_s1] ss:$0 sm:$0xff] }
   0x3   :  { %v21_v7 = vadd.f32 %v20_v5, %v19_v4  ;;  %v24_v8 = vsel %vm18_vm0, %v17_v3, 0.0  ;;  %v93_v47 = vld [vmem:[%s160_s2] ss:$0 sm:$0xff] }
   0x5   :  { %v23_v9 = vadd.f32 %v22_v6, %v21_v7 }
   0x7   :  { %v25_v10 = vadd.f32 %v24_v8, %v23_v9 }
   0x9   :  { %v26_v11 = vrot.slane %v25_v10, 4 }
   0xb   :  { %v27_v12 = vadd.f32 %v26_v11, %v25_v10 }
   0xd   :  { %v28_v13 = vrot.slane %v27_v12, 2 }
   0xf   :  { %v29_v14 = vadd.f32 %v28_v13, %v27_v12 }
  0x11   :  { %v30_v15 = vrot.slane %v29_v14, 1 }
  0x13   :  { %v31_v16 = vadd.f32 %v30_v15, %v29_v14 }
  0x15   :  { %v33_v17 = vmul.f32 0.03125, %v31_v16 }
  0x17   :  { %v34_v18 = vsub.f32 %v14_v0, %v33_v17  ;;  %v35_v19 = vsub.f32 %v15_v1, %v33_v17  ;;  %v36_v20 = vsub.f32 %v16_v2, %v33_v17  ;;  %v37_v21 = vsub.f32 %v17_v3, %v33_v17 }
  0x19   :  { %v38_v22 = vmul.f32 %v34_v18, %v34_v18  ;;  %v39_v23 = vmul.f32 %v35_v19, %v35_v19  ;;  %v40_v24 = vmul.f32 %v36_v20, %v36_v20  ;;  %v41_v25 = vmul.f32 %v37_v21, %v37_v21 }
  0x1b   :  { %v42_v26 = vsel %vm18_vm0, %v38_v22, 0.0  ;;  %v43_v27 = vsel %vm18_vm0, %v39_v23, 0.0  ;;  %v45_v28 = vsel %vm18_vm0, %v40_v24, 0.0  ;;  %v47_v30 = vsel %vm18_vm0, %v41_v25, 0.0 }
  0x1c   :  { %v44_v29 = vadd.f32 %v43_v27, %v42_v26 }
  0x1e   :  { %v46_v31 = vadd.f32 %v45_v28, %v44_v29 }
  0x20   :  { %v48_v32 = vadd.f32 %v47_v30, %v46_v31 }
  0x22   :  { %v49_v33 = vrot.slane %v48_v32, 4 }
  0x24   :  { %v50_v34 = vadd.f32 %v49_v33, %v48_v32 }
  0x26   :  { %v51_v35 = vrot.slane %v50_v34, 2 }
  0x28   :  { %v52_v36 = vadd.f32 %v51_v35, %v50_v34 }
  0x2a   :  { %v53_v37 = vrot.slane %v52_v36, 1 }
  0x2c   :  { %v54_v38 = vadd.f32 %v53_v37, %v52_v36 }
  0x2e   :  { %v55_v39 = vmul.f32 0.03125, %v54_v38 }
  0x30   :  { %v56_v40 = vadd.f32 1e-05, %v55_v39 }
  0x32   :  { %94 = vrsqrt.f32 %v56_v40 }
  0x3f   :  { %v95_v41 = vpop.eup %94 }
  0x40   :  { %v58_v43 = vmul.f32 %v95_v41, %v34_v18  ;;  %v59_v44 = vmul.f32 %v95_v41, %v35_v19  ;;  %v60_v45 = vmul.f32 %v95_v41, %v36_v20  ;;  %v61_v46 = vmul.f32 %v95_v41, %v37_v21 }
  0x42   :  { %v69_v48 = vmul.f32 %v92_v42, %v58_v43  ;;  %v70_v49 = vmul.f32 %v92_v42, %v59_v44  ;;  %v71_v50 = vmul.f32 %v92_v42, %v60_v45  ;;  %v72_v51 = vmul.f32 %v92_v42, %v61_v46 }
  0x44   :  { %v80_v52 = vadd.f32 %v93_v47, %v69_v48  ;;  %v81_v53 = vadd.f32 %v93_v47, %v70_v49  ;;  %v82_v54 = vadd.f32 %v93_v47, %v71_v50  ;;  %v83_v55 = vadd.f32 %v93_v47, %v72_v51 }
  0x46   :  { %84 = vst.msk [vmem:[%s161_s3] sm:$0xff] %vm18_vm0, %v80_v52  ;;  %85 = vst.msk [vmem:[%s161_s3 + $0x8] sm:$0xff] %vm18_vm0, %v81_v53 }
  0x47   :  { %86 = vst.msk [vmem:[%s161_s3 + $0x10] sm:$0xff] %vm18_vm0, %v82_v54  ;;  %87 = vst.msk [vmem:[%s161_s3 + $0x18] sm:$0xff] %vm18_vm0, %v83_v55 }

// kernel: cvae_imagenet_forward.24
= control target key start
LH: loop header
LB: loop body
LE: loop exit
PB: predicated region body
PF: predicated region fallthrough
CT: control target
= control target key end

     0   :  { %vm55_vm0 = vcmask 261120   ;;  %s220_s1 = inlined_call_operand.vmem [shape: bf16[32,32], index: 1, kind: input, shape index: {}]   ;;  %s221_s0 = inlined_call_operand.vmem [shape: bf16[32,32], index: 0, kind: input, shape index: {}]   ;;  %s222_s2 = inlined_call_operand.vmem [shape: f32[1,32], index: 2, kind: input, shape index: {}]   ;;  %s223_s3 = inlined_call_operand.vmem [shape: f32[32,32], index: 3, kind: input, shape index: {}]   ;;  %s224_s4 = inlined_call_operand.vmem [shape: f32[32,32], index: 4, kind: output, shape index: {}]  }
   0x1   :  { %v146_v0 = vld [vmem:[%s220_s1 + $0x8] sm:$0xff]   ;;  %v147_v1 = vld [vmem:[%s220_s1] sm:$0xff]   ;;  %v113_v6 = vld [vmem:[%s223_s3 + $0x10] sm:$0xff] }
   0x2   :  { %138 = vmatprep.subr.bf16.mxu0 %v146_v0  ;;  %v148_v2 = vld [vmem:[%s221_s0] sm:$0xff]   ;;  %v149_v3 = vld [vmem:[%s221_s0 + $0x8] sm:$0xff]   ;;  %v114_v13 = vld [vmem:[%s223_s3 + $0x18] sm:$0xff] }
   0x3   :  { %139 = vmatpush3.bf16.msra.mxu0 %v146_v0  ;;  %142 = vmatprep.mubr.msk.bf16.mxu0 %vm55_vm0, %v148_v2  ;;  %v127_v4 = vld [vmem:[%s222_s2] ss:$0 sm:$0xff]  ;;  %v112_v17 = vld [vmem:[%s223_s3 + $0x8] sm:$0xff] }
   0x4   :  { %140 = vmatprep.subr.bf16.mxu0 %v147_v1  ;;  %v111_v9 = vld [vmem:[%s223_s3] sm:$0xff] }
   0x7   :  { %141 = vmatpush3.bf16.msra.mxu0 %v147_v1 }
   0xa   :  { %143 = vmatmul.mubr.msk.bf16.vlgmr.msra.gmra.mxu0 %vm55_vm0, %v149_v3 }
  0xca   :  { %v144_v5 = vpop.f32.mrf.mxu0 }
  0xcb   :  { %v105_v7 = vadd.f32 %v144_v5, %v127_v4 }
  0xcc   :  { %v96_v8 = vpop.f32.mrf.mxu0 }
  0xcd   :  { %v117_v10 = vadd.f32 %v113_v6, %v105_v7  ;;  %v97_v11 = vadd.f32 %v127_v4, %v96_v8 }
  0xce   :  { %v145_v12 = vpop.f32.mrf.mxu0 }
  0xcf   :  { %121 = vst.msk [vmem:[%s224_s4 + $0x10] sm:$0xff] %vm55_vm0, %v117_v10  ;;  %v115_v14 = vadd.f32 %v111_v9, %v97_v11  ;;  %v108_v15 = vadd.f32 %v145_v12, %v127_v4 }
  0xd0   :  { %v99_v16 = vpop.f32.mrf.mxu0 }
  0xd1   :  { %119 = vst.msk [vmem:[%s224_s4] sm:$0xff] %vm55_vm0, %v115_v14  ;;  %v118_v18 = vadd.f32 %v114_v13, %v108_v15  ;;  %v100_v19 = vadd.f32 %v127_v4, %v99_v16 }
  0xd3   :  { %122 = vst.msk [vmem:[%s224_s4 + $0x18] sm:$0xff] %vm55_vm0, %v118_v18  ;;  %v116_v20 = vadd.f32 %v112_v17, %v100_v19 }
  0xd5   :  { %120 = vst.msk [vmem:[%s224_s4 + $0x8] sm:$0xff] %vm55_vm0, %v116_v20 }

// kernel: cvae_imagenet_forward.23
= control target key start
LH: loop header
LB: loop body
LE: loop exit
PB: predicated region body
PF: predicated region fallthrough
CT: control target
= control target key end

     0   :  { %vm204_vm0 = vcmask 261120   ;;  %s535_s1 = inlined_call_operand.vmem [shape: bf16[288,32], index: 1, kind: input, shape index: {}]   ;;  %s536_s0 = inlined_call_operand.vmem [shape: bf16[32,288], index: 0, kind: input, shape index: {}]   ;;  %s537_s2 = inlined_call_operand.vmem [shape: f32[1,32], index: 2, kind: input, shape index: {}]   ;;  %s538_s3 = inlined_call_operand.vmem [shape: f32[32,32], index: 3, kind: output, shape index: {}]  }
   0x1   :  { %v396_v0 = vld [vmem:[%s535_s1 + $0x78] sm:$0xff]   ;;  %v398_v2 = vld [vmem:[%s535_s1 + $0x70] sm:$0xff]   ;;  %v400_v4 = vld [vmem:[%s535_s1 + $0x68] sm:$0xff]  }
   0x2   :  { %v397_v1 = vld [vmem:[%s535_s1 + $0x38] sm:$0xff]   ;;  %356 = vmatprep.subr.bf16.mxu0 %v396_v0  ;;  %v399_v3 = vld [vmem:[%s535_s1 + $0x30] sm:$0xff]   ;;  %v401_v5 = vld [vmem:[%s535_s1 + $0x28] sm:$0xff]  }
   0x3   :  { %357 = vmatpush3.bf16.msra.mxu0 %v397_v1  ;;  %v402_v6 = vld [vmem:[%s535_s1 + $0x60] sm:$0xff]   ;;  %v404_v8 = vld [vmem:[%s535_s1 + $0x58] sm:$0xff]   ;;  %v411_v10 = vld [vmem:[%s535_s1 + $0x88] sm:$0xff]  }
   0x4   :  { %358 = vmatprep.subr.bf16.mxu0 %v398_v2  ;;  %v403_v7 = vld [vmem:[%s535_s1 + $0x20] sm:$0xff]   ;;  %v405_v9 = vld [vmem:[%s535_s1 + $0x18] sm:$0xff]   ;;  %v406_v11 = vld [vmem:[%s535_s1 + $0x50] sm:$0xff]   ;;  %388 = vmatprep.subr.bf16.mxu1 %v411_v10 }
   0x5   :  { %v407_v12 = vld [vmem:[%s535_s1 + $0x10] sm:$0xff]   ;;  %v408_v13 = vld [vmem:[%s535_s1 + $0x48] sm:$0xff]   ;;  %389 = vmatpush3.bf16.msra.mxu1 %v411_v10  ;;  %v416_v15 = vld [vmem:[%s535_s1 + $0x80] sm:$0xff]  }
   0x6   :  { %v415_v14 = vld [vmem:[%s536_s0 + $0x4] ss:$12 sps:$4 sm:$0xff]   ;;  %v417_v16 = vld [vmem:[%s536_s0 + $0x8] ss:$12 sps:$4 sm:$0xff]   ;;  %390 = vmatprep.subr.bf16.mxu1 %v416_v15  ;;  %v418_v17 = vld [vmem:[%s536_s0 + $0x20] ss:$12 sps:$4 sm:$0xff]  }
   0x7   :  { %359 = vmatpush3.bf16.msra.mxu0 %v399_v3  ;;  %243 = vmatprep.mubr.bf16.mxu0 %v415_v14  ;;  %v409_v18 = vld [vmem:[%s535_s1 + $0x8] sm:$0xff]   ;;  %v410_v19 = vld [vmem:[%s535_s1 + $0x40] sm:$0xff]  }
   0x8   :  { %360 = vmatprep.subr.bf16.mxu0 %v400_v4  ;;  %392 = vmatprep.mubr.msk.bf16.mxu1 %vm204_vm0, %v417_v16  ;;  %v412_v20 = vld [vmem:[%s535_s1] sm:$0xff]   ;;  %v419_v22 = vld [vmem:[%s536_s0 + $0x1c] ss:$12 sps:$4 sm:$0xff]  }
   0x9   :  { %391 = vmatpush3.bf16.msra.mxu1 %v416_v15  ;;  %v413_v21 = vld [vmem:[%s536_s0] ss:$12 sps:$4 sm:$0xff]   ;;  %v421_v23 = vld [vmem:[%s536_s0 + $0x18] ss:$12 sps:$4 sm:$0xff]  }
   0xa   :  { %v329_v28 = vld [vmem:[%s537_s2] ss:$0 sm:$0xff] }
   0xb   :  { %361 = vmatpush3.bf16.msra.mxu0 %v401_v5 }
   0xc   :  { %362 = vmatprep.subr.bf16.mxu0 %v402_v6  ;;  %393 = vmatmul.mubr.msk.bf16.vlgmr.msra.gmra.mxu1 %vm204_vm0, %v418_v17 }
   0xf   :  { %363 = vmatpush3.bf16.msra.mxu0 %v403_v7 }
  0x10   :  { %364 = vmatprep.subr.bf16.mxu0 %v404_v8 }
  0x13   :  { %365 = vmatpush3.bf16.msra.mxu0 %v405_v9 }
  0x14   :  { %366 = vmatprep.subr.bf16.mxu0 %v406_v11 }
  0x17   :  { %367 = vmatpush3.bf16.msra.mxu0 %v407_v12 }
  0x18   :  { %368 = vmatprep.subr.bf16.mxu0 %v408_v13 }
  0x1b   :  { %369 = vmatpush3.bf16.msra.mxu0 %v409_v18 }
  0x1c   :  { %370 = vmatprep.subr.bf16.mxu0 %v410_v19 }
  0x1f   :  { %371 = vmatpush3.bf16.msra.mxu0 %v412_v20 }
  0x22   :  { %244 = vmatmul.mubr.bf16.vlgmr.msra.gmra.mxu0 %v413_v21 }
  0x23   :  { %251 = vmatprep.mubr.bf16.mxu0 %v419_v22 }
  0x2a   :  { %252 = vmatmul.mubr.bf16.gmra.mxu0 %v421_v23 }
  0xcc   :  { %v394_v24 = vpop.f32.mrf.mxu1 }
  0xce   :  { %v294_v26 = vpop.f32.mrf.mxu1 }
  0xd0   :  { %v395_v31 = vpop.f32.mrf.mxu1 }
  0xd2   :  { %v297_v37 = vpop.f32.mrf.mxu1 }
  0xe2   :  { %v372_v25 = vpop.f32.mrf.mxu0 }
  0xe4   :  { %v373_v27 = vpop.f32.mrf.mxu0 }
  0xe5   :  { %v374_v29 = vadd.f32 %v373_v27, %v372_v25 }
  0xe6   :  { %v375_v30 = vpop.f32.mrf.mxu0 }
  0xe7   :  { %v246_v32 = vadd.f32 %v374_v29, %v329_v28 }
  0xe8   :  { %v376_v33 = vpop.f32.mrf.mxu0 }
  0xe9   :  { %v377_v34 = vadd.f32 %v376_v33, %v375_v30  ;;  %v295_v35 = vadd.f32 %v294_v26, %v246_v32 }
  0xea   :  { %v378_v36 = vpop.f32.mrf.mxu0 }
  0xeb   :  { %vm309_vm1 = vcmp.ge.f32.partialorder %v295_v35, 0.0  ;;  %v313_v38 = vmul.f32 0.01, %v295_v35  ;;  %v249_v39 = vadd.f32 %v377_v34, %v329_v28 }
  0xec   :  { %v379_v40 = vpop.f32.mrf.mxu0 }
  0xed   :  { %v317_v41 = vsel %vm309_vm1, %v295_v35, %v313_v38  ;;  %v380_v42 = vadd.f32 %v379_v40, %v378_v36  ;;  %v298_v43 = vadd.f32 %v297_v37, %v249_v39 }
  0xee   :  { %321 = vst.msk [vmem:[%s538_s3] sm:$0xff] %vm204_vm0, %v317_v41  ;;  %v381_v44 = vpop.f32.mrf.mxu0 }
  0xef   :  { %v254_v45 = vadd.f32 %v380_v42, %v329_v28  ;;  %vm310_vm2 = vcmp.ge.f32.partialorder %v298_v43, 0.0  ;;  %v314_v46 = vmul.f32 0.01, %v298_v43 }
  0xf0   :  { %v382_v47 = vpop.f32.mrf.mxu0 }
  0xf1   :  { %v303_v48 = vadd.f32 %v394_v24, %v254_v45  ;;  %v318_v49 = vsel %vm310_vm2, %v298_v43, %v314_v46  ;;  %v383_v50 = vadd.f32 %v382_v47, %v381_v44 }
  0xf2   :  { %322 = vst.msk [vmem:[%s538_s3 + $0x8] sm:$0xff] %vm204_vm0, %v318_v49 }
  0xf3   :  { %vm311_vm3 = vcmp.ge.f32.partialorder %v303_v48, 0.0  ;;  %v315_v51 = vmul.f32 0.01, %v303_v48  ;;  %v257_v52 = vadd.f32 %v383_v50, %v329_v28 }
  0xf5   :  { %v319_v53 = vsel %vm311_vm3, %v303_v48, %v315_v51  ;;  %v306_v54 = vadd.f32 %v395_v31, %v257_v52 }
  0xf6   :  { %323 = vst.msk [vmem:[%s538_s3 + $0x10] sm:$0xff] %vm204_vm0, %v319_v53 }
  0xf7   :  { %vm312_vm4 = vcmp.ge.f32.partialorder %v306_v54, 0.0  ;;  %v316_v55 = vmul.f32 0.01, %v306_v54 }
  0xf9   :  { %v320_v56 = vsel %vm312_vm4, %v306_v54, %v316_v55 }
  0xfa   :  { %324 = vst.msk [vmem:[%s538_s3 + $0x18] sm:$0xff] %vm204_vm0, %v320_v56 }

// kernel: tile.13
= control target key start
LH: loop header
LB: loop body
LE: loop exit
PB: predicated region body
PF: predicated region fallthrough
CT: control target
= control target key end

     0   :  { %s22_s0 = inlined_call_operand.vmem [shape: f32[32], index: 0, kind: input, shape index: {}]   ;;  %s23_s1 = inlined_call_operand.vmem [shape: f32[4,32], index: 1, kind: output, shape index: {}]  }
   0x1   :  { %v4_v0 = vld [vmem:[%s22_s0] ss:$0 sm:$0xff] }
   0x2   :  { %5 = vst [vmem:[%s23_s1] sm:$0xf] %v4_v0 }

// kernel: tile.14
= control target key start
LH: loop header
LB: loop body
LE: loop exit
PB: predicated region body
PF: predicated region fallthrough
CT: control target
= control target key end

     0   :  { %vm8_vm0 = vcmask 261120   ;;  %s40_s8 = smov 32   ;;  %s41_s9 = smov 64   ;;  %vm14_vm1 = vcmask 1048320   ;;  %vm20_vm2 = vcmask 785920   ;;  %vm26_vm3 = vcmask 523520   ;;  %s58_s0 = inlined_call_operand.vmem [shape: f32[4,32], index: 0, kind: input, shape index: {}]   ;;  %s59_s1 = inlined_call_operand.vmem [shape: f32[1,128], index: 1, kind: output, shape index: {}]  }
   0x1   :  { %v5_v0 = vld [vmem:[%s58_s0] sm:$0xf]  ;;  %s39_s0 = smov 96  }
   0x2   :  { %6 = vst [vmem:[#allocation1] sm:$0xf] %v5_v0 }
   0x9   :  { %v11_v1 = vld [vmem:[#allocation1 + $0x3] sm:$0x1]   ;;  %v23_v2 = vld [vmem:[#allocation1 + $0x1] sm:$0x1]   ;;  %v7_v3 = vld [vmem:[#allocation1] sm:$0x1]  }
   0xa   :  { %12 = vrot.lane.b32.xlu0 %v11_v1, %s39_s0  ;;  %24 = vrot.lane.b32.xlu1 %v23_v2, %s40_s8  ;;  %v17_v4 = vld [vmem:[#allocation1 + $0x2] sm:$0x1]   ;;  %9 = vst.msk [vmem:[#allocation0] sm:$0x1] %vm8_vm0, %v7_v3  }
   0xe   :  { %18 = vrot.lane.b32.xlu0 %v17_v4, %s41_s9 }
  0x7c   :  { %v13_v5 = vpop.permute.xlu0 %12   ;;  %v25_v6 = vpop.permute.xlu1 %24  }
  0x7d   :  { %15 = vst.msk [vmem:[#allocation0] sm:$0x1] %vm14_vm1, %v13_v5  }
  0x80   :  { %v19_v7 = vpop.permute.xlu0 %18  }
  0x81   :  { %21 = vst.msk [vmem:[#allocation0] sm:$0x1] %vm20_vm2, %v19_v7  }
  0x82   :  { %27 = vst.msk [vmem:[#allocation0] sm:$0x1] %vm26_vm3, %v25_v6  }
  0x89   :  { %v32_v8 = vld [vmem:[#allocation0] sm:$0x1] }
  0x8a   :  { %35 = vst [vmem:[%s59_s1] sm:$0x1] %v32_v8 }

// kernel: cvae_imagenet_forward.34
= control target key start
LH: loop header
LB: loop body
LE: loop exit
PB: predicated region body
PF: predicated region fallthrough
CT: control target
= control target key end

     0   :  { %vm204_vm0 = vcmask 261120   ;;  %s517_s1 = inlined_call_operand.vmem [shape: bf16[288,128], index: 1, kind: input, shape index: {}]   ;;  %s518_s0 = inlined_call_operand.vmem [shape: bf16[32,288], index: 0, kind: input, shape index: {}]   ;;  %s519_s2 = inlined_call_operand.vmem [shape: f32[1,128], index: 2, kind: input, shape index: {}]   ;;  %s520_s3 = inlined_call_operand.vmem [shape: f32[32,128], index: 3, kind: output, shape index: {}]  }
   0x1   :  { %v384_v0 = vld [vmem:[%s517_s1 + $0x78] sm:$0xff]   ;;  %v386_v2 = vld [vmem:[%s517_s1 + $0x70] sm:$0xff]   ;;  %v388_v4 = vld [vmem:[%s517_s1 + $0x68] sm:$0xff]  }
   0x2   :  { %v385_v1 = vld [vmem:[%s517_s1 + $0x38] sm:$0xff]   ;;  %344 = vmatprep.subr.bf16.mxu0 %v384_v0  ;;  %v387_v3 = vld [vmem:[%s517_s1 + $0x30] sm:$0xff]   ;;  %v389_v5 = vld [vmem:[%s517_s1 + $0x28] sm:$0xff]  }
   0x3   :  { %345 = vmatpush3.bf16.msra.mxu0 %v385_v1  ;;  %v390_v6 = vld [vmem:[%s517_s1 + $0x60] sm:$0xff]   ;;  %v392_v8 = vld [vmem:[%s517_s1 + $0x58] sm:$0xff]   ;;  %v399_v10 = vld [vmem:[%s517_s1 + $0x88] sm:$0xff]  }
   0x4   :  { %346 = vmatprep.subr.bf16.mxu0 %v386_v2  ;;  %v391_v7 = vld [vmem:[%s517_s1 + $0x20] sm:$0xff]   ;;  %v393_v9 = vld [vmem:[%s517_s1 + $0x18] sm:$0xff]   ;;  %v394_v11 = vld [vmem:[%s517_s1 + $0x50] sm:$0xff]   ;;  %376 = vmatprep.subr.bf16.mxu1 %v399_v10 }
   0x5   :  { %v395_v12 = vld [vmem:[%s517_s1 + $0x10] sm:$0xff]   ;;  %v396_v13 = vld [vmem:[%s517_s1 + $0x48] sm:$0xff]   ;;  %377 = vmatpush3.bf16.msra.mxu1 %v399_v10  ;;  %v404_v15 = vld [vmem:[%s517_s1 + $0x80] sm:$0xff]  }
   0x6   :  { %v403_v14 = vld [vmem:[%s518_s0 + $0x4] ss:$12 sps:$4 sm:$0xff]   ;;  %v405_v16 = vld [vmem:[%s518_s0 + $0x8] ss:$12 sps:$4 sm:$0xff]   ;;  %378 = vmatprep.subr.bf16.mxu1 %v404_v15  ;;  %v406_v17 = vld [vmem:[%s518_s0 + $0x20] ss:$12 sps:$4 sm:$0xff]  }
   0x7   :  { %347 = vmatpush3.bf16.msra.mxu0 %v387_v3  ;;  %243 = vmatprep.mubr.bf16.mxu0 %v403_v14  ;;  %v397_v18 = vld [vmem:[%s517_s1 + $0x8] sm:$0xff]   ;;  %v398_v19 = vld [vmem:[%s517_s1 + $0x40] sm:$0xff]  }
   0x8   :  { %348 = vmatprep.subr.bf16.mxu0 %v388_v4  ;;  %380 = vmatprep.mubr.msk.bf16.mxu1 %vm204_vm0, %v405_v16  ;;  %v400_v20 = vld [vmem:[%s517_s1] sm:$0xff]   ;;  %v407_v22 = vld [vmem:[%s518_s0 + $0x1c] ss:$12 sps:$4 sm:$0xff]  }
   0x9   :  { %379 = vmatpush3.bf16.msra.mxu1 %v404_v15  ;;  %v401_v21 = vld [vmem:[%s518_s0] ss:$12 sps:$4 sm:$0xff]   ;;  %v409_v23 = vld [vmem:[%s518_s0 + $0x18] ss:$12 sps:$4 sm:$0xff]  }
   0xa   :  { %v317_v28 = vld [vmem:[%s519_s2] ss:$0 sm:$0xff] }
   0xb   :  { %349 = vmatpush3.bf16.msra.mxu0 %v389_v5 }
   0xc   :  { %350 = vmatprep.subr.bf16.mxu0 %v390_v6  ;;  %381 = vmatmul.mubr.msk.bf16.vlgmr.msra.gmra.mxu1 %vm204_vm0, %v406_v17 }
   0xf   :  { %351 = vmatpush3.bf16.msra.mxu0 %v391_v7 }
  0x10   :  { %352 = vmatprep.subr.bf16.mxu0 %v392_v8 }
  0x13   :  { %353 = vmatpush3.bf16.msra.mxu0 %v393_v9 }
  0x14   :  { %354 = vmatprep.subr.bf16.mxu0 %v394_v11 }
  0x17   :  { %355 = vmatpush3.bf16.msra.mxu0 %v395_v12 }
  0x18   :  { %356 = vmatprep.subr.bf16.mxu0 %v396_v13 }
  0x1b   :  { %357 = vmatpush3.bf16.msra.mxu0 %v397_v18 }
  0x1c   :  { %358 = vmatprep.subr.bf16.mxu0 %v398_v19 }
  0x1f   :  { %359 = vmatpush3.bf16.msra.mxu0 %v400_v20 }
  0x22   :  { %244 = vmatmul.mubr.bf16.vlgmr.msra.gmra.mxu0 %v401_v21 }
  0x23   :  { %251 = vmatprep.mubr.bf16.mxu0 %v407_v22 }
  0x2a   :  { %252 = vmatmul.mubr.bf16.gmra.mxu0 %v409_v23 }
  0xcc   :  { %v382_v24 = vpop.f32.mrf.mxu1 }
  0xce   :  { %v294_v26 = vpop.f32.mrf.mxu1 }
  0xd0   :  { %v383_v31 = vpop.f32.mrf.mxu1 }
  0xd2   :  { %v297_v37 = vpop.f32.mrf.mxu1 }
  0xe2   :  { %v360_v25 = vpop.f32.mrf.mxu0 }
  0xe4   :  { %v361_v27 = vpop.f32.mrf.mxu0 }
  0xe5   :  { %v362_v29 = vadd.f32 %v361_v27, %v360_v25 }
  0xe6   :  { %v363_v30 = vpop.f32.mrf.mxu0 }
  0xe7   :  { %v246_v32 = vadd.f32 %v362_v29, %v317_v28 }
  0xe8   :  { %v364_v33 = vpop.f32.mrf.mxu0 }
  0xe9   :  { %v365_v34 = vadd.f32 %v364_v33, %v363_v30  ;;  %v295_v35 = vadd.f32 %v294_v26, %v246_v32 }
  0xea   :  { %v366_v36 = vpop.f32.mrf.mxu0 }
  0xeb   :  { %309 = vst [vmem:[%s520_s3] sm:$0xff] %v295_v35  ;;  %v249_v38 = vadd.f32 %v365_v34, %v317_v28 }
  0xec   :  { %v367_v39 = vpop.f32.mrf.mxu0 }
  0xed   :  { %v368_v40 = vadd.f32 %v367_v39, %v366_v36  ;;  %v298_v41 = vadd.f32 %v297_v37, %v249_v38 }
  0xee   :  { %v369_v42 = vpop.f32.mrf.mxu0 }
  0xef   :  { %v254_v43 = vadd.f32 %v368_v40, %v317_v28  ;;  %310 = vst [vmem:[%s520_s3 + $0x8] sm:$0xff] %v298_v41 }
  0xf0   :  { %v370_v44 = vpop.f32.mrf.mxu0 }
  0xf1   :  { %v303_v45 = vadd.f32 %v382_v24, %v254_v43  ;;  %v371_v46 = vadd.f32 %v370_v44, %v369_v42 }
  0xf3   :  { %311 = vst [vmem:[%s520_s3 + $0x10] sm:$0xff] %v303_v45  ;;  %v257_v47 = vadd.f32 %v371_v46, %v317_v28 }
  0xf5   :  { %v306_v48 = vadd.f32 %v383_v31, %v257_v47 }
  0xf7   :  { %312 = vst [vmem:[%s520_s3 + $0x18] sm:$0xff] %v306_v48 }

// kernel: tile.18
= control target key start
LH: loop header
LB: loop body
LE: loop exit
PB: predicated region body
PF: predicated region fallthrough
CT: control target
= control target key end

     0   :  { %s22_s0 = inlined_call_operand.vmem [shape: f32[3], index: 0, kind: input, shape index: {}]   ;;  %s23_s1 = inlined_call_operand.vmem [shape: f32[4,3], index: 1, kind: output, shape index: {}]  }
   0x1   :  { %v4_v0 = vld [vmem:[%s22_s0] ss:$0 sm:$0xff] }
   0x2   :  { %5 = vst [vmem:[%s23_s1] sm:$0xf] %v4_v0 }

// kernel: tile.19
= control target key start
LH: loop header
LB: loop body
LE: loop exit
PB: predicated region body
PF: predicated region fallthrough
CT: control target
= control target key end

     0   :  { %vm8_vm0 = vcmask 23552   ;;  %s40_s8 = smov 3   ;;  %s41_s9 = smov 6   ;;  %vm14_vm1 = vcmask 97352   ;;  %vm20_vm2 = vcmask 72752   ;;  %vm26_vm3 = vcmask 48152   ;;  %s58_s0 = inlined_call_operand.vmem [shape: f32[4,3], index: 0, kind: input, shape index: {}]   ;;  %s59_s1 = inlined_call_operand.vmem [shape: f32[1,12], index: 1, kind: output, shape index: {}]  }
   0x1   :  { %v5_v0 = vld [vmem:[%s58_s0] sm:$0xf]  ;;  %s39_s0 = smov 9  }
   0x2   :  { %6 = vst [vmem:[#allocation1] sm:$0xf] %v5_v0 }
   0x9   :  { %v11_v1 = vld [vmem:[#allocation1 + $0x3] sm:$0x1]   ;;  %v23_v2 = vld [vmem:[#allocation1 + $0x1] sm:$0x1]   ;;  %v7_v3 = vld [vmem:[#allocation1] sm:$0x1]  }
   0xa   :  { %12 = vrot.lane.b32.xlu0 %v11_v1, %s39_s0  ;;  %24 = vrot.lane.b32.xlu1 %v23_v2, %s40_s8  ;;  %v17_v4 = vld [vmem:[#allocation1 + $0x2] sm:$0x1]   ;;  %9 = vst.msk [vmem:[#allocation0] sm:$0x1] %vm8_vm0, %v7_v3  }
   0xe   :  { %18 = vrot.lane.b32.xlu0 %v17_v4, %s41_s9 }
  0x7c   :  { %v13_v5 = vpop.permute.xlu0 %12   ;;  %v25_v6 = vpop.permute.xlu1 %24  }
  0x7d   :  { %15 = vst.msk [vmem:[#allocation0] sm:$0x1] %vm14_vm1, %v13_v5  }
  0x80   :  { %v19_v7 = vpop.permute.xlu0 %18  }
  0x81   :  { %21 = vst.msk [vmem:[#allocation0] sm:$0x1] %vm20_vm2, %v19_v7  }
  0x82   :  { %27 = vst.msk [vmem:[#allocation0] sm:$0x1] %vm26_vm3, %v25_v6  }
  0x89   :  { %v32_v8 = vld [vmem:[#allocation0] sm:$0x1] }
  0x8a   :  { %35 = vst [vmem:[%s59_s1] sm:$0x1] %v32_v8 }

// kernel: cvae_imagenet_forward.36
= control target key start
LH: loop header
LB: loop body
LE: loop exit
PB: predicated region body
PF: predicated region fallthrough
CT: control target
= control target key end

     0   :  { %vm318_vm0 = vcmask 261120   ;;  %vm537_vm1 = vcmask 97280   ;;  %s1023_s1 = inlined_call_operand.vmem [shape: bf16[288,12], index: 1, kind: input, shape index: {}]   ;;  %s1024_s0 = inlined_call_operand.vmem [shape: bf16[128,288], index: 0, kind: input, shape index: {}]   ;;  %s1025_s2 = inlined_call_operand.vmem [shape: f32[1,12], index: 2, kind: input, shape index: {}]   ;;  %s1026_s3 = inlined_call_operand.vmem [shape: f32[128,12], index: 3, kind: output, shape index: {}]  }
   0x1   :  { %v719_v0 = vld [vmem:[%s1023_s1 + $0x78] sm:$0xff]   ;;  %v721_v2 = vld [vmem:[%s1023_s1 + $0x70] sm:$0xff]   ;;  %v723_v4 = vld [vmem:[%s1023_s1 + $0x68] sm:$0xff]  }
   0x2   :  { %v720_v1 = vld [vmem:[%s1023_s1 + $0x38] sm:$0xff]   ;;  %609 = vmatprep.subr.bf16.mxu0 %v719_v0  ;;  %703 = vmatprep.subr.bf16.mxu1 %v719_v0  ;;  %v722_v3 = vld [vmem:[%s1023_s1 + $0x30] sm:$0xff]   ;;  %v724_v5 = vld [vmem:[%s1023_s1 + $0x28] sm:$0xff]  }
   0x3   :  { %610 = vmatpush3.bf16.msra.mxu0 %v720_v1  ;;  %711 = vmatpush3.bf16.msra.mxu1 %v720_v1  ;;  %v725_v6 = vld [vmem:[%s1023_s1 + $0x60] sm:$0xff]   ;;  %v727_v8 = vld [vmem:[%s1023_s1 + $0x58] sm:$0xff]   ;;  %v729_v10 = vld [vmem:[%s1023_s1 + $0x50] sm:$0xff]  }
   0x4   :  { %611 = vmatprep.subr.bf16.mxu0 %v721_v2  ;;  %704 = vmatprep.subr.bf16.mxu1 %v721_v2  ;;  %v726_v7 = vld [vmem:[%s1023_s1 + $0x20] sm:$0xff]   ;;  %v728_v9 = vld [vmem:[%s1023_s1 + $0x18] sm:$0xff]   ;;  %v730_v13 = vld [vmem:[%s1023_s1 + $0x10] sm:$0xff]  }
   0x5   :  { %v737_v11 = vld [vmem:[%s1024_s0 + $0x4] ss:$12 sps:$4 sm:$0xff]   ;;  %v740_v12 = vld [vmem:[%s1024_s0 + $0x94] ss:$12 sps:$4 sm:$0xff]   ;;  %v731_v14 = vld [vmem:[%s1023_s1 + $0x48] sm:$0xff]  }
   0x6   :  { %375 = vmatprep.mubr.bf16.mxu0 %v737_v11  ;;  %423 = vmatprep.mubr.bf16.mxu1 %v740_v12  ;;  %v732_v15 = vld [vmem:[%s1023_s1 + $0x8] sm:$0xff]   ;;  %v733_v16 = vld [vmem:[%s1023_s1 + $0x40] sm:$0xff]   ;;  %v738_v20 = vld [vmem:[%s1024_s0 + $0x90] ss:$12 sps:$4 sm:$0xff]  }
   0x7   :  { %612 = vmatpush3.bf16.msra.mxu0 %v722_v3  ;;  %712 = vmatpush3.bf16.msra.mxu1 %v722_v3  ;;  %v734_v17 = vld [vmem:[%s1023_s1] sm:$0xff]   ;;  %v741_v19 = vld [vmem:[%s1023_s1 + $0x88] sm:$0xff]   ;;  %v752_v28 = vld [vmem:[%s1024_s0 + $0x30] ss:$12 sps:$4 sm:$0xff]  }
   0x8   :  { %613 = vmatprep.subr.bf16.mxu0 %v723_v4  ;;  %705 = vmatprep.subr.bf16.mxu1 %v723_v4  ;;  %v735_v18 = vld [vmem:[%s1024_s0] ss:$12 sps:$4 sm:$0xff]   ;;  %v742_v21 = vld [vmem:[%s1024_s0 + $0x1c] ss:$12 sps:$4 sm:$0xff]   ;;  %v746_v24 = vld [vmem:[%s1024_s0 + $0x18] ss:$12 sps:$4 sm:$0xff]  }
   0x9   :  { %v744_v22 = vld [vmem:[%s1024_s0 + $0xac] ss:$12 sps:$4 sm:$0xff]   ;;  %v748_v23 = vld [vmem:[%s1023_s1 + $0x80] sm:$0xff]   ;;  %v747_v25 = vld [vmem:[%s1024_s0 + $0xa8] ss:$12 sps:$4 sm:$0xff]  }
   0xa   :  { %v749_v26 = vld [vmem:[%s1024_s0 + $0x34] ss:$12 sps:$4 sm:$0xff]   ;;  %v754_v30 = vld [vmem:[%s1024_s0 + $0x4c] ss:$12 sps:$4 sm:$0xff]   ;;  %v758_v33 = vld [vmem:[%s1024_s0 + $0x50] ss:$12 sps:$4 sm:$0xff]  }
   0xb   :  { %614 = vmatpush3.bf16.msra.mxu0 %v724_v5  ;;  %713 = vmatpush3.bf16.msra.mxu1 %v724_v5  ;;  %v751_v27 = vld [vmem:[%s1024_s0 + $0x8] ss:$12 sps:$4 sm:$0xff]   ;;  %v753_v29 = vld [vmem:[%s1024_s0 + $0x20] ss:$12 sps:$4 sm:$0xff]   ;;  %v756_v31 = vld [vmem:[%s1024_s0 + $0x38] ss:$12 sps:$4 sm:$0xff]  }
   0xc   :  { %615 = vmatprep.subr.bf16.mxu0 %v725_v6  ;;  %706 = vmatprep.subr.bf16.mxu1 %v725_v6  ;;  %v757_v32 = vld [vmem:[%s1024_s0 + $0x48] ss:$12 sps:$4 sm:$0xff]   ;;  %v759_v34 = vld [vmem:[%s1024_s0 + $0x64] ss:$12 sps:$4 sm:$0xff]   ;;  %v762_v36 = vld [vmem:[%s1024_s0 + $0x60] ss:$12 sps:$4 sm:$0xff]  }
   0xd   :  { %v761_v35 = vld [vmem:[%s1024_s0 + $0x68] ss:$12 sps:$4 sm:$0xff]   ;;  %v763_v37 = vld [vmem:[%s1024_s0 + $0x80] ss:$12 sps:$4 sm:$0xff]   ;;  %v766_v39 = vld [vmem:[%s1024_s0 + $0x98] ss:$12 sps:$4 sm:$0xff]  }
   0xe   :  { %v764_v38 = vld [vmem:[%s1024_s0 + $0x7c] ss:$12 sps:$4 sm:$0xff]   ;;  %v767_v40 = vld [vmem:[%s1024_s0 + $0x78] ss:$12 sps:$4 sm:$0xff]   ;;  %v936_v60 = vld [vmem:[%s1025_s2] ss:$0 sm:$0xff] }
   0xf   :  { %616 = vmatpush3.bf16.msra.mxu0 %v726_v7  ;;  %714 = vmatpush3.bf16.msra.mxu1 %v726_v7  ;;  %v768_v41 = vld [vmem:[%s1024_s0 + $0xb0] ss:$12 sps:$4 sm:$0xff]  }
  0x10   :  { %617 = vmatprep.subr.bf16.mxu0 %v727_v8  ;;  %707 = vmatprep.subr.bf16.mxu1 %v727_v8 }
  0x13   :  { %618 = vmatpush3.bf16.msra.mxu0 %v728_v9  ;;  %715 = vmatpush3.bf16.msra.mxu1 %v728_v9 }
  0x14   :  { %619 = vmatprep.subr.bf16.mxu0 %v729_v10  ;;  %708 = vmatprep.subr.bf16.mxu1 %v729_v10 }
  0x17   :  { %620 = vmatpush3.bf16.msra.mxu0 %v730_v13  ;;  %716 = vmatpush3.bf16.msra.mxu1 %v730_v13 }
  0x18   :  { %621 = vmatprep.subr.bf16.mxu0 %v731_v14  ;;  %709 = vmatprep.subr.bf16.mxu1 %v731_v14 }
  0x1b   :  { %622 = vmatpush3.bf16.msra.mxu0 %v732_v15  ;;  %717 = vmatpush3.bf16.msra.mxu1 %v732_v15 }
  0x1c   :  { %623 = vmatprep.subr.bf16.mxu0 %v733_v16  ;;  %710 = vmatprep.subr.bf16.mxu1 %v733_v16 }
  0x1f   :  { %624 = vmatpush3.bf16.msra.mxu0 %v734_v17  ;;  %718 = vmatpush3.bf16.msra.mxu1 %v734_v17 }
  0x20   :  { %683 = vmatprep.subr.bf16.mxu1 %v741_v19 }
  0x22   :  { %376 = vmatmul.mubr.bf16.vlgmr.msra.gmra.mxu0 %v735_v18  ;;  %424 = vmatmul.mubr.bf16.vlgmr.msra.gmra.mxu1 %v738_v20 }
  0x23   :  { %684 = vmatpush3.bf16.msra.mxu1 %v741_v19  ;;  %383 = vmatprep.mubr.bf16.mxu0 %v742_v21 }
  0x24   :  { %431 = vmatprep.mubr.bf16.mxu1 %v744_v22  ;;  %685 = vmatprep.subr.bf16.mxu1 %v748_v23 }
  0x27   :  { %686 = vmatpush3.bf16.msra.mxu1 %v748_v23 }
  0x2a   :  { %384 = vmatmul.mubr.bf16.gmra.mxu0 %v746_v24  ;;  %432 = vmatmul.mubr.bf16.gmra.mxu1 %v747_v25 }
  0x2b   :  { %391 = vmatprep.mubr.bf16.mxu0 %v749_v26  ;;  %687 = vmatprep.mubr.msk.bf16.mxu1 %vm318_vm0, %v751_v27 }
  0x32   :  { %392 = vmatmul.mubr.bf16.gmra.mxu0 %v752_v28  ;;  %688 = vmatmul.mubr.msk.bf16.vlgmr.msra.gmra.mxu1 %vm318_vm0, %v753_v29 }
  0x33   :  { %399 = vmatprep.mubr.bf16.mxu0 %v754_v30  ;;  %691 = vmatprep.mubr.msk.bf16.mxu1 %vm318_vm0, %v756_v31 }
  0x3a   :  { %400 = vmatmul.mubr.bf16.gmra.mxu0 %v757_v32  ;;  %692 = vmatmul.mubr.msk.bf16.gmra.mxu1 %vm318_vm0, %v758_v33 }
  0x3b   :  { %407 = vmatprep.mubr.bf16.mxu0 %v759_v34  ;;  %695 = vmatprep.mubr.msk.bf16.mxu1 %vm318_vm0, %v761_v35 }
  0x42   :  { %408 = vmatmul.mubr.bf16.gmra.mxu0 %v762_v36  ;;  %696 = vmatmul.mubr.msk.bf16.gmra.mxu1 %vm318_vm0, %v763_v37 }
  0x43   :  { %415 = vmatprep.mubr.bf16.mxu0 %v764_v38  ;;  %699 = vmatprep.mubr.msk.bf16.mxu1 %vm318_vm0, %v766_v39 }
  0x4a   :  { %416 = vmatmul.mubr.bf16.gmra.mxu0 %v767_v40  ;;  %700 = vmatmul.mubr.msk.bf16.gmra.mxu1 %vm318_vm0, %v768_v41 }
  0xe2   :  { %v625_v42 = vpop.f32.mrf.mxu0  ;;  %v923_v43 = vpop.f32.mrf.mxu1 }
  0xe4   :  { %v626_v44 = vpop.f32.mrf.mxu0  ;;  %v925_v45 = vpop.f32.mrf.mxu1 }
  0xe5   :  { %v627_v57 = vadd.f32 %v626_v44, %v625_v42  ;;  %v663_v44 = vadd.f32 %v925_v45, %v923_v43 }
  0xe6   :  { %v628_v46 = vpop.f32.mrf.mxu0  ;;  %v927_v47 = vpop.f32.mrf.mxu1 }
  0xe7   :  { %v378_v3 = vadd.f32 %v627_v57, %v936_v60 }
  0xe8   :  { %v629_v48 = vpop.f32.mrf.mxu0  ;;  %v929_v49 = vpop.f32.mrf.mxu1 }
  0xe9   :  { %v630_v1 = vadd.f32 %v629_v48, %v628_v46  ;;  %v666_v43 = vadd.f32 %v929_v49, %v927_v47 }
  0xea   :  { %v631_v50 = vpop.f32.mrf.mxu0  ;;  %v667_v51 = vpop.f32.mrf.mxu1 }
  0xeb   :  { %v381_v12 = vadd.f32 %v630_v1, %v936_v60 }
  0xec   :  { %v632_v52 = vpop.f32.mrf.mxu0  ;;  %v668_v53 = vpop.f32.mrf.mxu1 }
  0xed   :  { %v633_v54 = vadd.f32 %v632_v52, %v631_v50  ;;  %v669_v38 = vadd.f32 %v668_v53, %v667_v51 }
  0xee   :  { %v634_v55 = vpop.f32.mrf.mxu0  ;;  %v931_v56 = vpop.f32.mrf.mxu1 }
  0xef   :  { %v386_v62 = vadd.f32 %v633_v54, %v936_v60  ;;  %v434_v53 = vadd.f32 %v669_v38, %v936_v60 }
  0xf0   :  { %v635_v58 = vpop.f32.mrf.mxu0  ;;  %v671_v59 = vpop.f32.mrf.mxu1 }
  0xf1   :  { %v636_v61 = vadd.f32 %v635_v58, %v634_v55  ;;  %v672_v52 = vadd.f32 %v671_v59, %v931_v56 }
  0xf2   :  { %v637_v63 = vpop.f32.mrf.mxu0  ;;  %v689_v0 = vpop.f32.mrf.mxu1 }
  0xf3   :  { %v483_v2 = vadd.f32 %v689_v0, %v386_v62  ;;  %v389_v7 = vadd.f32 %v636_v61, %v936_v60  ;;  %v426_v61 = vadd.f32 %v663_v44, %v936_v60  ;;  %v437_v49 = vadd.f32 %v672_v52, %v936_v60 }
  0xf4   :  { %v638_v4 = vpop.f32.mrf.mxu0  ;;  %v474_v5 = vpop.f32.mrf.mxu1 }
  0xf5   :  { %540 = vst.msk [vmem:[%s1026_s3 + $0x10] sm:$0xff] %vm537_vm1, %v483_v2  ;;  %v475_v6 = vadd.f32 %v474_v5, %v378_v3  ;;  %v639_v10 = vadd.f32 %v638_v4, %v637_v63  ;;  %v429_v4 = vadd.f32 %v666_v43, %v936_v60 }
  0xf6   :  { %v640_v8 = vpop.f32.mrf.mxu0  ;;  %v690_v9 = vpop.f32.mrf.mxu1 }
  0xf7   :  { %538 = vst.msk [vmem:[%s1026_s3] sm:$0xff] %vm537_vm1, %v475_v6  ;;  %v486_v11 = vadd.f32 %v690_v9, %v389_v7  ;;  %v394_v19 = vadd.f32 %v639_v10, %v936_v60 }
  0xf8   :  { %v641_v13 = vpop.f32.mrf.mxu0  ;;  %v477_v14 = vpop.f32.mrf.mxu1 }
  0xf9   :  { %541 = vst.msk [vmem:[%s1026_s3 + $0x18] sm:$0xff] %vm537_vm1, %v486_v11  ;;  %v478_v15 = vadd.f32 %v477_v14, %v381_v12  ;;  %v642_v18 = vadd.f32 %v641_v13, %v640_v8 }
  0xfa   :  { %v643_v16 = vpop.f32.mrf.mxu0  ;;  %v693_v17 = vpop.f32.mrf.mxu1 }
  0xfb   :  { %539 = vst.msk [vmem:[%s1026_s3 + $0x8] sm:$0xff] %vm537_vm1, %v478_v15  ;;  %v397_v27 = vadd.f32 %v642_v18, %v936_v60 }
  0xfc   :  { %v644_v20 = vpop.f32.mrf.mxu0  ;;  %v490_v21 = vpop.f32.mrf.mxu1 }
  0xfd   :  { %v645_v22 = vadd.f32 %v644_v20, %v643_v16  ;;  %v491_v23 = vadd.f32 %v490_v21, %v394_v19 }
  0xfe   :  { %v646_v24 = vpop.f32.mrf.mxu0  ;;  %v694_v25 = vpop.f32.mrf.mxu1 }
  0xff   :  { %v402_v26 = vadd.f32 %v645_v22, %v936_v60  ;;  %542 = vst.msk [vmem:[%s1026_s3 + $0x20] sm:$0xff] %vm537_vm1, %v491_v23 }
 0x100   :  { %v647_v28 = vpop.f32.mrf.mxu0  ;;  %v493_v29 = vpop.f32.mrf.mxu1 }
 0x101   :  { %v499_v30 = vadd.f32 %v693_v17, %v402_v26  ;;  %v648_v31 = vadd.f32 %v647_v28, %v646_v24  ;;  %v494_v32 = vadd.f32 %v493_v29, %v397_v27 }
 0x102   :  { %v649_v33 = vpop.f32.mrf.mxu0  ;;  %v697_v34 = vpop.f32.mrf.mxu1 }
 0x103   :  { %544 = vst.msk [vmem:[%s1026_s3 + $0x30] sm:$0xff] %vm537_vm1, %v499_v30  ;;  %v405_v35 = vadd.f32 %v648_v31, %v936_v60  ;;  %543 = vst.msk [vmem:[%s1026_s3 + $0x28] sm:$0xff] %vm537_vm1, %v494_v32 }
 0x104   :  { %v650_v36 = vpop.f32.mrf.mxu0  ;;  %v506_v37 = vpop.f32.mrf.mxu1 }
 0x105   :  { %v502_v39 = vadd.f32 %v694_v25, %v405_v35  ;;  %v651_v40 = vadd.f32 %v650_v36, %v649_v33 }
 0x106   :  { %v652_v41 = vpop.f32.mrf.mxu0  ;;  %v698_v42 = vpop.f32.mrf.mxu1 }
 0x107   :  { %545 = vst.msk [vmem:[%s1026_s3 + $0x38] sm:$0xff] %vm537_vm1, %v502_v39  ;;  %v410_v46 = vadd.f32 %v651_v40, %v936_v60 }
 0x108   :  { %v653_v48 = vpop.f32.mrf.mxu0  ;;  %v509_v50 = vpop.f32.mrf.mxu1 }
 0x109   :  { %v507_v54 = vadd.f32 %v506_v37, %v410_v46  ;;  %v654_v51 = vadd.f32 %v653_v48, %v652_v41 }
 0x10a   :  { %v655_v55 = vpop.f32.mrf.mxu0  ;;  %v701_v57 = vpop.f32.mrf.mxu1 }
 0x10b   :  { %546 = vst.msk [vmem:[%s1026_s3 + $0x40] sm:$0xff] %vm537_vm1, %v507_v54  ;;  %v413_v45 = vadd.f32 %v654_v51, %v936_v60  ;;  %v531_v58 = vadd.f32 %v701_v57, %v434_v53 }
 0x10c   :  { %v656_v56 = vpop.f32.mrf.mxu0  ;;  %v522_v59 = vpop.f32.mrf.mxu1 }
 0x10d   :  { %v510_v62 = vadd.f32 %v509_v50, %v413_v45  ;;  %552 = vst.msk [vmem:[%s1026_s3 + $0x70] sm:$0xff] %vm537_vm1, %v531_v58  ;;  %v657_v63 = vadd.f32 %v656_v56, %v655_v55  ;;  %v523_v47 = vadd.f32 %v522_v59, %v426_v61 }
 0x10e   :  { %v658_v0 = vpop.f32.mrf.mxu0  ;;  %v702_v1 = vpop.f32.mrf.mxu1 }
 0x10f   :  { %547 = vst.msk [vmem:[%s1026_s3 + $0x48] sm:$0xff] %vm537_vm1, %v510_v62  ;;  %v418_v2 = vadd.f32 %v657_v63, %v936_v60  ;;  %550 = vst.msk [vmem:[%s1026_s3 + $0x60] sm:$0xff] %vm537_vm1, %v523_v47  ;;  %v534_v3 = vadd.f32 %v702_v1, %v437_v49 }
 0x110   :  { %v659_v5 = vpop.f32.mrf.mxu0  ;;  %v525_v6 = vpop.f32.mrf.mxu1 }
 0x111   :  { %v515_v7 = vadd.f32 %v697_v34, %v418_v2  ;;  %553 = vst.msk [vmem:[%s1026_s3 + $0x78] sm:$0xff] %vm537_vm1, %v534_v3  ;;  %v660_v8 = vadd.f32 %v659_v5, %v658_v0  ;;  %v526_v9 = vadd.f32 %v525_v6, %v429_v4 }
 0x113   :  { %548 = vst.msk [vmem:[%s1026_s3 + $0x50] sm:$0xff] %vm537_vm1, %v515_v7  ;;  %v421_v10 = vadd.f32 %v660_v8, %v936_v60  ;;  %551 = vst.msk [vmem:[%s1026_s3 + $0x68] sm:$0xff] %vm537_vm1, %v526_v9 }
 0x115   :  { %v518_v11 = vadd.f32 %v698_v42, %v421_v10 }
 0x117   :  { %549 = vst.msk [vmem:[%s1026_s3 + $0x58] sm:$0xff] %vm537_vm1, %v518_v11 }

// kernel: cvae_imagenet_forward.37
= control target key start
LH: loop header
LB: loop body
LE: loop exit
PB: predicated region body
PF: predicated region fallthrough
CT: control target
= control target key end

     0   :  { %vm142_vm0 = vcmask 23552   ;;  %s2390_s0 = inlined_call_operand.vmem [shape: f32[512,3], index: 0, kind: input, shape index: {}]   ;;  %s2391_s1 = inlined_call_operand.vmem [shape: f32[1,3], index: 1, kind: input, shape index: {}]   ;;  %s2392_s2 = inlined_call_operand.vmem [shape: f32[1,3], index: 2, kind: input, shape index: {}]   ;;  %s2393_s3 = inlined_call_operand.vmem [shape: f32[512,3], index: 3, kind: output, shape index: {}]  }
   0x1   :  { %v14_v0 = vld [vmem:[%s2390_s0] sm:$0xff]  ;;  %v15_v1 = vld [vmem:[%s2390_s0 + $0x8] sm:$0xff]  ;;  %v16_v2 = vld [vmem:[%s2390_s0 + $0x10] sm:$0xff] }
   0x2   :  { %v17_v3 = vld [vmem:[%s2390_s0 + $0x18] sm:$0xff]  ;;  %818 = vtanh.f32 %v14_v0  ;;  %v18_v4 = vld [vmem:[%s2390_s0 + $0x20] sm:$0xff]  ;;  %v19_v5 = vld [vmem:[%s2390_s0 + $0x28] sm:$0xff] }
   0x3   :  { %820 = vtanh.f32 %v15_v1  ;;  %v20_v6 = vld [vmem:[%s2390_s0 + $0x30] sm:$0xff]  ;;  %v21_v7 = vld [vmem:[%s2390_s0 + $0x38] sm:$0xff]  ;;  %v22_v8 = vld [vmem:[%s2390_s0 + $0x40] sm:$0xff] }
   0x4   :  { %822 = vtanh.f32 %v16_v2  ;;  %v23_v9 = vld [vmem:[%s2390_s0 + $0x48] sm:$0xff]  ;;  %v24_v10 = vld [vmem:[%s2390_s0 + $0x50] sm:$0xff]  ;;  %v25_v13 = vld [vmem:[%s2390_s0 + $0x58] sm:$0xff] }
   0x5   :  { %824 = vtanh.f32 %v17_v3  ;;  %v26_v18 = vld [vmem:[%s2390_s0 + $0x60] sm:$0xff]  ;;  %v27_v24 = vld [vmem:[%s2390_s0 + $0x68] sm:$0xff]  ;;  %v28_v28 = vld [vmem:[%s2390_s0 + $0x70] sm:$0xff] }
   0x6   :  { %826 = vtanh.f32 %v18_v4  ;;  %v29_v32 = vld [vmem:[%s2390_s0 + $0x78] sm:$0xff]  ;;  %v30_v36 = vld [vmem:[%s2390_s0 + $0x80] sm:$0xff]  ;;  %v31_v40 = vld [vmem:[%s2390_s0 + $0x88] sm:$0xff] }
   0x7   :  { %828 = vtanh.f32 %v19_v5  ;;  %v32_v44 = vld [vmem:[%s2390_s0 + $0x90] sm:$0xff]  ;;  %v33_v48 = vld [vmem:[%s2390_s0 + $0x98] sm:$0xff]  ;;  %v34_v52 = vld [vmem:[%s2390_s0 + $0xa0] sm:$0xff] }
   0x8   :  { %830 = vtanh.f32 %v20_v6  ;;  %v35_v56 = vld [vmem:[%s2390_s0 + $0xa8] sm:$0xff]  ;;  %v36_v60 = vld [vmem:[%s2390_s0 + $0xb0] sm:$0xff]  ;;  %v37_v0 = vld [vmem:[%s2390_s0 + $0xb8] sm:$0xff] }
   0x9   :  { %832 = vtanh.f32 %v21_v7  ;;  %v38_v4 = vld [vmem:[%s2390_s0 + $0xc0] sm:$0xff] }
   0xa   :  { %834 = vtanh.f32 %v22_v8  ;;  %v39_v8 = vld [vmem:[%s2390_s0 + $0xc8] sm:$0xff] }
   0xb   :  { %836 = vtanh.f32 %v23_v9 }
   0xc   :  { %838 = vtanh.f32 %v24_v10 }
   0xd   :  { %840 = vtanh.f32 %v25_v13 }
   0xe   :  { %842 = vtanh.f32 %v26_v18 }
   0xf   :  { %v1001_v11 = vpop.eup %818  ;;  %844 = vtanh.f32 %v27_v24 }
  0x10   :  { %v1003_v12 = vpop.eup %820  ;;  %v143_v14 = vsel %vm142_vm0, %v1001_v11, 0.0  ;;  %846 = vtanh.f32 %v28_v28 }
  0x11   :  { %v1010_v15 = vpop.eup %822  ;;  %v144_v16 = vsel %vm142_vm0, %v1003_v12, 0.0  ;;  %848 = vtanh.f32 %v29_v32  ;;  %v43_v32 = vld [vmem:[%s2390_s0 + $0xe8] sm:$0xff] }
  0x12   :  { %v1014_v17 = vpop.eup %824  ;;  %v145_v19 = vadd.f32 %v144_v16, %v143_v14  ;;  %v146_v20 = vsel %vm142_vm0, %v1010_v15, 0.0  ;;  %850 = vtanh.f32 %v30_v36  ;;  %v40_v14 = vld [vmem:[%s2390_s0 + $0xd0] sm:$0xff] }
  0x13   :  { %v1021_v21 = vpop.eup %826  ;;  %v148_v22 = vsel %vm142_vm0, %v1014_v17, 0.0  ;;  %852 = vtanh.f32 %v31_v40 }
  0x14   :  { %v1025_v23 = vpop.eup %828  ;;  %v147_v25 = vadd.f32 %v146_v20, %v145_v19  ;;  %v150_v26 = vsel %vm142_vm0, %v1021_v21, 0.0  ;;  %854 = vtanh.f32 %v32_v44  ;;  %v41_v20 = vld [vmem:[%s2390_s0 + $0xd8] sm:$0xff] }
  0x15   :  { %v1032_v27 = vpop.eup %830  ;;  %v152_v30 = vsel %vm142_vm0, %v1025_v23, 0.0  ;;  %856 = vtanh.f32 %v33_v48  ;;  %v46_v48 = vld [vmem:[%s2390_s0 + $0x100] sm:$0xff] }
  0x16   :  { %v149_v29 = vadd.f32 %v148_v22, %v147_v25  ;;  %v1039_v31 = vpop.eup %832  ;;  %v154_v34 = vsel %vm142_vm0, %v1032_v27, 0.0  ;;  %858 = vtanh.f32 %v34_v52 }
  0x17   :  { %v1046_v35 = vpop.eup %834  ;;  %v156_v38 = vsel %vm142_vm0, %v1039_v31, 0.0  ;;  %860 = vtanh.f32 %v35_v56 }
  0x18   :  { %v151_v33 = vadd.f32 %v150_v26, %v149_v29  ;;  %v1053_v39 = vpop.eup %836  ;;  %v158_v42 = vsel %vm142_vm0, %v1046_v35, 0.0  ;;  %862 = vtanh.f32 %v36_v60  ;;  %v42_v26 = vld [vmem:[%s2390_s0 + $0xe0] sm:$0xff] }
  0x19   :  { %v1060_v43 = vpop.eup %838  ;;  %v160_v46 = vsel %vm142_vm0, %v1053_v39, 0.0  ;;  %864 = vtanh.f32 %v37_v0  ;;  %v49_v0 = vld [vmem:[%s2390_s0 + $0x118] sm:$0xff] }
  0x1a   :  { %v153_v37 = vadd.f32 %v152_v30, %v151_v33  ;;  %v1067_v47 = vpop.eup %840  ;;  %v162_v50 = vsel %vm142_vm0, %v1060_v43, 0.0  ;;  %866 = vtanh.f32 %v38_v4 }
  0x1b   :  { %v1074_v51 = vpop.eup %842  ;;  %v164_v54 = vsel %vm142_vm0, %v1067_v47, 0.0  ;;  %868 = vtanh.f32 %v39_v8 }
  0x1c   :  { %v155_v41 = vadd.f32 %v154_v34, %v153_v37  ;;  %v1081_v55 = vpop.eup %844  ;;  %v166_v58 = vsel %vm142_vm0, %v1074_v51, 0.0  ;;  %870 = vtanh.f32 %v40_v14  ;;  %v44_v37 = vld [vmem:[%s2390_s0 + $0xf0] sm:$0xff] }
  0x1d   :  { %v1088_v59 = vpop.eup %846  ;;  %v168_v62 = vsel %vm142_vm0, %v1081_v55, 0.0  ;;  %872 = vtanh.f32 %v41_v20  ;;  %v52_v20 = vld [vmem:[%s2390_s0 + $0x130] sm:$0xff] }
  0x1e   :  { %v157_v45 = vadd.f32 %v156_v38, %v155_v41  ;;  %v1095_v63 = vpop.eup %848  ;;  %v170_v2 = vsel %vm142_vm0, %v1088_v59, 0.0  ;;  %874 = vtanh.f32 %v42_v26 }
  0x1f   :  { %v1102_v3 = vpop.eup %850  ;;  %v172_v6 = vsel %vm142_vm0, %v1095_v63, 0.0  ;;  %876 = vtanh.f32 %v43_v32 }
  0x20   :  { %v159_v49 = vadd.f32 %v158_v42, %v157_v45  ;;  %v1109_v7 = vpop.eup %852  ;;  %v174_v10 = vsel %vm142_vm0, %v1102_v3, 0.0  ;;  %v45_v42 = vld [vmem:[%s2390_s0 + $0xf8] sm:$0xff]  ;;  %878 = vtanh.f32 %v44_v37 }
  0x21   :  { %v1116_v13 = vpop.eup %854  ;;  %v176_v18 = vsel %vm142_vm0, %v1109_v7, 0.0  ;;  %880 = vtanh.f32 %v45_v42  ;;  %v55_v42 = vld [vmem:[%s2390_s0 + $0x148] sm:$0xff] }
  0x22   :  { %v161_v53 = vadd.f32 %v160_v46, %v159_v49  ;;  %v1123_v19 = vpop.eup %856  ;;  %v178_v24 = vsel %vm142_vm0, %v1116_v13, 0.0  ;;  %882 = vtanh.f32 %v46_v48 }
  0x23   :  { %v1130_v25 = vpop.eup %858  ;;  %v180_v29 = vsel %vm142_vm0, %v1123_v19, 0.0 }
  0x24   :  { %v163_v57 = vadd.f32 %v162_v50, %v161_v53  ;;  %v1137_v30 = vpop.eup %860  ;;  %v182_v34 = vsel %vm142_vm0, %v1130_v25, 0.0  ;;  %v47_v53 = vld [vmem:[%s2390_s0 + $0x108] sm:$0xff] }
  0x25   :  { %v1144_v36 = vpop.eup %862  ;;  %v184_v40 = vsel %vm142_vm0, %v1137_v30, 0.0  ;;  %884 = vtanh.f32 %v47_v53 }
  0x26   :  { %v165_v61 = vadd.f32 %v164_v54, %v163_v57  ;;  %v1151_v41 = vpop.eup %864  ;;  %v186_v45 = vsel %vm142_vm0, %v1144_v36, 0.0 }
  0x27   :  { %v1158_v46 = vpop.eup %866  ;;  %v188_v50 = vsel %vm142_vm0, %v1151_v41, 0.0 }
  0x28   :  { %v167_v1 = vadd.f32 %v166_v58, %v165_v61  ;;  %v1165_v52 = vpop.eup %868  ;;  %v190_v56 = vsel %vm142_vm0, %v1158_v46, 0.0  ;;  %v48_v58 = vld [vmem:[%s2390_s0 + $0x110] sm:$0xff] }
  0x29   :  { %v1172_v57 = vpop.eup %870  ;;  %v192_v61 = vsel %vm142_vm0, %v1165_v52, 0.0  ;;  %886 = vtanh.f32 %v48_v58 }
  0x2a   :  { %v169_v5 = vadd.f32 %v168_v62, %v167_v1  ;;  %v1179_v62 = vpop.eup %872  ;;  %888 = vtanh.f32 %v49_v0  ;;  %v58_v0 = vld [vmem:[%s2390_s0 + $0x160] sm:$0xff] }
  0x2b   :  { %v1186_v4 = vpop.eup %874  ;;  %v196_v8 = vsel %vm142_vm0, %v1179_v62, 0.0 }
  0x2c   :  { %v171_v9 = vadd.f32 %v170_v2, %v169_v5  ;;  %v194_v2 = vsel %vm142_vm0, %v1172_v57, 0.0  ;;  %v50_v5 = vld [vmem:[%s2390_s0 + $0x120] sm:$0xff] }
  0x2d   :  { %890 = vtanh.f32 %v50_v5 }
  0x2e   :  { %v173_v16 = vadd.f32 %v172_v6, %v171_v9  ;;  %v1193_v9 = vpop.eup %876 }
  0x30   :  { %v175_v22 = vadd.f32 %v174_v10, %v173_v16  ;;  %v51_v10 = vld [vmem:[%s2390_s0 + $0x128] sm:$0xff]  ;;  %v198_v16 = vsel %vm142_vm0, %v1186_v4, 0.0 }
  0x31   :  { %892 = vtanh.f32 %v51_v10 }
  0x32   :  { %v177_v28 = vadd.f32 %v176_v18, %v175_v22  ;;  %v1200_v18 = vpop.eup %878  ;;  %894 = vtanh.f32 %v52_v20 }
  0x33   :  { %v1207_v26 = vpop.eup %880  ;;  %v202_v32 = vsel %vm142_vm0, %v1200_v18, 0.0 }
  0x34   :  { %v179_v33 = vadd.f32 %v178_v24, %v177_v28  ;;  %v200_v24 = vsel %vm142_vm0, %v1193_v9, 0.0  ;;  %v53_v28 = vld [vmem:[%s2390_s0 + $0x138] sm:$0xff] }
  0x35   :  { %896 = vtanh.f32 %v53_v28  ;;  %v61_v28 = vld [vmem:[%s2390_s0 + $0x178] sm:$0xff] }
  0x36   :  { %v181_v38 = vadd.f32 %v180_v29, %v179_v33  ;;  %v1214_v33 = vpop.eup %882 }
  0x38   :  { %v183_v44 = vadd.f32 %v182_v34, %v181_v38  ;;  %v54_v34 = vld [vmem:[%s2390_s0 + $0x140] sm:$0xff]  ;;  %v204_v38 = vsel %vm142_vm0, %v1207_v26, 0.0 }
  0x39   :  { %898 = vtanh.f32 %v54_v34 }
  0x3a   :  { %v185_v49 = vadd.f32 %v184_v40, %v183_v44  ;;  %v1221_v40 = vpop.eup %884  ;;  %900 = vtanh.f32 %v55_v42 }
  0x3b   :  { %v1228_v48 = vpop.eup %886  ;;  %v208_v53 = vsel %vm142_vm0, %v1221_v40, 0.0 }
  0x3c   :  { %v187_v54 = vadd.f32 %v186_v45, %v185_v49  ;;  %v206_v45 = vsel %vm142_vm0, %v1214_v33, 0.0  ;;  %v56_v49 = vld [vmem:[%s2390_s0 + $0x150] sm:$0xff] }
  0x3d   :  { %902 = vtanh.f32 %v56_v49 }
  0x3e   :  { %v189_v60 = vadd.f32 %v188_v50, %v187_v54  ;;  %v1235_v54 = vpop.eup %888 }
  0x40   :  { %v191_v1 = vadd.f32 %v190_v56, %v189_v60  ;;  %v57_v56 = vld [vmem:[%s2390_s0 + $0x158] sm:$0xff]  ;;  %v210_v60 = vsel %vm142_vm0, %v1228_v48, 0.0 }
  0x41   :  { %904 = vtanh.f32 %v57_v56  ;;  %v64_v56 = vld [vmem:[%s2390_s0 + $0x190] sm:$0xff] }
  0x42   :  { %v193_v6 = vadd.f32 %v192_v61, %v191_v1  ;;  %v1242_v61 = vpop.eup %890  ;;  %906 = vtanh.f32 %v58_v0 }
  0x43   :  { %v1249_v5 = vpop.eup %892  ;;  %v214_v10 = vsel %vm142_vm0, %v1242_v61, 0.0 }
  0x44   :  { %v195_v14 = vadd.f32 %v194_v2, %v193_v6  ;;  %v212_v2 = vsel %vm142_vm0, %v1235_v54, 0.0  ;;  %v59_v6 = vld [vmem:[%s2390_s0 + $0x168] sm:$0xff] }
  0x45   :  { %908 = vtanh.f32 %v59_v6 }
  0x46   :  { %v197_v22 = vadd.f32 %v196_v8, %v195_v14  ;;  %v1256_v14 = vpop.eup %894 }
  0x48   :  { %v199_v29 = vadd.f32 %v198_v16, %v197_v22  ;;  %v60_v16 = vld [vmem:[%s2390_s0 + $0x170] sm:$0xff]  ;;  %v216_v22 = vsel %vm142_vm0, %v1249_v5, 0.0 }
  0x49   :  { %910 = vtanh.f32 %v60_v16 }
  0x4a   :  { %v201_v37 = vadd.f32 %v200_v24, %v199_v29  ;;  %v1263_v24 = vpop.eup %896  ;;  %912 = vtanh.f32 %v61_v28  ;;  %v67_v28 = vld [vmem:[%s2390_s0 + $0x1a8] sm:$0xff] }
  0x4b   :  { %v1270_v34 = vpop.eup %898  ;;  %v220_v42 = vsel %vm142_vm0, %v1263_v24, 0.0 }
  0x4c   :  { %v203_v44 = vadd.f32 %v202_v32, %v201_v37  ;;  %v218_v32 = vsel %vm142_vm0, %v1256_v14, 0.0  ;;  %v62_v37 = vld [vmem:[%s2390_s0 + $0x180] sm:$0xff] }
  0x4d   :  { %914 = vtanh.f32 %v62_v37 }
  0x4e   :  { %v205_v50 = vadd.f32 %v204_v38, %v203_v44  ;;  %v1277_v44 = vpop.eup %900 }
  0x50   :  { %v207_v58 = vadd.f32 %v206_v45, %v205_v50  ;;  %v63_v45 = vld [vmem:[%s2390_s0 + $0x188] sm:$0xff]  ;;  %v222_v50 = vsel %vm142_vm0, %v1270_v34, 0.0 }
  0x51   :  { %916 = vtanh.f32 %v63_v45 }
  0x52   :  { %v209_v1 = vadd.f32 %v208_v53, %v207_v58  ;;  %v1284_v53 = vpop.eup %902  ;;  %918 = vtanh.f32 %v64_v56 }
  0x53   :  { %v1291_v0 = vpop.eup %904  ;;  %v226_v6 = vsel %vm142_vm0, %v1284_v53, 0.0 }
  0x54   :  { %v211_v8 = vadd.f32 %v210_v60, %v209_v1  ;;  %v224_v60 = vsel %vm142_vm0, %v1277_v44, 0.0  ;;  %v65_v1 = vld [vmem:[%s2390_s0 + $0x198] sm:$0xff] }
  0x55   :  { %920 = vtanh.f32 %v65_v1  ;;  %v70_v1 = vld [vmem:[%s2390_s0 + $0x1c0] sm:$0xff] }
  0x56   :  { %v213_v20 = vadd.f32 %v212_v2, %v211_v8  ;;  %v1298_v8 = vpop.eup %906 }
  0x58   :  { %v215_v29 = vadd.f32 %v214_v10, %v213_v20  ;;  %v66_v10 = vld [vmem:[%s2390_s0 + $0x1a0] sm:$0xff]  ;;  %v228_v20 = vsel %vm142_vm0, %v1291_v0, 0.0 }
  0x59   :  { %922 = vtanh.f32 %v66_v10 }
  0x5a   :  { %v217_v38 = vadd.f32 %v216_v22, %v215_v29  ;;  %v1305_v22 = vpop.eup %908  ;;  %924 = vtanh.f32 %v67_v28 }
  0x5b   :  { %v1312_v37 = vpop.eup %910  ;;  %v232_v45 = vsel %vm142_vm0, %v1305_v22, 0.0 }
  0x5c   :  { %v219_v49 = vadd.f32 %v218_v32, %v217_v38  ;;  %v230_v32 = vsel %vm142_vm0, %v1298_v8, 0.0  ;;  %v68_v38 = vld [vmem:[%s2390_s0 + $0x1b0] sm:$0xff] }
  0x5d   :  { %926 = vtanh.f32 %v68_v38 }
  0x5e   :  { %v221_v58 = vadd.f32 %v220_v42, %v219_v49  ;;  %v1319_v49 = vpop.eup %912 }
  0x60   :  { %v223_v2 = vadd.f32 %v222_v50, %v221_v58  ;;  %v69_v50 = vld [vmem:[%s2390_s0 + $0x1b8] sm:$0xff]  ;;  %v234_v58 = vsel %vm142_vm0, %v1312_v37, 0.0 }
  0x61   :  { %928 = vtanh.f32 %v69_v50  ;;  %v73_v50 = vld [vmem:[%s2390_s0 + $0x1d8] sm:$0xff] }
  0x62   :  { %v225_v16 = vadd.f32 %v224_v60, %v223_v2  ;;  %v1326_v60 = vpop.eup %914  ;;  %930 = vtanh.f32 %v70_v1 }
  0x63   :  { %2429 = vst [vmem:[#allocation2_spill] sm:$0xff] %v1326_v60  ;;  %v1333_v10 = vpop.eup %916  ;;  %v238_v28 = vsel %vm142_vm0, %v1326_v60, 0.0 }
  0x64   :  { %v227_v29 = vadd.f32 %v226_v6, %v225_v16  ;;  %v236_v6 = vsel %vm142_vm0, %v1319_v49, 0.0  ;;  %2430 = vst [vmem:[#allocation3_spill] sm:$0xff] %v1333_v10  ;;  %v71_v16 = vld [vmem:[%s2390_s0 + $0x1c8] sm:$0xff] }
  0x65   :  { %932 = vtanh.f32 %v71_v16 }
  0x66   :  { %v229_v42 = vadd.f32 %v228_v20, %v227_v29  ;;  %v1340_v29 = vpop.eup %918 }
  0x67   :  { %2431 = vst [vmem:[#allocation4_spill] sm:$0xff] %v1340_v29 }
  0x68   :  { %v231_v56 = vadd.f32 %v230_v32, %v229_v42  ;;  %v72_v32 = vld [vmem:[%s2390_s0 + $0x1d0] sm:$0xff]  ;;  %v240_v42 = vsel %vm142_vm0, %v1333_v10, 0.0 }
  0x69   :  { %934 = vtanh.f32 %v72_v32 }
  0x6a   :  { %v233_v2 = vadd.f32 %v232_v45, %v231_v56  ;;  %v1347_v45 = vpop.eup %920  ;;  %936 = vtanh.f32 %v73_v50 }
  0x6b   :  { %2432 = vst [vmem:[#allocation5_spill] sm:$0xff] %v1347_v45  ;;  %v1354_v1 = vpop.eup %922 }
  0x6c   :  { %v235_v20 = vadd.f32 %v234_v58, %v233_v2  ;;  %v242_v58 = vsel %vm142_vm0, %v1340_v29, 0.0  ;;  %2433 = vst [vmem:[#allocation6_spill] sm:$0xff] %v1354_v1  ;;  %v1358_v16 = vpop.eup %924 }
  0x6d   :  { %2434 = vst [vmem:[#allocation7_spill] sm:$0xff] %v1358_v16  ;;  %v1365_v32 = vpop.eup %926 }
  0x6e   :  { %v237_v38 = vadd.f32 %v236_v6, %v235_v20  ;;  %v244_v6 = vsel %vm142_vm0, %v1347_v45, 0.0  ;;  %v74_v20 = vld [vmem:[%s2390_s0 + $0x1e0] sm:$0xff]  ;;  %2435 = vst [vmem:[#allocation8_spill] sm:$0xff] %v1365_v32  ;;  %v1369_v50 = vpop.eup %928 }
  0x6f   :  { %938 = vtanh.f32 %v74_v20  ;;  %2436 = vst [vmem:[#allocation9_spill] sm:$0xff] %v1369_v50  ;;  %v76_v20 = vld [vmem:[%s2390_s0 + $0x1f0] sm:$0xff] }
  0x70   :  { %v239_v56 = vadd.f32 %v238_v28, %v237_v38  ;;  %v246_v28 = vsel %vm142_vm0, %v1354_v1, 0.0 }
  0x72   :  { %v241_v2 = vadd.f32 %v240_v42, %v239_v56  ;;  %v248_v42 = vsel %vm142_vm0, %v1358_v16, 0.0  ;;  %v75_v56 = vld [vmem:[%s2390_s0 + $0x1e8] sm:$0xff] }
  0x73   :  { %940 = vtanh.f32 %v75_v56  ;;  %v77_v56 = vld [vmem:[%s2390_s0 + $0x1f8] sm:$0xff] }
  0x74   :  { %v243_v10 = vadd.f32 %v242_v58, %v241_v2  ;;  %v250_v58 = vsel %vm142_vm0, %v1365_v32, 0.0  ;;  %v1376_v2 = vpop.eup %930  ;;  %942 = vtanh.f32 %v76_v20 }
  0x75   :  { %2437 = vst [vmem:[#allocation10_spill] sm:$0xff] %v1376_v2  ;;  %944 = vtanh.f32 %v77_v56 }
  0x76   :  { %v245_v38 = vadd.f32 %v244_v6, %v243_v10  ;;  %v252_v10 = vsel %vm142_vm0, %v1369_v50, 0.0  ;;  %v1380_v6 = vpop.eup %932 }
  0x77   :  { %2438 = vst [vmem:[#allocation11_spill] sm:$0xff] %v1380_v6 }
  0x78   :  { %v247_v45 = vadd.f32 %v246_v28, %v245_v38  ;;  %v254_v28 = vsel %vm142_vm0, %v1376_v2, 0.0  ;;  %v1387_v38 = vpop.eup %934 }
  0x79   :  { %2439 = vst [vmem:[#allocation12_spill] sm:$0xff] %v1387_v38 }
  0x7a   :  { %v249_v1 = vadd.f32 %v248_v42, %v247_v45  ;;  %v256_v45 = vsel %vm142_vm0, %v1380_v6, 0.0  ;;  %v1391_v42 = vpop.eup %936 }
  0x7b   :  { %2440 = vst [vmem:[#allocation13_spill] sm:$0xff] %v1391_v42  ;;  %v260_v2 = vsel %vm142_vm0, %v1391_v42, 0.0 }
  0x7c   :  { %v251_v16 = vadd.f32 %v250_v58, %v249_v1  ;;  %v258_v1 = vsel %vm142_vm0, %v1387_v38, 0.0 }
  0x7e   :  { %v253_v32 = vadd.f32 %v252_v10, %v251_v16  ;;  %v1400_v16 = vpop.eup %938 }
  0x7f   :  { %2441 = vst [vmem:[#allocation14_spill] sm:$0xff] %v1400_v16  ;;  %v262_v6 = vsel %vm142_vm0, %v1400_v16, 0.0 }
  0x80   :  { %v255_v50 = vadd.f32 %v254_v28, %v253_v32  ;;  %v1404_v29 = vpop.eup %940 }
  0x81   :  { %2442 = vst [vmem:[#allocation15_spill] sm:$0xff] %v1404_v29  ;;  %v264_v32 = vsel %vm142_vm0, %v1404_v29, 0.0  ;;  %v1408_v28 = vpop.eup %942 }
  0x82   :  { %v257_v58 = vadd.f32 %v256_v45, %v255_v50  ;;  %v266_v45 = vsel %vm142_vm0, %v1408_v28, 0.0  ;;  %v1412_v56 = vpop.eup %944 }
  0x84   :  { %v259_v10 = vadd.f32 %v258_v1, %v257_v58 }
  0x86   :  { %v261_v20 = vadd.f32 %v260_v2, %v259_v10  ;;  %v268_v2 = vsel %vm142_vm0, %v1412_v56, 0.0 }
  0x88   :  { %v263_v60 = vadd.f32 %v262_v6, %v261_v20 }
  0x8a   :  { %v265_v50 = vadd.f32 %v264_v32, %v263_v60 }
  0x8c   :  { %v267_v42 = vadd.f32 %v266_v45, %v265_v50 }
  0x8e   :  { %v269_v1 = vadd.f32 %v268_v2, %v267_v42 }
  0x90   :  { %v270_v58 = vrot.slane %v269_v1, 4 }
  0x92   :  { %v271_v10 = vadd.f32 %v270_v58, %v269_v1 }
  0x94   :  { %v272_v16 = vrot.slane %v271_v10, 2 }
  0x96   :  { %v273_v6 = vadd.f32 %v272_v16, %v271_v10 }
  0x98   :  { %v274_v20 = vrot.slane %v273_v6, 1 }
  0x9a   :  { %v275_v38 = vadd.f32 %v274_v20, %v273_v6 }
  0x9c   :  { %v1416_v29 = vmul.f32 0.001953125, %v275_v38 }
  0x9e   :  { %v1420_v60 = vsub.f32 %v1001_v11, %v1416_v29  ;;  %v1424_v32 = vsub.f32 %v1003_v12, %v1416_v29  ;;  %v1428_v50 = vsub.f32 %v1010_v15, %v1416_v29  ;;  %v1432_v42 = vsub.f32 %v1014_v17, %v1416_v29 }
  0x9f   :  { %v1436_v38 = vsub.f32 %v1021_v21, %v1416_v29  ;;  %v1446_v15 = vsub.f32 %v1025_v23, %v1416_v29  ;;  %v1452_v21 = vsub.f32 %v1032_v27, %v1416_v29  ;;  %v1461_v23 = vsub.f32 %v1039_v31, %v1416_v29 }
  0xa0   :  { %v342_v11 = vmul.f32 %v1420_v60, %v1420_v60  ;;  %v343_v16 = vmul.f32 %v1424_v32, %v1424_v32  ;;  %v344_v12 = vmul.f32 %v1428_v50, %v1428_v50  ;;  %v345_v17 = vmul.f32 %v1432_v42, %v1432_v42 }
  0xa1   :  { %2443 = vst [vmem:[#allocation16_spill] sm:$0xff] %v1436_v38  ;;  %v346_v45 = vmul.f32 %v1436_v38, %v1436_v38  ;;  %v347_v6 = vmul.f32 %v1446_v15, %v1446_v15  ;;  %v1468_v38 = vsub.f32 %v1046_v35, %v1416_v29  ;;  %v1475_v31 = vsub.f32 %v1053_v39, %v1416_v29 }
  0xa2   :  { %v406_v2 = vsel %vm142_vm0, %v342_v11, 0.0  ;;  %v407_v1 = vsel %vm142_vm0, %v343_v16, 0.0  ;;  %v409_v58 = vsel %vm142_vm0, %v344_v12, 0.0  ;;  %v411_v27 = vsel %vm142_vm0, %v345_v17, 0.0 }
  0xa3   :  { %v408_v10 = vadd.f32 %v407_v1, %v406_v2  ;;  %v348_v11 = vmul.f32 %v1452_v21, %v1452_v21  ;;  %v413_v16 = vsel %vm142_vm0, %v346_v45, 0.0  ;;  %v349_v2 = vmul.f32 %v1461_v23, %v1461_v23 }
  0xa4   :  { %v415_v17 = vsel %vm142_vm0, %v347_v6, 0.0  ;;  %v1482_v35 = vsub.f32 %v1060_v43, %v1416_v29  ;;  %v1489_v39 = vsub.f32 %v1067_v47, %v1416_v29  ;;  %v1496_v43 = vsub.f32 %v1074_v51, %v1416_v29 }
  0xa5   :  { %v410_v20 = vadd.f32 %v409_v58, %v408_v10  ;;  %v350_v58 = vmul.f32 %v1468_v38, %v1468_v38  ;;  %v417_v45 = vsel %vm142_vm0, %v348_v11, 0.0  ;;  %v419_v6 = vsel %vm142_vm0, %v349_v2, 0.0 }
  0xa6   :  { %v1503_v47 = vsub.f32 %v1081_v55, %v1416_v29  ;;  %v1510_v51 = vsub.f32 %v1088_v59, %v1416_v29  ;;  %v1517_v55 = vsub.f32 %v1095_v63, %v1416_v29  ;;  %v1524_v59 = vsub.f32 %v1102_v3, %v1416_v29 }
  0xa7   :  { %v412_v12 = vadd.f32 %v411_v27, %v410_v20  ;;  %v351_v27 = vmul.f32 %v1475_v31, %v1475_v31  ;;  %v421_v11 = vsel %vm142_vm0, %v350_v58, 0.0  ;;  %v1531_v63 = vsub.f32 %v1109_v7, %v1416_v29 }
  0xa8   :  { %v1538_v3 = vsub.f32 %v1116_v13, %v1416_v29  ;;  %v1545_v7 = vsub.f32 %v1123_v19, %v1416_v29  ;;  %v1552_v13 = vsub.f32 %v1130_v25, %v1416_v29  ;;  %v1559_v19 = vsub.f32 %v1137_v30, %v1416_v29 }
  0xa9   :  { %v414_v1 = vadd.f32 %v413_v16, %v412_v12  ;;  %v352_v16 = vmul.f32 %v1482_v35, %v1482_v35  ;;  %v423_v2 = vsel %vm142_vm0, %v351_v27, 0.0  ;;  %v1566_v25 = vsub.f32 %v1144_v36, %v1416_v29 }
  0xaa   :  { %v1573_v30 = vsub.f32 %v1151_v41, %v1416_v29  ;;  %v1580_v36 = vsub.f32 %v1158_v46, %v1416_v29  ;;  %v1587_v41 = vsub.f32 %v1165_v52, %v1416_v29  ;;  %v1594_v46 = vsub.f32 %v1172_v57, %v1416_v29 }
  0xab   :  { %v416_v10 = vadd.f32 %v415_v17, %v414_v1  ;;  %v353_v17 = vmul.f32 %v1489_v39, %v1489_v39  ;;  %v425_v58 = vsel %vm142_vm0, %v352_v16, 0.0  ;;  %v1601_v52 = vsub.f32 %v1179_v62, %v1416_v29 }
  0xac   :  { %v1608_v57 = vsub.f32 %v1186_v4, %v1416_v29  ;;  %v1615_v62 = vsub.f32 %v1193_v9, %v1416_v29  ;;  %v1622_v4 = vsub.f32 %v1200_v18, %v1416_v29  ;;  %v1629_v9 = vsub.f32 %v1207_v26, %v1416_v29 }
  0xad   :  { %v418_v20 = vadd.f32 %v417_v45, %v416_v10  ;;  %v354_v45 = vmul.f32 %v1496_v43, %v1496_v43  ;;  %v427_v27 = vsel %vm142_vm0, %v353_v17, 0.0  ;;  %v1636_v18 = vsub.f32 %v1214_v33, %v1416_v29 }
  0xae   :  { %v1643_v26 = vsub.f32 %v1221_v40, %v1416_v29  ;;  %v1650_v33 = vsub.f32 %v1228_v48, %v1416_v29  ;;  %v1657_v40 = vsub.f32 %v1235_v54, %v1416_v29  ;;  %v1664_v48 = vsub.f32 %v1242_v61, %v1416_v29 }
  0xaf   :  { %v420_v12 = vadd.f32 %v419_v6, %v418_v20  ;;  %v355_v6 = vmul.f32 %v1503_v47, %v1503_v47  ;;  %v429_v16 = vsel %vm142_vm0, %v354_v45, 0.0  ;;  %v1671_v54 = vsub.f32 %v1249_v5, %v1416_v29 }
  0xb0   :  { %v1678_v61 = vsub.f32 %v1256_v14, %v1416_v29  ;;  %v1685_v5 = vsub.f32 %v1263_v24, %v1416_v29  ;;  %v1692_v14 = vsub.f32 %v1270_v34, %v1416_v29  ;;  %v1699_v24 = vsub.f32 %v1277_v44, %v1416_v29 }
  0xb1   :  { %v422_v1 = vadd.f32 %v421_v11, %v420_v12  ;;  %v356_v11 = vmul.f32 %v1510_v51, %v1510_v51  ;;  %v431_v17 = vsel %vm142_vm0, %v355_v6, 0.0  ;;  %v1706_v34 = vsub.f32 %v1284_v53, %v1416_v29 }
  0xb2   :  { %v1713_v44 = vsub.f32 %v1291_v0, %v1416_v29  ;;  %v1720_v53 = vsub.f32 %v1298_v8, %v1416_v29  ;;  %v1727_v0 = vsub.f32 %v1305_v22, %v1416_v29  ;;  %v1734_v8 = vsub.f32 %v1312_v37, %v1416_v29 }
  0xb3   :  { %v424_v10 = vadd.f32 %v423_v2, %v422_v1  ;;  %v357_v2 = vmul.f32 %v1517_v55, %v1517_v55  ;;  %v433_v45 = vsel %vm142_vm0, %v356_v11, 0.0  ;;  %v1741_v22 = vsub.f32 %v1319_v49, %v1416_v29 }
  0xb4   :  { %2444 = vst [vmem:[#allocation17_spill] sm:$0xff] %v1720_v53  ;;  %2445 = vst [vmem:[#allocation18_spill] sm:$0xff] %v1727_v0 }
  0xb5   :  { %v426_v20 = vadd.f32 %v425_v58, %v424_v10  ;;  %v358_v58 = vmul.f32 %v1524_v59, %v1524_v59  ;;  %v435_v6 = vsel %vm142_vm0, %v357_v2, 0.0  ;;  %2446 = vst [vmem:[#allocation19_spill] sm:$0xff] %v1734_v8  ;;  %2447 = vst [vmem:[#allocation20_spill] sm:$0xff] %v1741_v22 }
  0xb7   :  { %v428_v12 = vadd.f32 %v427_v27, %v426_v20  ;;  %v359_v27 = vmul.f32 %v1531_v63, %v1531_v63  ;;  %v437_v11 = vsel %vm142_vm0, %v358_v58, 0.0 }
  0xb9   :  { %v430_v1 = vadd.f32 %v429_v16, %v428_v12  ;;  %v360_v16 = vmul.f32 %v1538_v3, %v1538_v3  ;;  %v439_v2 = vsel %vm142_vm0, %v359_v27, 0.0 }
  0xbb   :  { %v432_v10 = vadd.f32 %v431_v17, %v430_v1  ;;  %v361_v17 = vmul.f32 %v1545_v7, %v1545_v7  ;;  %v441_v58 = vsel %vm142_vm0, %v360_v16, 0.0 }
  0xbd   :  { %v434_v20 = vadd.f32 %v433_v45, %v432_v10  ;;  %v362_v45 = vmul.f32 %v1552_v13, %v1552_v13  ;;  %v443_v27 = vsel %vm142_vm0, %v361_v17, 0.0 }
  0xbf   :  { %v436_v12 = vadd.f32 %v435_v6, %v434_v20  ;;  %v363_v6 = vmul.f32 %v1559_v19, %v1559_v19  ;;  %v445_v16 = vsel %vm142_vm0, %v362_v45, 0.0 }
  0xc1   :  { %v438_v1 = vadd.f32 %v437_v11, %v436_v12  ;;  %v364_v11 = vmul.f32 %v1566_v25, %v1566_v25  ;;  %v447_v17 = vsel %vm142_vm0, %v363_v6, 0.0 }
  0xc3   :  { %v440_v10 = vadd.f32 %v439_v2, %v438_v1  ;;  %v365_v2 = vmul.f32 %v1573_v30, %v1573_v30  ;;  %v449_v45 = vsel %vm142_vm0, %v364_v11, 0.0 }
  0xc5   :  { %v442_v20 = vadd.f32 %v441_v58, %v440_v10  ;;  %v366_v58 = vmul.f32 %v1580_v36, %v1580_v36  ;;  %v451_v6 = vsel %vm142_vm0, %v365_v2, 0.0 }
  0xc7   :  { %v444_v12 = vadd.f32 %v443_v27, %v442_v20  ;;  %v367_v27 = vmul.f32 %v1587_v41, %v1587_v41  ;;  %v453_v11 = vsel %vm142_vm0, %v366_v58, 0.0 }
  0xc9   :  { %v446_v1 = vadd.f32 %v445_v16, %v444_v12  ;;  %v368_v16 = vmul.f32 %v1594_v46, %v1594_v46  ;;  %v455_v2 = vsel %vm142_vm0, %v367_v27, 0.0 }
  0xcb   :  { %v448_v10 = vadd.f32 %v447_v17, %v446_v1  ;;  %v369_v17 = vmul.f32 %v1601_v52, %v1601_v52  ;;  %v457_v58 = vsel %vm142_vm0, %v368_v16, 0.0 }
  0xcd   :  { %v450_v20 = vadd.f32 %v449_v45, %v448_v10  ;;  %v370_v45 = vmul.f32 %v1608_v57, %v1608_v57  ;;  %v459_v27 = vsel %vm142_vm0, %v369_v17, 0.0 }
  0xcf   :  { %v452_v12 = vadd.f32 %v451_v6, %v450_v20  ;;  %v371_v6 = vmul.f32 %v1615_v62, %v1615_v62  ;;  %v461_v16 = vsel %vm142_vm0, %v370_v45, 0.0 }
  0xd1   :  { %v454_v1 = vadd.f32 %v453_v11, %v452_v12  ;;  %v372_v11 = vmul.f32 %v1622_v4, %v1622_v4  ;;  %v463_v17 = vsel %vm142_vm0, %v371_v6, 0.0 }
  0xd3   :  { %v456_v10 = vadd.f32 %v455_v2, %v454_v1  ;;  %v373_v2 = vmul.f32 %v1629_v9, %v1629_v9  ;;  %v465_v45 = vsel %vm142_vm0, %v372_v11, 0.0 }
  0xd5   :  { %v458_v20 = vadd.f32 %v457_v58, %v456_v10  ;;  %v374_v58 = vmul.f32 %v1636_v18, %v1636_v18  ;;  %v467_v6 = vsel %vm142_vm0, %v373_v2, 0.0 }
  0xd7   :  { %v460_v12 = vadd.f32 %v459_v27, %v458_v20  ;;  %v375_v27 = vmul.f32 %v1643_v26, %v1643_v26  ;;  %v469_v11 = vsel %vm142_vm0, %v374_v58, 0.0 }
  0xd9   :  { %v462_v1 = vadd.f32 %v461_v16, %v460_v12  ;;  %v376_v16 = vmul.f32 %v1650_v33, %v1650_v33  ;;  %v471_v2 = vsel %vm142_vm0, %v375_v27, 0.0 }
  0xdb   :  { %v464_v10 = vadd.f32 %v463_v17, %v462_v1  ;;  %v377_v17 = vmul.f32 %v1657_v40, %v1657_v40  ;;  %v473_v58 = vsel %vm142_vm0, %v376_v16, 0.0 }
  0xdd   :  { %v466_v20 = vadd.f32 %v465_v45, %v464_v10  ;;  %v378_v45 = vmul.f32 %v1664_v48, %v1664_v48  ;;  %v475_v27 = vsel %vm142_vm0, %v377_v17, 0.0 }
  0xdf   :  { %v468_v12 = vadd.f32 %v467_v6, %v466_v20  ;;  %v379_v6 = vmul.f32 %v1671_v54, %v1671_v54  ;;  %v477_v16 = vsel %vm142_vm0, %v378_v45, 0.0 }
  0xe1   :  { %v470_v1 = vadd.f32 %v469_v11, %v468_v12  ;;  %v380_v11 = vmul.f32 %v1678_v61, %v1678_v61  ;;  %v479_v17 = vsel %vm142_vm0, %v379_v6, 0.0 }
  0xe3   :  { %v472_v10 = vadd.f32 %v471_v2, %v470_v1  ;;  %v381_v2 = vmul.f32 %v1685_v5, %v1685_v5  ;;  %v481_v45 = vsel %vm142_vm0, %v380_v11, 0.0 }
  0xe5   :  { %v474_v20 = vadd.f32 %v473_v58, %v472_v10  ;;  %v382_v58 = vmul.f32 %v1692_v14, %v1692_v14  ;;  %v483_v6 = vsel %vm142_vm0, %v381_v2, 0.0 }
  0xe7   :  { %v476_v12 = vadd.f32 %v475_v27, %v474_v20  ;;  %v383_v27 = vmul.f32 %v1699_v24, %v1699_v24  ;;  %v485_v11 = vsel %vm142_vm0, %v382_v58, 0.0 }
  0xe9   :  { %v478_v1 = vadd.f32 %v477_v16, %v476_v12  ;;  %v384_v16 = vmul.f32 %v1706_v34, %v1706_v34  ;;  %v487_v2 = vsel %vm142_vm0, %v383_v27, 0.0 }
  0xeb   :  { %v480_v10 = vadd.f32 %v479_v17, %v478_v1  ;;  %v385_v17 = vmul.f32 %v1713_v44, %v1713_v44  ;;  %v489_v58 = vsel %vm142_vm0, %v384_v16, 0.0 }
  0xed   :  { %v482_v20 = vadd.f32 %v481_v45, %v480_v10  ;;  %v386_v45 = vmul.f32 %v1720_v53, %v1720_v53  ;;  %v491_v27 = vsel %vm142_vm0, %v385_v17, 0.0 }
  0xef   :  { %v484_v12 = vadd.f32 %v483_v6, %v482_v20  ;;  %v387_v6 = vmul.f32 %v1727_v0, %v1727_v0  ;;  %v493_v16 = vsel %vm142_vm0, %v386_v45, 0.0  ;;  %v389_v0 = vmul.f32 %v1741_v22, %v1741_v22 }
  0xf1   :  { %v486_v1 = vadd.f32 %v485_v11, %v484_v12  ;;  %v2448_v11 = vld [vmem:[#allocation2_spill] sm:$0xff]  ;;  %v388_v12 = vmul.f32 %v1734_v8, %v1734_v8  ;;  %v495_v17 = vsel %vm142_vm0, %v387_v6, 0.0  ;;  %v499_v6 = vsel %vm142_vm0, %v389_v0, 0.0 }
  0xf2   :  { %v1748_v37 = vsub.f32 %v2448_v11, %v1416_v29 }
  0xf3   :  { %v488_v10 = vadd.f32 %v487_v2, %v486_v1  ;;  %v2450_v1 = vld [vmem:[#allocation3_spill] sm:$0xff]  ;;  %v497_v45 = vsel %vm142_vm0, %v388_v12, 0.0 }
  0xf4   :  { %2449 = vst [vmem:[#allocation2_spill] sm:$0xff] %v1748_v37  ;;  %v1755_v49 = vsub.f32 %v2450_v1, %v1416_v29  ;;  %v390_v8 = vmul.f32 %v1748_v37, %v1748_v37 }
  0xf5   :  { %v490_v20 = vadd.f32 %v489_v58, %v488_v10  ;;  %v2452_v10 = vld [vmem:[#allocation4_spill] sm:$0xff] }
  0xf6   :  { %2451 = vst [vmem:[#allocation3_spill] sm:$0xff] %v1755_v49  ;;  %v1762_v11 = vsub.f32 %v2452_v10, %v1416_v29  ;;  %v391_v22 = vmul.f32 %v1755_v49, %v1755_v49  ;;  %v501_v12 = vsel %vm142_vm0, %v390_v8, 0.0 }
  0xf7   :  { %v492_v2 = vadd.f32 %v491_v27, %v490_v20  ;;  %v2454_v20 = vld [vmem:[#allocation5_spill] sm:$0xff] }
  0xf8   :  { %2453 = vst [vmem:[#allocation4_spill] sm:$0xff] %v1762_v11  ;;  %v1769_v1 = vsub.f32 %v2454_v20, %v1416_v29  ;;  %v392_v37 = vmul.f32 %v1762_v11, %v1762_v11  ;;  %v503_v0 = vsel %vm142_vm0, %v391_v22, 0.0 }
  0xf9   :  { %v494_v58 = vadd.f32 %v493_v16, %v492_v2  ;;  %v2456_v2 = vld [vmem:[#allocation6_spill] sm:$0xff] }
  0xfa   :  { %2455 = vst [vmem:[#allocation5_spill] sm:$0xff] %v1769_v1  ;;  %v1776_v10 = vsub.f32 %v2456_v2, %v1416_v29  ;;  %v393_v49 = vmul.f32 %v1769_v1, %v1769_v1  ;;  %v505_v8 = vsel %vm142_vm0, %v392_v37, 0.0 }
  0xfb   :  { %v496_v27 = vadd.f32 %v495_v17, %v494_v58  ;;  %v2458_v58 = vld [vmem:[#allocation7_spill] sm:$0xff] }
  0xfc   :  { %2457 = vst [vmem:[#allocation6_spill] sm:$0xff] %v1776_v10  ;;  %v1783_v20 = vsub.f32 %v2458_v58, %v1416_v29  ;;  %v394_v11 = vmul.f32 %v1776_v10, %v1776_v10  ;;  %v507_v22 = vsel %vm142_vm0, %v393_v49, 0.0 }
  0xfd   :  { %v498_v16 = vadd.f32 %v497_v45, %v496_v27  ;;  %v2460_v27 = vld [vmem:[#allocation8_spill] sm:$0xff] }
  0xfe   :  { %2459 = vst [vmem:[#allocation7_spill] sm:$0xff] %v1783_v20  ;;  %v1790_v2 = vsub.f32 %v2460_v27, %v1416_v29  ;;  %v395_v1 = vmul.f32 %v1783_v20, %v1783_v20  ;;  %v509_v37 = vsel %vm142_vm0, %v394_v11, 0.0 }
  0xff   :  { %v500_v17 = vadd.f32 %v499_v6, %v498_v16  ;;  %v2462_v16 = vld [vmem:[#allocation9_spill] sm:$0xff] }
 0x100   :  { %2461 = vst [vmem:[#allocation8_spill] sm:$0xff] %v1790_v2  ;;  %v1797_v58 = vsub.f32 %v2462_v16, %v1416_v29  ;;  %v396_v10 = vmul.f32 %v1790_v2, %v1790_v2  ;;  %v511_v49 = vsel %vm142_vm0, %v395_v1, 0.0 }
 0x101   :  { %v502_v45 = vadd.f32 %v501_v12, %v500_v17  ;;  %v2464_v17 = vld [vmem:[#allocation10_spill] sm:$0xff] }
 0x102   :  { %2463 = vst [vmem:[#allocation9_spill] sm:$0xff] %v1797_v58  ;;  %v1804_v27 = vsub.f32 %v2464_v17, %v1416_v29  ;;  %v397_v20 = vmul.f32 %v1797_v58, %v1797_v58  ;;  %v513_v11 = vsel %vm142_vm0, %v396_v10, 0.0 }
 0x103   :  { %v504_v6 = vadd.f32 %v503_v0, %v502_v45  ;;  %v2466_v45 = vld [vmem:[#allocation11_spill] sm:$0xff] }
 0x104   :  { %2465 = vst [vmem:[#allocation10_spill] sm:$0xff] %v1804_v27  ;;  %v1811_v16 = vsub.f32 %v2466_v45, %v1416_v29  ;;  %v398_v2 = vmul.f32 %v1804_v27, %v1804_v27  ;;  %v515_v1 = vsel %vm142_vm0, %v397_v20, 0.0 }
 0x105   :  { %v506_v12 = vadd.f32 %v505_v8, %v504_v6  ;;  %v2468_v6 = vld [vmem:[#allocation12_spill] sm:$0xff] }
 0x106   :  { %2467 = vst [vmem:[#allocation11_spill] sm:$0xff] %v1811_v16  ;;  %v1818_v17 = vsub.f32 %v2468_v6, %v1416_v29  ;;  %v399_v58 = vmul.f32 %v1811_v16, %v1811_v16  ;;  %v517_v10 = vsel %vm142_vm0, %v398_v2, 0.0 }
 0x107   :  { %v508_v0 = vadd.f32 %v507_v22, %v506_v12  ;;  %v2470_v12 = vld [vmem:[#allocation13_spill] sm:$0xff] }
 0x108   :  { %2469 = vst [vmem:[#allocation12_spill] sm:$0xff] %v1818_v17  ;;  %v1825_v45 = vsub.f32 %v2470_v12, %v1416_v29  ;;  %v400_v27 = vmul.f32 %v1818_v17, %v1818_v17  ;;  %v519_v20 = vsel %vm142_vm0, %v399_v58, 0.0 }
 0x109   :  { %v510_v8 = vadd.f32 %v509_v37, %v508_v0  ;;  %v2472_v0 = vld [vmem:[#allocation14_spill] sm:$0xff] }
 0x10a   :  { %2471 = vst [vmem:[#allocation13_spill] sm:$0xff] %v1825_v45  ;;  %v1832_v6 = vsub.f32 %v2472_v0, %v1416_v29  ;;  %v401_v16 = vmul.f32 %v1825_v45, %v1825_v45  ;;  %v521_v2 = vsel %vm142_vm0, %v400_v27, 0.0 }
 0x10b   :  { %v512_v22 = vadd.f32 %v511_v49, %v510_v8  ;;  %v2474_v8 = vld [vmem:[#allocation15_spill] sm:$0xff] }
 0x10c   :  { %2473 = vst [vmem:[#allocation14_spill] sm:$0xff] %v1832_v6  ;;  %v1839_v12 = vsub.f32 %v2474_v8, %v1416_v29  ;;  %v402_v0 = vmul.f32 %v1832_v6, %v1832_v6  ;;  %v523_v58 = vsel %vm142_vm0, %v401_v16, 0.0 }
 0x10d   :  { %v514_v37 = vadd.f32 %v513_v11, %v512_v22  ;;  %v1846_v22 = vsub.f32 %v1408_v28, %v1416_v29 }
 0x10e   :  { %2475 = vst [vmem:[#allocation15_spill] sm:$0xff] %v1839_v12  ;;  %v403_v8 = vmul.f32 %v1839_v12, %v1839_v12 }
 0x10f   :  { %v516_v49 = vadd.f32 %v515_v1, %v514_v37  ;;  %2476 = vst [vmem:[#allocation21_spill] sm:$0xff] %v1846_v22  ;;  %v1853_v37 = vsub.f32 %v1412_v56, %v1416_v29  ;;  %v404_v28 = vmul.f32 %v1846_v22, %v1846_v22 }
 0x111   :  { %v518_v11 = vadd.f32 %v517_v10, %v516_v49  ;;  %2477 = vst [vmem:[#allocation22_spill] sm:$0xff] %v1853_v37  ;;  %v525_v49 = vsel %vm142_vm0, %v402_v0, 0.0  ;;  %v405_v27 = vmul.f32 %v1853_v37, %v1853_v37  ;;  %v529_v29 = vsel %vm142_vm0, %v404_v28, 0.0 }
 0x113   :  { %v520_v1 = vadd.f32 %v519_v20, %v518_v11  ;;  %v527_v20 = vsel %vm142_vm0, %v403_v8, 0.0  ;;  %v531_v12 = vsel %vm142_vm0, %v405_v27, 0.0 }
 0x115   :  { %v522_v10 = vadd.f32 %v521_v2, %v520_v1 }
 0x117   :  { %v524_v45 = vadd.f32 %v523_v58, %v522_v10 }
 0x119   :  { %v526_v11 = vadd.f32 %v525_v49, %v524_v45  ;;  %v1871_v45 = vld [vmem:[%s2391_s1] ss:$0 sm:$0xff] }
 0x11b   :  { %v528_v56 = vadd.f32 %v527_v20, %v526_v11 }
 0x11d   :  { %v530_v6 = vadd.f32 %v529_v29, %v528_v56 }
 0x11f   :  { %v532_v16 = vadd.f32 %v531_v12, %v530_v6  ;;  %v1884_v12 = vld [vmem:[%s2392_s2] ss:$0 sm:$0xff] }
 0x121   :  { %v533_v2 = vrot.slane %v532_v16, 4 }
 0x123   :  { %v534_v1 = vadd.f32 %v533_v2, %v532_v16 }
 0x125   :  { %v535_v17 = vrot.slane %v534_v1, 2 }
 0x127   :  { %v536_v22 = vadd.f32 %v535_v17, %v534_v1 }
 0x129   :  { %v537_v53 = vrot.slane %v536_v22, 1 }
 0x12b   :  { %v538_v0 = vadd.f32 %v537_v53, %v536_v22  ;;  %v2478_v22 = vld [vmem:[#allocation16_spill] sm:$0xff] }
 0x12d   :  { %v539_v58 = vmul.f32 0.001953125, %v538_v0 }
 0x12f   :  { %v540_v10 = vadd.f32 1e-05, %v539_v58 }
 0x131   :  { %946 = vrsqrt.f32 %v540_v10 }
 0x13e   :  { %v1866_v37 = vpop.eup %946 }
 0x13f   :  { %v542_v8 = vmul.f32 %v1866_v37, %v1420_v60  ;;  %v543_v6 = vmul.f32 %v1866_v37, %v1424_v32  ;;  %v544_v17 = vmul.f32 %v1866_v37, %v1428_v50  ;;  %v545_v53 = vmul.f32 %v1866_v37, %v1432_v42 }
 0x140   :  { %v546_v28 = vmul.f32 %v1866_v37, %v2478_v22  ;;  %v547_v60 = vmul.f32 %v1866_v37, %v1446_v15  ;;  %v548_v32 = vmul.f32 %v1866_v37, %v1452_v21  ;;  %v549_v50 = vmul.f32 %v1866_v37, %v1461_v23 }
 0x141   :  { %v613_v49 = vmul.f32 %v1871_v45, %v542_v8  ;;  %v614_v42 = vmul.f32 %v1871_v45, %v543_v6  ;;  %v615_v27 = vmul.f32 %v1871_v45, %v544_v17  ;;  %v616_v20 = vmul.f32 %v1871_v45, %v545_v53 }
 0x142   :  { %v617_v11 = vmul.f32 %v1871_v45, %v546_v28  ;;  %v618_v29 = vmul.f32 %v1871_v45, %v547_v60  ;;  %v619_v15 = vmul.f32 %v1871_v45, %v548_v32  ;;  %v620_v56 = vmul.f32 %v1871_v45, %v549_v50 }
 0x143   :  { %v684_v21 = vadd.f32 %v1884_v12, %v613_v49  ;;  %v685_v23 = vadd.f32 %v1884_v12, %v614_v42  ;;  %v686_v16 = vadd.f32 %v1884_v12, %v615_v27  ;;  %v687_v2 = vadd.f32 %v1884_v12, %v616_v20 }
 0x144   :  { %v688_v1 = vadd.f32 %v1884_v12, %v617_v11  ;;  %v689_v0 = vadd.f32 %v1884_v12, %v618_v29  ;;  %v690_v58 = vadd.f32 %v1884_v12, %v619_v15  ;;  %v691_v10 = vadd.f32 %v1884_v12, %v620_v56 }
 0x145   :  { %748 = vst.msk [vmem:[%s2393_s3] sm:$0xff] %vm142_vm0, %v684_v21  ;;  %749 = vst.msk [vmem:[%s2393_s3 + $0x8] sm:$0xff] %vm142_vm0, %v685_v23  ;;  %v550_v8 = vmul.f32 %v1866_v37, %v1468_v38  ;;  %v551_v6 = vmul.f32 %v1866_v37, %v1475_v31  ;;  %v552_v17 = vmul.f32 %v1866_v37, %v1482_v35 }
 0x146   :  { %750 = vst.msk [vmem:[%s2393_s3 + $0x10] sm:$0xff] %vm142_vm0, %v686_v16  ;;  %751 = vst.msk [vmem:[%s2393_s3 + $0x18] sm:$0xff] %vm142_vm0, %v687_v2  ;;  %v553_v53 = vmul.f32 %v1866_v37, %v1489_v39  ;;  %v554_v38 = vmul.f32 %v1866_v37, %v1496_v43  ;;  %v555_v31 = vmul.f32 %v1866_v37, %v1503_v47 }
 0x147   :  { %752 = vst.msk [vmem:[%s2393_s3 + $0x20] sm:$0xff] %vm142_vm0, %v688_v1  ;;  %753 = vst.msk [vmem:[%s2393_s3 + $0x28] sm:$0xff] %vm142_vm0, %v689_v0  ;;  %v556_v35 = vmul.f32 %v1866_v37, %v1510_v51  ;;  %v557_v39 = vmul.f32 %v1866_v37, %v1517_v55  ;;  %v621_v22 = vmul.f32 %v1871_v45, %v550_v8 }
 0x148   :  { %754 = vst.msk [vmem:[%s2393_s3 + $0x30] sm:$0xff] %vm142_vm0, %v690_v58  ;;  %755 = vst.msk [vmem:[%s2393_s3 + $0x38] sm:$0xff] %vm142_vm0, %v691_v10  ;;  %v622_v28 = vmul.f32 %v1871_v45, %v551_v6  ;;  %v623_v60 = vmul.f32 %v1871_v45, %v552_v17  ;;  %v624_v32 = vmul.f32 %v1871_v45, %v553_v53 }
 0x149   :  { %v625_v50 = vmul.f32 %v1871_v45, %v554_v38  ;;  %v626_v43 = vmul.f32 %v1871_v45, %v555_v31  ;;  %v627_v47 = vmul.f32 %v1871_v45, %v556_v35  ;;  %v628_v49 = vmul.f32 %v1871_v45, %v557_v39 }
 0x14a   :  { %v692_v51 = vadd.f32 %v1884_v12, %v621_v22  ;;  %v693_v55 = vadd.f32 %v1884_v12, %v622_v28  ;;  %v694_v42 = vadd.f32 %v1884_v12, %v623_v60  ;;  %v695_v27 = vadd.f32 %v1884_v12, %v624_v32 }
 0x14b   :  { %v696_v20 = vadd.f32 %v1884_v12, %v625_v50  ;;  %v697_v11 = vadd.f32 %v1884_v12, %v626_v43  ;;  %v698_v29 = vadd.f32 %v1884_v12, %v627_v47  ;;  %v699_v15 = vadd.f32 %v1884_v12, %v628_v49 }
 0x14c   :  { %756 = vst.msk [vmem:[%s2393_s3 + $0x40] sm:$0xff] %vm142_vm0, %v692_v51  ;;  %757 = vst.msk [vmem:[%s2393_s3 + $0x48] sm:$0xff] %vm142_vm0, %v693_v55  ;;  %v558_v56 = vmul.f32 %v1866_v37, %v1524_v59  ;;  %v559_v21 = vmul.f32 %v1866_v37, %v1531_v63  ;;  %v560_v23 = vmul.f32 %v1866_v37, %v1538_v3 }
 0x14d   :  { %758 = vst.msk [vmem:[%s2393_s3 + $0x50] sm:$0xff] %vm142_vm0, %v694_v42  ;;  %759 = vst.msk [vmem:[%s2393_s3 + $0x58] sm:$0xff] %vm142_vm0, %v695_v27  ;;  %v561_v16 = vmul.f32 %v1866_v37, %v1545_v7  ;;  %v562_v59 = vmul.f32 %v1866_v37, %v1552_v13  ;;  %v563_v63 = vmul.f32 %v1866_v37, %v1559_v19 }
 0x14e   :  { %760 = vst.msk [vmem:[%s2393_s3 + $0x60] sm:$0xff] %vm142_vm0, %v696_v20  ;;  %761 = vst.msk [vmem:[%s2393_s3 + $0x68] sm:$0xff] %vm142_vm0, %v697_v11  ;;  %v564_v3 = vmul.f32 %v1866_v37, %v1566_v25  ;;  %v565_v7 = vmul.f32 %v1866_v37, %v1573_v30  ;;  %v629_v2 = vmul.f32 %v1871_v45, %v558_v56 }
 0x14f   :  { %762 = vst.msk [vmem:[%s2393_s3 + $0x70] sm:$0xff] %vm142_vm0, %v698_v29  ;;  %763 = vst.msk [vmem:[%s2393_s3 + $0x78] sm:$0xff] %vm142_vm0, %v699_v15  ;;  %v630_v1 = vmul.f32 %v1871_v45, %v559_v21  ;;  %v631_v0 = vmul.f32 %v1871_v45, %v560_v23  ;;  %v632_v58 = vmul.f32 %v1871_v45, %v561_v16 }
 0x150   :  { %v633_v10 = vmul.f32 %v1871_v45, %v562_v59  ;;  %v634_v13 = vmul.f32 %v1871_v45, %v563_v63  ;;  %v635_v19 = vmul.f32 %v1871_v45, %v564_v3  ;;  %v636_v8 = vmul.f32 %v1871_v45, %v565_v7 }
 0x151   :  { %v700_v25 = vadd.f32 %v1884_v12, %v629_v2  ;;  %v701_v30 = vadd.f32 %v1884_v12, %v630_v1  ;;  %v702_v6 = vadd.f32 %v1884_v12, %v631_v0  ;;  %v703_v17 = vadd.f32 %v1884_v12, %v632_v58 }
 0x152   :  { %v704_v53 = vadd.f32 %v1884_v12, %v633_v10  ;;  %v705_v38 = vadd.f32 %v1884_v12, %v634_v13  ;;  %v706_v31 = vadd.f32 %v1884_v12, %v635_v19  ;;  %v707_v35 = vadd.f32 %v1884_v12, %v636_v8 }
 0x153   :  { %764 = vst.msk [vmem:[%s2393_s3 + $0x80] sm:$0xff] %vm142_vm0, %v700_v25  ;;  %765 = vst.msk [vmem:[%s2393_s3 + $0x88] sm:$0xff] %vm142_vm0, %v701_v30  ;;  %v566_v39 = vmul.f32 %v1866_v37, %v1580_v36  ;;  %v567_v22 = vmul.f32 %v1866_v37, %v1587_v41  ;;  %v568_v28 = vmul.f32 %v1866_v37, %v1594_v46 }
 0x154   :  { %766 = vst.msk [vmem:[%s2393_s3 + $0x90] sm:$0xff] %vm142_vm0, %v702_v6  ;;  %767 = vst.msk [vmem:[%s2393_s3 + $0x98] sm:$0xff] %vm142_vm0, %v703_v17  ;;  %v569_v60 = vmul.f32 %v1866_v37, %v1601_v52  ;;  %v570_v36 = vmul.f32 %v1866_v37, %v1608_v57  ;;  %v571_v41 = vmul.f32 %v1866_v37, %v1615_v62  ;;  %v2481_v17 = vld [vmem:[#allocation19_spill] sm:$0xff] }
 0x155   :  { %768 = vst.msk [vmem:[%s2393_s3 + $0xa0] sm:$0xff] %vm142_vm0, %v704_v53  ;;  %769 = vst.msk [vmem:[%s2393_s3 + $0xa8] sm:$0xff] %vm142_vm0, %v705_v38  ;;  %v572_v46 = vmul.f32 %v1866_v37, %v1622_v4  ;;  %v573_v52 = vmul.f32 %v1866_v37, %v1629_v9  ;;  %v637_v32 = vmul.f32 %v1871_v45, %v566_v39  ;;  %v2482_v38 = vld [vmem:[#allocation20_spill] sm:$0xff] }
 0x156   :  { %770 = vst.msk [vmem:[%s2393_s3 + $0xb0] sm:$0xff] %vm142_vm0, %v706_v31  ;;  %771 = vst.msk [vmem:[%s2393_s3 + $0xb8] sm:$0xff] %vm142_vm0, %v707_v35  ;;  %v638_v50 = vmul.f32 %v1871_v45, %v567_v22  ;;  %v639_v43 = vmul.f32 %v1871_v45, %v568_v28  ;;  %v640_v47 = vmul.f32 %v1871_v45, %v569_v60 }
 0x157   :  { %v641_v49 = vmul.f32 %v1871_v45, %v570_v36  ;;  %v642_v57 = vmul.f32 %v1871_v45, %v571_v41  ;;  %v643_v62 = vmul.f32 %v1871_v45, %v572_v46  ;;  %v644_v51 = vmul.f32 %v1871_v45, %v573_v52 }
 0x158   :  { %v708_v4 = vadd.f32 %v1884_v12, %v637_v32  ;;  %v709_v9 = vadd.f32 %v1884_v12, %v638_v50  ;;  %v710_v55 = vadd.f32 %v1884_v12, %v639_v43  ;;  %v711_v42 = vadd.f32 %v1884_v12, %v640_v47 }
 0x159   :  { %v712_v27 = vadd.f32 %v1884_v12, %v641_v49  ;;  %v713_v20 = vadd.f32 %v1884_v12, %v642_v57  ;;  %v714_v11 = vadd.f32 %v1884_v12, %v643_v62  ;;  %v715_v29 = vadd.f32 %v1884_v12, %v644_v51  ;;  %v2483_v51 = vld [vmem:[#allocation2_spill] sm:$0xff] }
 0x15a   :  { %772 = vst.msk [vmem:[%s2393_s3 + $0xc0] sm:$0xff] %vm142_vm0, %v708_v4  ;;  %773 = vst.msk [vmem:[%s2393_s3 + $0xc8] sm:$0xff] %vm142_vm0, %v709_v9  ;;  %v574_v15 = vmul.f32 %v1866_v37, %v1636_v18  ;;  %v575_v56 = vmul.f32 %v1866_v37, %v1643_v26  ;;  %v576_v21 = vmul.f32 %v1866_v37, %v1650_v33  ;;  %v2484_v9 = vld [vmem:[#allocation3_spill] sm:$0xff] }
 0x15b   :  { %774 = vst.msk [vmem:[%s2393_s3 + $0xd0] sm:$0xff] %vm142_vm0, %v710_v55  ;;  %775 = vst.msk [vmem:[%s2393_s3 + $0xd8] sm:$0xff] %vm142_vm0, %v711_v42  ;;  %v577_v23 = vmul.f32 %v1866_v37, %v1657_v40  ;;  %v578_v18 = vmul.f32 %v1866_v37, %v1664_v48  ;;  %v579_v26 = vmul.f32 %v1866_v37, %v1671_v54  ;;  %v2485_v42 = vld [vmem:[#allocation4_spill] sm:$0xff] }
 0x15c   :  { %776 = vst.msk [vmem:[%s2393_s3 + $0xe0] sm:$0xff] %vm142_vm0, %v712_v27  ;;  %777 = vst.msk [vmem:[%s2393_s3 + $0xe8] sm:$0xff] %vm142_vm0, %v713_v20  ;;  %v580_v33 = vmul.f32 %v1866_v37, %v1678_v61  ;;  %v581_v40 = vmul.f32 %v1866_v37, %v1685_v5  ;;  %v645_v16 = vmul.f32 %v1871_v45, %v574_v15  ;;  %v2486_v20 = vld [vmem:[#allocation5_spill] sm:$0xff] }
 0x15d   :  { %778 = vst.msk [vmem:[%s2393_s3 + $0xf0] sm:$0xff] %vm142_vm0, %v714_v11  ;;  %779 = vst.msk [vmem:[%s2393_s3 + $0xf8] sm:$0xff] %vm142_vm0, %v715_v29  ;;  %v646_v59 = vmul.f32 %v1871_v45, %v575_v56  ;;  %v647_v63 = vmul.f32 %v1871_v45, %v576_v21  ;;  %v648_v3 = vmul.f32 %v1871_v45, %v577_v23  ;;  %v2487_v29 = vld [vmem:[#allocation6_spill] sm:$0xff]  ;;  %v2488_v56 = vld [vmem:[#allocation7_spill] sm:$0xff] }
 0x15e   :  { %v649_v7 = vmul.f32 %v1871_v45, %v578_v18  ;;  %v650_v48 = vmul.f32 %v1871_v45, %v579_v26  ;;  %v651_v54 = vmul.f32 %v1871_v45, %v580_v33  ;;  %v652_v2 = vmul.f32 %v1871_v45, %v581_v40  ;;  %v2489_v23 = vld [vmem:[#allocation8_spill] sm:$0xff]  ;;  %v2490_v26 = vld [vmem:[#allocation9_spill] sm:$0xff] }
 0x15f   :  { %v716_v61 = vadd.f32 %v1884_v12, %v645_v16  ;;  %v717_v5 = vadd.f32 %v1884_v12, %v646_v59  ;;  %v718_v1 = vadd.f32 %v1884_v12, %v647_v63  ;;  %v719_v0 = vadd.f32 %v1884_v12, %v648_v3 }
 0x160   :  { %v720_v58 = vadd.f32 %v1884_v12, %v649_v7  ;;  %v721_v10 = vadd.f32 %v1884_v12, %v650_v48  ;;  %v722_v13 = vadd.f32 %v1884_v12, %v651_v54  ;;  %v723_v19 = vadd.f32 %v1884_v12, %v652_v2 }
 0x161   :  { %780 = vst.msk [vmem:[%s2393_s3 + $0x100] sm:$0xff] %vm142_vm0, %v716_v61  ;;  %781 = vst.msk [vmem:[%s2393_s3 + $0x108] sm:$0xff] %vm142_vm0, %v717_v5  ;;  %v582_v8 = vmul.f32 %v1866_v37, %v1692_v14  ;;  %v583_v25 = vmul.f32 %v1866_v37, %v1699_v24  ;;  %v584_v30 = vmul.f32 %v1866_v37, %v1706_v34  ;;  %v2479_v14 = vld [vmem:[#allocation17_spill] sm:$0xff]  ;;  %v2480_v34 = vld [vmem:[#allocation18_spill] sm:$0xff] }
 0x162   :  { %782 = vst.msk [vmem:[%s2393_s3 + $0x110] sm:$0xff] %vm142_vm0, %v718_v1  ;;  %783 = vst.msk [vmem:[%s2393_s3 + $0x118] sm:$0xff] %vm142_vm0, %v719_v0  ;;  %v585_v6 = vmul.f32 %v1866_v37, %v1713_v44  ;;  %v586_v24 = vmul.f32 %v1866_v37, %v2479_v14  ;;  %v587_v44 = vmul.f32 %v1866_v37, %v2480_v34 }
 0x163   :  { %784 = vst.msk [vmem:[%s2393_s3 + $0x120] sm:$0xff] %vm142_vm0, %v720_v58  ;;  %785 = vst.msk [vmem:[%s2393_s3 + $0x128] sm:$0xff] %vm142_vm0, %v721_v10  ;;  %v588_v53 = vmul.f32 %v1866_v37, %v2481_v17  ;;  %v589_v31 = vmul.f32 %v1866_v37, %v2482_v38  ;;  %v653_v35 = vmul.f32 %v1871_v45, %v582_v8 }
 0x164   :  { %786 = vst.msk [vmem:[%s2393_s3 + $0x130] sm:$0xff] %vm142_vm0, %v722_v13  ;;  %787 = vst.msk [vmem:[%s2393_s3 + $0x138] sm:$0xff] %vm142_vm0, %v723_v19  ;;  %v654_v39 = vmul.f32 %v1871_v45, %v583_v25  ;;  %v655_v22 = vmul.f32 %v1871_v45, %v584_v30  ;;  %v656_v28 = vmul.f32 %v1871_v45, %v585_v6  ;;  %v2491_v19 = vld [vmem:[#allocation10_spill] sm:$0xff]  ;;  %v2492_v25 = vld [vmem:[#allocation11_spill] sm:$0xff] }
 0x165   :  { %v657_v60 = vmul.f32 %v1871_v45, %v586_v24  ;;  %v658_v36 = vmul.f32 %v1871_v45, %v587_v44  ;;  %v659_v41 = vmul.f32 %v1871_v45, %v588_v53  ;;  %v660_v46 = vmul.f32 %v1871_v45, %v589_v31  ;;  %v2493_v6 = vld [vmem:[#allocation12_spill] sm:$0xff]  ;;  %v2494_v24 = vld [vmem:[#allocation13_spill] sm:$0xff]  ;;  %v2495_v44 = vld [vmem:[#allocation14_spill] sm:$0xff] }
 0x166   :  { %v724_v52 = vadd.f32 %v1884_v12, %v653_v35  ;;  %v725_v32 = vadd.f32 %v1884_v12, %v654_v39  ;;  %v726_v50 = vadd.f32 %v1884_v12, %v655_v22  ;;  %v727_v43 = vadd.f32 %v1884_v12, %v656_v28  ;;  %v2496_v53 = vld [vmem:[#allocation15_spill] sm:$0xff]  ;;  %v2497_v31 = vld [vmem:[#allocation21_spill] sm:$0xff]  ;;  %v2498_v39 = vld [vmem:[#allocation22_spill] sm:$0xff] }
 0x167   :  { %v728_v47 = vadd.f32 %v1884_v12, %v657_v60  ;;  %v729_v49 = vadd.f32 %v1884_v12, %v658_v36  ;;  %v730_v57 = vadd.f32 %v1884_v12, %v659_v41  ;;  %v731_v62 = vadd.f32 %v1884_v12, %v660_v46 }
 0x168   :  { %788 = vst.msk [vmem:[%s2393_s3 + $0x140] sm:$0xff] %vm142_vm0, %v724_v52  ;;  %789 = vst.msk [vmem:[%s2393_s3 + $0x148] sm:$0xff] %vm142_vm0, %v725_v32  ;;  %v590_v4 = vmul.f32 %v1866_v37, %v2483_v51  ;;  %v591_v55 = vmul.f32 %v1866_v37, %v2484_v9  ;;  %v592_v27 = vmul.f32 %v1866_v37, %v2485_v42 }
 0x169   :  { %790 = vst.msk [vmem:[%s2393_s3 + $0x150] sm:$0xff] %vm142_vm0, %v726_v50  ;;  %791 = vst.msk [vmem:[%s2393_s3 + $0x158] sm:$0xff] %vm142_vm0, %v727_v43  ;;  %v593_v11 = vmul.f32 %v1866_v37, %v2486_v20  ;;  %v594_v15 = vmul.f32 %v1866_v37, %v2487_v29  ;;  %v595_v21 = vmul.f32 %v1866_v37, %v2488_v56 }
 0x16a   :  { %792 = vst.msk [vmem:[%s2393_s3 + $0x160] sm:$0xff] %vm142_vm0, %v728_v47  ;;  %793 = vst.msk [vmem:[%s2393_s3 + $0x168] sm:$0xff] %vm142_vm0, %v729_v49  ;;  %v596_v18 = vmul.f32 %v1866_v37, %v2489_v23  ;;  %v597_v33 = vmul.f32 %v1866_v37, %v2490_v26  ;;  %v661_v40 = vmul.f32 %v1871_v45, %v590_v4 }
 0x16b   :  { %794 = vst.msk [vmem:[%s2393_s3 + $0x170] sm:$0xff] %vm142_vm0, %v730_v57  ;;  %795 = vst.msk [vmem:[%s2393_s3 + $0x178] sm:$0xff] %vm142_vm0, %v731_v62  ;;  %v662_v16 = vmul.f32 %v1871_v45, %v591_v55  ;;  %v663_v59 = vmul.f32 %v1871_v45, %v592_v27  ;;  %v664_v63 = vmul.f32 %v1871_v45, %v593_v11 }
 0x16c   :  { %v665_v3 = vmul.f32 %v1871_v45, %v594_v15  ;;  %v666_v7 = vmul.f32 %v1871_v45, %v595_v21  ;;  %v667_v48 = vmul.f32 %v1871_v45, %v596_v18  ;;  %v668_v54 = vmul.f32 %v1871_v45, %v597_v33 }
 0x16d   :  { %v732_v2 = vadd.f32 %v1884_v12, %v661_v40  ;;  %v733_v61 = vadd.f32 %v1884_v12, %v662_v16  ;;  %v734_v5 = vadd.f32 %v1884_v12, %v663_v59  ;;  %v735_v1 = vadd.f32 %v1884_v12, %v664_v63 }
 0x16e   :  { %v736_v0 = vadd.f32 %v1884_v12, %v665_v3  ;;  %v737_v58 = vadd.f32 %v1884_v12, %v666_v7  ;;  %v738_v10 = vadd.f32 %v1884_v12, %v667_v48  ;;  %v739_v13 = vadd.f32 %v1884_v12, %v668_v54 }
 0x16f   :  { %796 = vst.msk [vmem:[%s2393_s3 + $0x180] sm:$0xff] %vm142_vm0, %v732_v2  ;;  %797 = vst.msk [vmem:[%s2393_s3 + $0x188] sm:$0xff] %vm142_vm0, %v733_v61  ;;  %v598_v8 = vmul.f32 %v1866_v37, %v2491_v19  ;;  %v599_v30 = vmul.f32 %v1866_v37, %v2492_v25  ;;  %v600_v14 = vmul.f32 %v1866_v37, %v2493_v6 }
 0x170   :  { %798 = vst.msk [vmem:[%s2393_s3 + $0x190] sm:$0xff] %vm142_vm0, %v734_v5  ;;  %799 = vst.msk [vmem:[%s2393_s3 + $0x198] sm:$0xff] %vm142_vm0, %v735_v1  ;;  %v601_v34 = vmul.f32 %v1866_v37, %v2494_v24  ;;  %v602_v17 = vmul.f32 %v1866_v37, %v2495_v44  ;;  %v603_v38 = vmul.f32 %v1866_v37, %v2496_v53 }
 0x171   :  { %800 = vst.msk [vmem:[%s2393_s3 + $0x1a0] sm:$0xff] %vm142_vm0, %v736_v0  ;;  %801 = vst.msk [vmem:[%s2393_s3 + $0x1a8] sm:$0xff] %vm142_vm0, %v737_v58  ;;  %v604_v35 = vmul.f32 %v1866_v37, %v2497_v31  ;;  %v605_v22 = vmul.f32 %v1866_v37, %v2498_v39  ;;  %v669_v28 = vmul.f32 %v1871_v45, %v598_v8 }
 0x172   :  { %802 = vst.msk [vmem:[%s2393_s3 + $0x1b0] sm:$0xff] %vm142_vm0, %v738_v10  ;;  %803 = vst.msk [vmem:[%s2393_s3 + $0x1b8] sm:$0xff] %vm142_vm0, %v739_v13  ;;  %v670_v60 = vmul.f32 %v1871_v45, %v599_v30  ;;  %v671_v36 = vmul.f32 %v1871_v45, %v600_v14  ;;  %v672_v41 = vmul.f32 %v1871_v45, %v601_v34 }
 0x173   :  { %v673_v46 = vmul.f32 %v1871_v45, %v602_v17  ;;  %v674_v52 = vmul.f32 %v1871_v45, %v603_v38  ;;  %v675_v32 = vmul.f32 %v1871_v45, %v604_v35  ;;  %v676_v50 = vmul.f32 %v1871_v45, %v605_v22 }
 0x174   :  { %v740_v43 = vadd.f32 %v1884_v12, %v669_v28  ;;  %v741_v37 = vadd.f32 %v1884_v12, %v670_v60  ;;  %v742_v47 = vadd.f32 %v1884_v12, %v671_v36  ;;  %v743_v49 = vadd.f32 %v1884_v12, %v672_v41 }
 0x175   :  { %v744_v57 = vadd.f32 %v1884_v12, %v673_v46  ;;  %v745_v62 = vadd.f32 %v1884_v12, %v674_v52  ;;  %v746_v51 = vadd.f32 %v1884_v12, %v675_v32  ;;  %v747_v4 = vadd.f32 %v1884_v12, %v676_v50 }
 0x176   :  { %804 = vst.msk [vmem:[%s2393_s3 + $0x1c0] sm:$0xff] %vm142_vm0, %v740_v43  ;;  %805 = vst.msk [vmem:[%s2393_s3 + $0x1c8] sm:$0xff] %vm142_vm0, %v741_v37 }
 0x177   :  { %806 = vst.msk [vmem:[%s2393_s3 + $0x1d0] sm:$0xff] %vm142_vm0, %v742_v47  ;;  %807 = vst.msk [vmem:[%s2393_s3 + $0x1d8] sm:$0xff] %vm142_vm0, %v743_v49 }
 0x178   :  { %808 = vst.msk [vmem:[%s2393_s3 + $0x1e0] sm:$0xff] %vm142_vm0, %v744_v57  ;;  %809 = vst.msk [vmem:[%s2393_s3 + $0x1e8] sm:$0xff] %vm142_vm0, %v745_v62 }
 0x179   :  { %810 = vst.msk [vmem:[%s2393_s3 + $0x1f0] sm:$0xff] %vm142_vm0, %v746_v51  ;;  %811 = vst.msk [vmem:[%s2393_s3 + $0x1f8] sm:$0xff] %vm142_vm0, %v747_v4 }

</bundles_post_ra>
